<compile_context>
chip_gen: v7x
topology: tpu7x:2x2x1
jax: 0.10.0
libtpu: 0.0.40
codegen_flags: <defaults>
</compile_context>

<pallas_src>
import functools

import jax
import jax.numpy as jnp
from jax import lax
from jax.experimental import pallas as pl
from jax.experimental.pallas import tpu as pltpu

ATOL = 1e-8          # torch.isclose(x, 0) with defaults reduces to |x| <= 1e-8
TILE_M = 256         # lane-dim tile of the conv GEMM output (multiple of 128)


def _round_up(n, m):
    return ((n + m - 1) // m) * m


# ----------------------------------------------------------------------------
# Pallas kernels
# ----------------------------------------------------------------------------
@functools.lru_cache(maxsize=None)
def _make_conv_kernel(has_prelu, has_res, has_pe):
    """Fused im2col conv GEMM with lane-dense (Cout, M) output tile.

    Positional refs (in order):
      x     (1, Kp, TM)  bf16   im2col patches (one batch elem, one M tile)
      w     (Cp, Kp)     bf16   W^T with conv bias + BN folded in
      shift (Cp, 1)      f32    folded bias/BN shift
      [pe   (1, Cp, 1)   f32]   per-batch p-encoding vector
      [res  (1, Cp, TM)  f32]   residual tile
      [alpha (1,) SMEM   f32]   PReLU slope
      out   (1, Cp, TM)  f32
    Epilogue order mirrors the PyTorch graph: +shift -> PReLU -> +res -> +pe.
    """

    def kernel(x_ref, w_ref, shift_ref, *rest):
        o_ref = rest[-1]
        opt = list(rest[:-1])
        pe_ref = opt.pop(0) if has_pe else None
        res_ref = opt.pop(0) if has_res else None
        alpha_ref = opt.pop(0) if has_prelu else None

        acc = jnp.dot(w_ref[...], x_ref[0], preferred_element_type=jnp.float32)
        acc = acc + shift_ref[...]
        if has_prelu:
            a = alpha_ref[0]
            acc = jnp.where(acc >= 0, acc, a * acc)
        if has_res:
            acc = acc + res_ref[0]
        if has_pe:
            acc = acc + pe_ref[0]
        o_ref[0] = acc

    return kernel


def _penc_kernel(p_ref, w1_ref, b1_ref, w2_ref, b2_ref, w3_ref, b3_ref, o_ref):
    """All 10 p-encoding MLPs at once via block-diagonal stacked weights.

    Linear(1 -> J*ms) -> cos -> Linear(block-diag (J*ms, J*ms)) -> SiLU
    -> Linear(block-diag (J*ms, J*ms), unused cols zero).  Output (B, J*ms).
    """
    p = p_ref[...]                                    # (B, 1)
    h = jnp.cos(p * w1_ref[...] + b1_ref[...])        # fan-in-1 Linear == bcast mul
    h = jnp.dot(h, w2_ref[...], preferred_element_type=jnp.float32) + b2_ref[...]
    h = h * (1.0 / (1.0 + jnp.exp(-h)))               # SiLU
    o_ref[...] = jnp.dot(h, w3_ref[...], preferred_element_type=jnp.float32) + b3_ref[...]


# ----------------------------------------------------------------------------
# Wrappers (glue: padding, im2col, pixel shuffle)
# ----------------------------------------------------------------------------
def _im2col_nchw(x, k, pad, stride):
    """x: (B,C,H,W) -> patches (B, k*k*C, Ho*Wo), feature order (ky, kx, c)."""
    B, C, H, W = x.shape
    xp = jnp.pad(x, ((0, 0), (0, 0), (pad, pad), (pad, pad)))
    Ho = (H + 2 * pad - k) // stride + 1
    Wo = (W + 2 * pad - k) // stride + 1
    cols = []
    for ky in range(k):
        for kx in range(k):
            cols.append(xp[:, :, ky:ky + stride * (Ho - 1) + 1:stride,
                                 kx:kx + stride * (Wo - 1) + 1:stride])
    pat = jnp.stack(cols, axis=1)                     # (B, k*k, C, Ho, Wo)
    return pat.reshape(B, k * k * C, Ho * Wo), Ho, Wo


def conv2d_fused(params, x, *, k, pad, stride=1, residual=None, pe=None,
                 cout=None, tile_m=TILE_M):
    """Conv2d(+bias)[+BN eval][+PReLU][+residual][+pe add], NCHW in / NCHW out."""
    w_t, shift, alpha = params                        # w_t: (Cp, Kp) bf16 (folded)
    cp, kp = w_t.shape
    cout = cp if cout is None else cout
    has_prelu = alpha is not None
    B = x.shape[0]

    pat, Ho, Wo = _im2col_nchw(x, k, pad, stride)     # (B, K, M) f32
    K, M = pat.shape[1], pat.shape[2]
    Mp = _round_up(M, tile_m)
    pat = jnp.pad(pat, ((0, 0), (0, kp - K), (0, Mp - M))).astype(jnp.bfloat16)

    args = [pat, w_t, shift]
    in_specs = [
        pl.BlockSpec((1, kp, tile_m), lambda b, m: (b, 0, m)),
        pl.BlockSpec((cp, kp), lambda b, m: (0, 0)),
        pl.BlockSpec((cp, 1), lambda b, m: (0, 0)),
    ]
    if pe is not None:
        if pe.shape[1] != cp:
            pe = jnp.pad(pe, ((0, 0), (0, cp - pe.shape[1])))
        args.append(pe.reshape(B, cp, 1).astype(jnp.float32))
        in_specs.append(pl.BlockSpec((1, cp, 1), lambda b, m: (b, 0, 0)))
    if residual is not None:
        res = residual.reshape(B, cp, M).astype(jnp.float32)
        if Mp != M:
            res = jnp.pad(res, ((0, 0), (0, 0), (0, Mp - M)))
        args.append(res)
        in_specs.append(pl.BlockSpec((1, cp, tile_m), lambda b, m: (b, 0, m)))
    if has_prelu:
        args.append(alpha.astype(jnp.float32))
        in_specs.append(pl.BlockSpec(memory_space=pltpu.MemorySpace.SMEM))

    out = pl.pallas_call(
        _make_conv_kernel(has_prelu, residual is not None, pe is not None),
        out_shape=jax.ShapeDtypeStruct((B, cp, Mp), jnp.float32),
        grid=(B, Mp // tile_m),
        in_specs=in_specs,
        out_specs=pl.BlockSpec((1, cp, tile_m), lambda b, m: (b, 0, m)),
        compiler_params=pltpu.CompilerParams(
            dimension_semantics=("parallel", "parallel")),
    )(*args)
    return out[:, :cout, :M].reshape(B, cout, Ho, Wo)


def penc_apply(params, p):
    """p: (B,1) -> (B, 10*ms); MLP j occupies columns [j*ms, j*ms + dout_j)."""
    w1, b1, w2, b2, w3, b3 = params
    B = p.shape[0]
    D = w1.shape[1]
    return pl.pallas_call(
        _penc_kernel,
        out_shape=jax.ShapeDtypeStruct((B, D), jnp.float32),
    )(p, w1, b1, w2, b2, w3, b3)


def pixel_shuffle_nchw(x, r):
    """NCHW torch.nn.PixelShuffle(r)."""
    B, C, H, W = x.shape
    Co = C // (r * r)
    x = x.reshape(B, Co, r, r, H, W)
    x = jnp.transpose(x, (0, 1, 4, 2, 5, 3))          # (B, Co, H, r, W, r)
    return x.reshape(B, Co, H * r, W * r)


# ----------------------------------------------------------------------------
# Deterministic parameter init (shapes dictated by the PyTorch __init__),
# with bias/BN pre-folded, transposed to (Cout, k*k*Cin), padded, bf16.
# ----------------------------------------------------------------------------
def _init_conv(key, k, cin, cout, *, bn, prelu):
    ks = jax.random.split(key, 6)
    w = jax.random.normal(ks[0], (k, k, cin, cout), jnp.float32) / jnp.sqrt(k * k * cin)
    b = 0.1 * jax.random.normal(ks[1], (cout,), jnp.float32)
    if bn:
        gamma = 1.0 + 0.1 * jax.random.normal(ks[2], (cout,), jnp.float32)
        beta = 0.1 * jax.random.normal(ks[3], (cout,), jnp.float32)
        mean = 0.1 * jax.random.normal(ks[4], (cout,), jnp.float32)
        var = 0.5 + jax.random.uniform(ks[5], (cout,), jnp.float32)
        sc = gamma / jnp.sqrt(var + 1e-5)
        sh = beta - mean * sc
    else:
        sc = jnp.ones((cout,), jnp.float32)
        sh = jnp.zeros((cout,), jnp.float32)
    # Fold bias + BN: y = (Wx + b)*sc + sh = W'x + shift
    w_f = w * sc
    shift = b * sc + sh
    kp = _round_up(k * k * cin, 128)                  # contraction alignment
    cp = _round_up(cout, 8)                           # sublane alignment
    w_t = jnp.transpose(w_f, (3, 0, 1, 2)).reshape(cout, k * k * cin)  # (ky,kx,cin)
    w_t = jnp.pad(w_t, ((0, cp - cout), (0, kp - k * k * cin))).astype(jnp.bfloat16)
    shift = jnp.pad(shift, (0, cp - cout)).reshape(cp, 1)
    alpha = jnp.array([0.25], jnp.float32) if prelu else None  # PReLU init slope
    return (w_t, shift, alpha)


def _block_diag(mats):
    n = sum(m.shape[0] for m in mats)
    p = sum(m.shape[1] for m in mats)
    out = jnp.zeros((n, p), mats[0].dtype)
    r = c = 0
    for m in mats:
        out = out.at[r:r + m.shape[0], c:c + m.shape[1]].set(m)
        r += m.shape[0]
        c += m.shape[1]
    return out


def _init_penc_stack(key, ms, douts):
    """Stack the 10 p-encoding MLPs into one block-diagonal weight set."""
    w1s, b1s, w2s, b2s, w3s, b3s = [], [], [], [], [], []
    for kj, dout in zip(jax.random.split(key, len(douts)), douts):
        ks = jax.random.split(kj, 6)
        w1s.append(jax.random.normal(ks[0], (1, ms), jnp.float32))
        b1s.append(0.1 * jax.random.normal(ks[1], (ms,), jnp.float32))
        w2s.append(jax.random.normal(ks[2], (ms, ms), jnp.float32) / jnp.sqrt(ms))
        b2s.append(0.1 * jax.random.normal(ks[3], (ms,), jnp.float32))
        w3 = jax.random.normal(ks[4], (ms, dout), jnp.float32) / jnp.sqrt(ms)
        b3 = 0.1 * jax.random.normal(ks[5], (dout,), jnp.float32)
        w3s.append(jnp.pad(w3, ((0, 0), (0, ms - dout))))
        b3s.append(jnp.pad(b3, (0, ms - dout)))
    W1 = jnp.concatenate(w1s, axis=1)                 # (1, J*ms)
    B1 = jnp.concatenate(b1s).reshape(1, -1)
    W2 = _block_diag(w2s)                             # (J*ms, J*ms)
    B2 = jnp.concatenate(b2s).reshape(1, -1)
    W3 = _block_diag(w3s)                             # (J*ms, J*ms), extra cols = 0
    B3 = jnp.concatenate(b3s).reshape(1, -1)
    return (W1, B1, W2, B2, W3, B3)


def init_params(key, ms=32):
    keys = jax.random.split(key, 20)
    it = iter(keys)
    params = {}
    params["initial"] = _init_conv(next(it), 9, 3, ms, bn=False, prelu=True)
    params["penc"] = _init_penc_stack(next(it), ms, [ms] * 8 + [ms // 4, ms // 16])
    c1s, c2s = [], []
    for _ in range(6):
        c1s.append(_init_conv(next(it), 3, ms, ms, bn=True, prelu=True))
        c2s.append(_init_conv(next(it), 3, ms, ms, bn=True, prelu=True))
    # Stack res-block params so the 6 blocks run under lax.scan (2 Pallas
    # lowerings total instead of 12).
    params["res_c1"] = tuple(jnp.stack(t) for t in zip(*c1s))
    params["res_c2"] = tuple(jnp.stack(t) for t in zip(*c2s))
    params["post"] = _init_conv(next(it), 3, ms, ms, bn=True, prelu=False)
    params["up0"] = _init_conv(next(it), 3, ms, ms, bn=False, prelu=True)
    params["up1"] = _init_conv(next(it), 3, ms // 4, ms // 4, bn=False, prelu=True)
    params["final"] = _init_conv(next(it), 9, ms // 16, 3, bn=False, prelu=False)
    return params


# ----------------------------------------------------------------------------
# Forward pass (mirrors ModifiedSSRGenerator.forward, cutout=False)
# ----------------------------------------------------------------------------
def forward(params, x_nchw):
    B = x_nchw.shape[0]
    ms = params["penc"][0].shape[1] // 10
    douts = [ms] * 8 + [ms // 4, ms // 16]

    close0 = jnp.abs(x_nchw) <= ATOL                          # torch.isclose(x, 0)
    p_approx = jnp.mean(close0.astype(jnp.float32).reshape(B, -1),
                        axis=1, keepdims=True)                # (B, 1)

    # All 10 p-encoding MLPs in one Pallas call.
    pe_all = penc_apply(params["penc"], p_approx)             # (B, 10*ms)
    pe = [pe_all[:, j * ms:j * ms + d] for j, d in enumerate(douts)]

    r0 = conv2d_fused(params["initial"], x_nchw, k=9, pad=4)  # Conv(3->ms,k9,p4)+PReLU
    x = r0 + pe[0][:, :, None, None]

    # Six ResBlocks under scan: Conv+BN+PReLU, then Conv+BN+PReLU with the
    # identity-skip residual and the NEXT pe broadcast add fused in the epilogue.
    pe_mid = jnp.stack([pe[i] for i in range(1, 7)], axis=0)  # (6, B, ms)

    def res_body(x, xs):
        c1, c2, pe_i = xs
        h = conv2d_fused(c1, x, k=3, pad=1)
        x = conv2d_fused(c2, h, k=3, pad=1, residual=x, pe=pe_i)
        return x, None

    x, _ = lax.scan(res_body, x, (params["res_c1"], params["res_c2"], pe_mid))

    # post_rb_conv (Conv+BN, no PReLU) + r0 + pe7, both adds fused.
    x = conv2d_fused(params["post"], x, k=3, pad=1, residual=r0, pe=pe[7])

    # upsampling[0]: Conv -> PixelShuffle(2) -> PReLU (+pe8). Scalar-slope PReLU
    # and the per-post-shuffle-channel pe add commute with the shuffle, so both
    # are fused into the conv epilogue (pe repeated r*r per pre-shuffle channel).
    pe8_pre = jnp.repeat(pe[8], 4, axis=1)
    x = conv2d_fused(params["up0"], x, k=3, pad=1, pe=pe8_pre)
    x = pixel_shuffle_nchw(x, 2)

    # upsampling[1]
    pe9_pre = jnp.repeat(pe[9], 4, axis=1)
    x = conv2d_fused(params["up1"], x, k=3, pad=1, pe=pe9_pre)
    x = pixel_shuffle_nchw(x, 2)

    # final_conv: Conv(ms//16 -> 3, k9, stride 4, pad 4); Cout padded 3->8 inside.
    x = conv2d_fused(params["final"], x, k=9, pad=4, stride=4, cout=3)

    # x[~isclose(x_pre, 0)] = x_pre[~isclose(x_pre, 0)]
    return jnp.where(close0, x, x_nchw)


if __name__ == "__main__":
    ms = 32
    B, C, H, W = 2, 3, 16, 16
    key = jax.random.PRNGKey(0)
    kx, kz, kp = jax.random.split(key, 3)
    x = jax.random.normal(kx, (B, C, H, W), jnp.float32)
    zero_mask = jax.random.bernoulli(kz, 0.3, (B, C, H, W))
    x = jnp.where(zero_mask, 0.0, x)   # exact zeros exercise p_approx + masking path

    params = init_params(kp, ms=ms)
    out = jax.jit(forward)(params, x)
    out = jax.block_until_ready(out)

    assert out.shape == (B, C, H, W), out.shape
    assert bool(jnp.all(jnp.isfinite(out)))
    print("KERNEL_OK")
</pallas_src>

<mosaic_0001>
module attributes {stable_mosaic.version = 11 : i64} {
  func.func @_penc_kernel(%arg0: memref<2x1xf32, #tpu.memory_space<vmem>>, %arg1: memref<1x320xf32, #tpu.memory_space<vmem>>, %arg2: memref<1x320xf32, #tpu.memory_space<vmem>>, %arg3: memref<320x320xf32, #tpu.memory_space<vmem>>, %arg4: memref<1x320xf32, #tpu.memory_space<vmem>>, %arg5: memref<320x320xf32, #tpu.memory_space<vmem>>, %arg6: memref<1x320xf32, #tpu.memory_space<vmem>>, %arg7: memref<2x320xf32, #tpu.memory_space<vmem>>) attributes {dimension_semantics = [], scalar_prefetch = 0 : i64, scratch_operands = 0 : i64, tpu.core_type = #tpu.core_type<tc>} {
    %c0 = arith.constant 0 : index
    %c0_0 = arith.constant 0 : index
    %0 = vector.load %arg0[%c0, %c0_0] : memref<2x1xf32, #tpu.memory_space<vmem>>, vector<2x1xf32>
    %c0_1 = arith.constant 0 : index
    %c0_2 = arith.constant 0 : index
    %1 = vector.load %arg1[%c0_1, %c0_2] : memref<1x320xf32, #tpu.memory_space<vmem>>, vector<1x320xf32>
    %2 = vector.broadcast %0 : vector<2x1xf32> to vector<2x320xf32>
    %3 = vector.broadcast %1 : vector<1x320xf32> to vector<2x320xf32>
    %4 = arith.mulf %2, %3 : vector<2x320xf32>
    %c0_3 = arith.constant 0 : index
    %c0_4 = arith.constant 0 : index
    %5 = vector.load %arg2[%c0_3, %c0_4] : memref<1x320xf32, #tpu.memory_space<vmem>>, vector<1x320xf32>
    %6 = vector.broadcast %5 : vector<1x320xf32> to vector<2x320xf32>
    %7 = arith.addf %4, %6 : vector<2x320xf32>
    %8 = math.cos %7 : vector<2x320xf32>
    %c0_5 = arith.constant 0 : index
    %c0_6 = arith.constant 0 : index
    %9 = vector.load %arg3[%c0_5, %c0_6] : memref<320x320xf32, #tpu.memory_space<vmem>>, vector<320x320xf32>
    %cst = arith.constant dense<0.000000e+00> : vector<2x320xf32>
    %10 = tpu.matmul %8, %9, %cst {dimension_numbers = #tpu.dot_dimension_numbers<[1], [0], [0], [1], [0, 0, 1, 1], [], []>} : vector<2x320xf32>, vector<320x320xf32>, vector<2x320xf32> -> vector<2x320xf32>
    %c0_7 = arith.constant 0 : index
    %c0_8 = arith.constant 0 : index
    %11 = vector.load %arg4[%c0_7, %c0_8] : memref<1x320xf32, #tpu.memory_space<vmem>>, vector<1x320xf32>
    %12 = vector.broadcast %11 : vector<1x320xf32> to vector<2x320xf32>
    %13 = arith.addf %10, %12 : vector<2x320xf32>
    %cst_9 = arith.constant 0.000000e+00 : f32
    %14 = vector.broadcast %cst_9 : f32 to vector<2x320xf32>
    %15 = arith.subf %14, %13 : vector<2x320xf32>
    %16 = math.exp %15 : vector<2x320xf32>
    %cst_10 = arith.constant 1.000000e+00 : f32
    %17 = vector.broadcast %cst_10 : f32 to vector<2x320xf32>
    %18 = arith.addf %17, %16 : vector<2x320xf32>
    %cst_11 = arith.constant 1.000000e+00 : f32
    %19 = vector.broadcast %cst_11 : f32 to vector<2x320xf32>
    %20 = arith.divf %19, %18 : vector<2x320xf32>
    %21 = arith.mulf %13, %20 : vector<2x320xf32>
    %c0_12 = arith.constant 0 : index
    %c0_13 = arith.constant 0 : index
    %22 = vector.load %arg5[%c0_12, %c0_13] : memref<320x320xf32, #tpu.memory_space<vmem>>, vector<320x320xf32>
    %cst_14 = arith.constant dense<0.000000e+00> : vector<2x320xf32>
    %23 = tpu.matmul %21, %22, %cst_14 {dimension_numbers = #tpu.dot_dimension_numbers<[1], [0], [0], [1], [0, 0, 1, 1], [], []>} : vector<2x320xf32>, vector<320x320xf32>, vector<2x320xf32> -> vector<2x320xf32>
    %c0_15 = arith.constant 0 : index
    %c0_16 = arith.constant 0 : index
    %24 = vector.load %arg6[%c0_15, %c0_16] : memref<1x320xf32, #tpu.memory_space<vmem>>, vector<1x320xf32>
    %25 = vector.broadcast %24 : vector<1x320xf32> to vector<2x320xf32>
    %26 = arith.addf %23, %25 : vector<2x320xf32>
    %c0_17 = arith.constant 0 : index
    %c0_18 = arith.constant 0 : index
    %27 = vector.load %arg7[%c0_17, %c0_18] : memref<2x320xf32, #tpu.memory_space<vmem>>, vector<2x320xf32>
    tpu.vector_store %arg7[%c0_17, %c0_18], %26 {strides = array<i32>} : memref<2x320xf32, #tpu.memory_space<vmem>>, vector<2x320xf32>,
    return
  }
}

module attributes {stable_mosaic.version = 11 : i64} {
  func.func @kernel(%arg0: i32, %arg1: i32, %arg2: memref<1x256x256xbf16, #tpu.memory_space<vmem>>, %arg3: memref<32x256xbf16, #tpu.memory_space<vmem>>, %arg4: memref<32x1xf32, #tpu.memory_space<vmem>>, %arg5: memref<1xf32, #tpu.memory_space<smem>>, %arg6: memref<1x32x256xf32, #tpu.memory_space<vmem>>) attributes {dimension_semantics = [#tpu.dimension_semantics<parallel>, #tpu.dimension_semantics<parallel>], iteration_bounds = array<i64: 2, 1>, scalar_prefetch = 0 : i64, scratch_operands = 0 : i64, tpu.core_type = #tpu.core_type<tc>, window_params = [{transform_indices = @transform_0, window_bounds = array<i64: 1, 256, 256>}, {pipeline_mode = #tpu.pipeline_mode<synchronous>, transform_indices = @transform_1, window_bounds = array<i64: 32, 256>}, {pipeline_mode = #tpu.pipeline_mode<synchronous>, transform_indices = @transform_2, window_bounds = array<i64: 32, 1>}, {transform_indices = @transform_3, window_bounds = array<i64: 1>}, {transform_indices = @transform_4, window_bounds = array<i64: 1, 32, 256>}]} {
    %c0 = arith.constant 0 : index
    %c0_0 = arith.constant 0 : index
    %0 = vector.load %arg3[%c0, %c0_0] : memref<32x256xbf16, #tpu.memory_space<vmem>>, vector<32x256xbf16>
    %c0_1 = arith.constant 0 : index
    %c0_2 = arith.constant 0 : index
    %c0_3 = arith.constant 0 : index
    %1 = vector.load %arg2[%c0_1, %c0_2, %c0_3] : memref<1x256x256xbf16, #tpu.memory_space<vmem>>, vector<1x256x256xbf16>
    %2 = vector.shape_cast %1 : vector<1x256x256xbf16> to vector<256x256xbf16>
    %cst = arith.constant dense<0.000000e+00> : vector<32x256xf32>
    %3 = tpu.matmul %0, %2, %cst {dimension_numbers = #tpu.dot_dimension_numbers<[1], [0], [0], [1], [0, 0, 1, 1], [], []>} : vector<32x256xbf16>, vector<256x256xbf16>, vector<32x256xf32> -> vector<32x256xf32>
    %c0_4 = arith.constant 0 : index
    %c0_5 = arith.constant 0 : index
    %4 = vector.load %arg4[%c0_4, %c0_5] : memref<32x1xf32, #tpu.memory_space<vmem>>, vector<32x1xf32>
    %5 = vector.broadcast %4 : vector<32x1xf32> to vector<32x256xf32>
    %6 = arith.addf %3, %5 : vector<32x256xf32>
    %c0_6 = arith.constant 0 : index
    %7 = memref.load %arg5[%c0_6] : memref<1xf32, #tpu.memory_space<smem>>
    %cst_7 = arith.constant 0.000000e+00 : f32
    %8 = vector.broadcast %cst_7 : f32 to vector<32x256xf32>
    %9 = arith.cmpf oge, %6, %8 : vector<32x256xf32>
    %10 = vector.broadcast %7 : f32 to vector<32x256xf32>
    %11 = arith.mulf %10, %6 : vector<32x256xf32>
    %12 = arith.select %9, %6, %11 : vector<32x256xi1>, vector<32x256xf32>
    %c0_8 = arith.constant 0 : index
    %c0_9 = arith.constant 0 : index
    %c0_10 = arith.constant 0 : index
    %13 = vector.load %arg6[%c0_8, %c0_9, %c0_10] : memref<1x32x256xf32, #tpu.memory_space<vmem>>, vector<1x32x256xf32>
    %14 = vector.shape_cast %13 : vector<1x32x256xf32> to vector<32x256xf32>
    %15 = vector.shape_cast %12 : vector<32x256xf32> to vector<1x32x256xf32>
    tpu.vector_store %arg6[%c0_8, %c0_9, %c0_10], %15 {strides = array<i32>} : memref<1x32x256xf32, #tpu.memory_space<vmem>>, vector<1x32x256xf32>,
    return
  }
  func.func @transform_0(%arg0: i32, %arg1: i32) -> (i32, i32, i32) {
    %c0_i32 = arith.constant 0 : i32
    %c0_i32_0 = arith.constant 0 : i32
    return %arg0, %c0_i32, %arg1 : i32, i32, i32
  }
  func.func @transform_1(%arg0: i32, %arg1: i32) -> (i32, i32) {
    %c0_i32 = arith.constant 0 : i32
    %c0_i32_0 = arith.constant 0 : i32
    %c0_i32_1 = arith.constant 0 : i32
    return %c0_i32, %c0_i32_0 : i32, i32
  }
  func.func @transform_2(%arg0: i32, %arg1: i32) -> (i32, i32) {
    %c0_i32 = arith.constant 0 : i32
    %c0_i32_0 = arith.constant 0 : i32
    %c0_i32_1 = arith.constant 0 : i32
    return %c0_i32, %c0_i32_0 : i32, i32
  }
  func.func @transform_3(%arg0: i32, %arg1: i32) -> i32 {
    %c0_i32 = arith.constant 0 : i32
    %c0_i32_0 = arith.constant 0 : i32
    return %c0_i32 : i32
  }
  func.func @transform_4(%arg0: i32, %arg1: i32) -> (i32, i32, i32) {
    %c0_i32 = arith.constant 0 : i32
    %c0_i32_0 = arith.constant 0 : i32
    return %arg0, %c0_i32, %arg1 : i32, i32, i32
  }
}

module attributes {stable_mosaic.version = 11 : i64} {
  func.func @kernel(%arg0: i32, %arg1: i32, %arg2: memref<1x384x256xbf16, #tpu.memory_space<vmem>>, %arg3: memref<32x384xbf16, #tpu.memory_space<vmem>>, %arg4: memref<32x1xf32, #tpu.memory_space<vmem>>, %arg5: memref<1xf32, #tpu.memory_space<smem>>, %arg6: memref<1x32x256xf32, #tpu.memory_space<vmem>>) attributes {dimension_semantics = [#tpu.dimension_semantics<parallel>, #tpu.dimension_semantics<parallel>], iteration_bounds = array<i64: 2, 1>, scalar_prefetch = 0 : i64, scratch_operands = 0 : i64, tpu.core_type = #tpu.core_type<tc>, window_params = [{transform_indices = @transform_0, window_bounds = array<i64: 1, 384, 256>}, {pipeline_mode = #tpu.pipeline_mode<synchronous>, transform_indices = @transform_1, window_bounds = array<i64: 32, 384>}, {pipeline_mode = #tpu.pipeline_mode<synchronous>, transform_indices = @transform_2, window_bounds = array<i64: 32, 1>}, {transform_indices = @transform_3, window_bounds = array<i64: 1>}, {transform_indices = @transform_4, window_bounds = array<i64: 1, 32, 256>}]} {
    %c0 = arith.constant 0 : index
    %c0_0 = arith.constant 0 : index
    %0 = vector.load %arg3[%c0, %c0_0] : memref<32x384xbf16, #tpu.memory_space<vmem>>, vector<32x384xbf16>
    %c0_1 = arith.constant 0 : index
    %c0_2 = arith.constant 0 : index
    %c0_3 = arith.constant 0 : index
    %1 = vector.load %arg2[%c0_1, %c0_2, %c0_3] : memref<1x384x256xbf16, #tpu.memory_space<vmem>>, vector<1x384x256xbf16>
    %2 = vector.shape_cast %1 : vector<1x384x256xbf16> to vector<384x256xbf16>
    %cst = arith.constant dense<0.000000e+00> : vector<32x256xf32>
    %3 = tpu.matmul %0, %2, %cst {dimension_numbers = #tpu.dot_dimension_numbers<[1], [0], [0], [1], [0, 0, 1, 1], [], []>} : vector<32x384xbf16>, vector<384x256xbf16>, vector<32x256xf32> -> vector<32x256xf32>
    %c0_4 = arith.constant 0 : index
    %c0_5 = arith.constant 0 : index
    %4 = vector.load %arg4[%c0_4, %c0_5] : memref<32x1xf32, #tpu.memory_space<vmem>>, vector<32x1xf32>
    %5 = vector.broadcast %4 : vector<32x1xf32> to vector<32x256xf32>
    %6 = arith.addf %3, %5 : vector<32x256xf32>
    %c0_6 = arith.constant 0 : index
    %7 = memref.load %arg5[%c0_6] : memref<1xf32, #tpu.memory_space<smem>>
    %cst_7 = arith.constant 0.000000e+00 : f32
    %8 = vector.broadcast %cst_7 : f32 to vector<32x256xf32>
    %9 = arith.cmpf oge, %6, %8 : vector<32x256xf32>
    %10 = vector.broadcast %7 : f32 to vector<32x256xf32>
    %11 = arith.mulf %10, %6 : vector<32x256xf32>
    %12 = arith.select %9, %6, %11 : vector<32x256xi1>, vector<32x256xf32>
    %c0_8 = arith.constant 0 : index
    %c0_9 = arith.constant 0 : index
    %c0_10 = arith.constant 0 : index
    %13 = vector.load %arg6[%c0_8, %c0_9, %c0_10] : memref<1x32x256xf32, #tpu.memory_space<vmem>>, vector<1x32x256xf32>
    %14 = vector.shape_cast %13 : vector<1x32x256xf32> to vector<32x256xf32>
    %15 = vector.shape_cast %12 : vector<32x256xf32> to vector<1x32x256xf32>
    tpu.vector_store %arg6[%c0_8, %c0_9, %c0_10], %15 {strides = array<i32>} : memref<1x32x256xf32, #tpu.memory_space<vmem>>, vector<1x32x256xf32>,
    return
  }
  func.func @transform_0(%arg0: i32, %arg1: i32) -> (i32, i32, i32) {
    %c0_i32 = arith.constant 0 : i32
    %c0_i32_0 = arith.constant 0 : i32
    return %arg0, %c0_i32, %arg1 : i32, i32, i32
  }
  func.func @transform_1(%arg0: i32, %arg1: i32) -> (i32, i32) {
    %c0_i32 = arith.constant 0 : i32
    %c0_i32_0 = arith.constant 0 : i32
    %c0_i32_1 = arith.constant 0 : i32
    return %c0_i32, %c0_i32_0 : i32, i32
  }
  func.func @transform_2(%arg0: i32, %arg1: i32) -> (i32, i32) {
    %c0_i32 = arith.constant 0 : i32
    %c0_i32_0 = arith.constant 0 : i32
    %c0_i32_1 = arith.constant 0 : i32
    return %c0_i32, %c0_i32_0 : i32, i32
  }
  func.func @transform_3(%arg0: i32, %arg1: i32) -> i32 {
    %c0_i32 = arith.constant 0 : i32
    %c0_i32_0 = arith.constant 0 : i32
    return %c0_i32 : i32
  }
  func.func @transform_4(%arg0: i32, %arg1: i32) -> (i32, i32, i32) {
    %c0_i32 = arith.constant 0 : i32
    %c0_i32_0 = arith.constant 0 : i32
    return %arg0, %c0_i32, %arg1 : i32, i32, i32
  }
}

module attributes {stable_mosaic.version = 11 : i64} {
  func.func @kernel(%arg0: i32, %arg1: i32, %arg2: memref<1x384x256xbf16, #tpu.memory_space<vmem>>, %arg3: memref<32x384xbf16, #tpu.memory_space<vmem>>, %arg4: memref<32x1xf32, #tpu.memory_space<vmem>>, %arg5: memref<1x32x1xf32, #tpu.memory_space<vmem>>, %arg6: memref<1x32x256xf32, #tpu.memory_space<vmem>>, %arg7: memref<1xf32, #tpu.memory_space<smem>>, %arg8: memref<1x32x256xf32, #tpu.memory_space<vmem>>) attributes {dimension_semantics = [#tpu.dimension_semantics<parallel>, #tpu.dimension_semantics<parallel>], iteration_bounds = array<i64: 2, 1>, scalar_prefetch = 0 : i64, scratch_operands = 0 : i64, tpu.core_type = #tpu.core_type<tc>, window_params = [{transform_indices = @transform_0, window_bounds = array<i64: 1, 384, 256>}, {pipeline_mode = #tpu.pipeline_mode<synchronous>, transform_indices = @transform_1, window_bounds = array<i64: 32, 384>}, {pipeline_mode = #tpu.pipeline_mode<synchronous>, transform_indices = @transform_2, window_bounds = array<i64: 32, 1>}, {transform_indices = @transform_3, window_bounds = array<i64: 1, 32, 1>}, {transform_indices = @transform_4, window_bounds = array<i64: 1, 32, 256>}, {transform_indices = @transform_5, window_bounds = array<i64: 1>}, {transform_indices = @transform_6, window_bounds = array<i64: 1, 32, 256>}]} {
    %c0 = arith.constant 0 : index
    %c0_0 = arith.constant 0 : index
    %0 = vector.load %arg3[%c0, %c0_0] : memref<32x384xbf16, #tpu.memory_space<vmem>>, vector<32x384xbf16>
    %c0_1 = arith.constant 0 : index
    %c0_2 = arith.constant 0 : index
    %c0_3 = arith.constant 0 : index
    %1 = vector.load %arg2[%c0_1, %c0_2, %c0_3] : memref<1x384x256xbf16, #tpu.memory_space<vmem>>, vector<1x384x256xbf16>
    %2 = vector.shape_cast %1 : vector<1x384x256xbf16> to vector<384x256xbf16>
    %cst = arith.constant dense<0.000000e+00> : vector<32x256xf32>
    %3 = tpu.matmul %0, %2, %cst {dimension_numbers = #tpu.dot_dimension_numbers<[1], [0], [0], [1], [0, 0, 1, 1], [], []>} : vector<32x384xbf16>, vector<384x256xbf16>, vector<32x256xf32> -> vector<32x256xf32>
    %c0_4 = arith.constant 0 : index
    %c0_5 = arith.constant 0 : index
    %4 = vector.load %arg4[%c0_4, %c0_5] : memref<32x1xf32, #tpu.memory_space<vmem>>, vector<32x1xf32>
    %5 = vector.broadcast %4 : vector<32x1xf32> to vector<32x256xf32>
    %6 = arith.addf %3, %5 : vector<32x256xf32>
    %c0_6 = arith.constant 0 : index
    %7 = memref.load %arg7[%c0_6] : memref<1xf32, #tpu.memory_space<smem>>
    %cst_7 = arith.constant 0.000000e+00 : f32
    %8 = vector.broadcast %cst_7 : f32 to vector<32x256xf32>
    %9 = arith.cmpf oge, %6, %8 : vector<32x256xf32>
    %10 = vector.broadcast %7 : f32 to vector<32x256xf32>
    %11 = arith.mulf %10, %6 : vector<32x256xf32>
    %12 = arith.select %9, %6, %11 : vector<32x256xi1>, vector<32x256xf32>
    %c0_8 = arith.constant 0 : index
    %c0_9 = arith.constant 0 : index
    %c0_10 = arith.constant 0 : index
    %13 = vector.load %arg6[%c0_8, %c0_9, %c0_10] : memref<1x32x256xf32, #tpu.memory_space<vmem>>, vector<1x32x256xf32>
    %14 = vector.shape_cast %13 : vector<1x32x256xf32> to vector<32x256xf32>
    %15 = arith.addf %12, %14 : vector<32x256xf32>
    %c0_11 = arith.constant 0 : index
    %c0_12 = arith.constant 0 : index
    %c0_13 = arith.constant 0 : index
    %16 = vector.load %arg5[%c0_11, %c0_12, %c0_13] : memref<1x32x1xf32, #tpu.memory_space<vmem>>, vector<1x32x1xf32>
    %17 = vector.shape_cast %16 : vector<1x32x1xf32> to vector<32x1xf32>
    %18 = vector.broadcast %17 : vector<32x1xf32> to vector<32x256xf32>
    %19 = arith.addf %15, %18 : vector<32x256xf32>
    %c0_14 = arith.constant 0 : index
    %c0_15 = arith.constant 0 : index
    %c0_16 = arith.constant 0 : index
    %20 = vector.load %arg8[%c0_14, %c0_15, %c0_16] : memref<1x32x256xf32, #tpu.memory_space<vmem>>, vector<1x32x256xf32>
    %21 = vector.shape_cast %20 : vector<1x32x256xf32> to vector<32x256xf32>
    %22 = vector.shape_cast %19 : vector<32x256xf32> to vector<1x32x256xf32>
    tpu.vector_store %arg8[%c0_14, %c0_15, %c0_16], %22 {strides = array<i32>} : memref<1x32x256xf32, #tpu.memory_space<vmem>>, vector<1x32x256xf32>,
    return
  }
  func.func @transform_0(%arg0: i32, %arg1: i32) -> (i32, i32, i32) {
    %c0_i32 = arith.constant 0 : i32
    %c0_i32_0 = arith.constant 0 : i32
    return %arg0, %c0_i32, %arg1 : i32, i32, i32
  }
  func.func @transform_1(%arg0: i32, %arg1: i32) -> (i32, i32) {
    %c0_i32 = arith.constant 0 : i32
    %c0_i32_0 = arith.constant 0 : i32
    %c0_i32_1 = arith.constant 0 : i32
    return %c0_i32, %c0_i32_0 : i32, i32
  }
  func.func @transform_2(%arg0: i32, %arg1: i32) -> (i32, i32) {
    %c0_i32 = arith.constant 0 : i32
    %c0_i32_0 = arith.constant 0 : i32
    %c0_i32_1 = arith.constant 0 : i32
    return %c0_i32, %c0_i32_0 : i32, i32
  }
  func.func @transform_3(%arg0: i32, %arg1: i32) -> (i32, i32, i32) {
    %c0_i32 = arith.constant 0 : i32
    %c0_i32_0 = arith.constant 0 : i32
    %c0_i32_1 = arith.constant 0 : i32
    return %arg0, %c0_i32, %c0_i32_0 : i32, i32, i32
  }
  func.func @transform_4(%arg0: i32, %arg1: i32) -> (i32, i32, i32) {
    %c0_i32 = arith.constant 0 : i32
    %c0_i32_0 = arith.constant 0 : i32
    return %arg0, %c0_i32, %arg1 : i32, i32, i32
  }
  func.func @transform_5(%arg0: i32, %arg1: i32) -> i32 {
    %c0_i32 = arith.constant 0 : i32
    %c0_i32_0 = arith.constant 0 : i32
    return %c0_i32 : i32
  }
  func.func @transform_6(%arg0: i32, %arg1: i32) -> (i32, i32, i32) {
    %c0_i32 = arith.constant 0 : i32
    %c0_i32_0 = arith.constant 0 : i32
    return %arg0, %c0_i32, %arg1 : i32, i32, i32
  }
}

module attributes {stable_mosaic.version = 11 : i64} {
  func.func @kernel(%arg0: i32, %arg1: i32, %arg2: memref<1x384x256xbf16, #tpu.memory_space<vmem>>, %arg3: memref<32x384xbf16, #tpu.memory_space<vmem>>, %arg4: memref<32x1xf32, #tpu.memory_space<vmem>>, %arg5: memref<1x32x1xf32, #tpu.memory_space<vmem>>, %arg6: memref<1x32x256xf32, #tpu.memory_space<vmem>>, %arg7: memref<1x32x256xf32, #tpu.memory_space<vmem>>) attributes {dimension_semantics = [#tpu.dimension_semantics<parallel>, #tpu.dimension_semantics<parallel>], iteration_bounds = array<i64: 2, 1>, scalar_prefetch = 0 : i64, scratch_operands = 0 : i64, tpu.core_type = #tpu.core_type<tc>, window_params = [{transform_indices = @transform_0, window_bounds = array<i64: 1, 384, 256>}, {pipeline_mode = #tpu.pipeline_mode<synchronous>, transform_indices = @transform_1, window_bounds = array<i64: 32, 384>}, {pipeline_mode = #tpu.pipeline_mode<synchronous>, transform_indices = @transform_2, window_bounds = array<i64: 32, 1>}, {transform_indices = @transform_3, window_bounds = array<i64: 1, 32, 1>}, {transform_indices = @transform_4, window_bounds = array<i64: 1, 32, 256>}, {transform_indices = @transform_5, window_bounds = array<i64: 1, 32, 256>}]} {
    %c0 = arith.constant 0 : index
    %c0_0 = arith.constant 0 : index
    %0 = vector.load %arg3[%c0, %c0_0] : memref<32x384xbf16, #tpu.memory_space<vmem>>, vector<32x384xbf16>
    %c0_1 = arith.constant 0 : index
    %c0_2 = arith.constant 0 : index
    %c0_3 = arith.constant 0 : index
    %1 = vector.load %arg2[%c0_1, %c0_2, %c0_3] : memref<1x384x256xbf16, #tpu.memory_space<vmem>>, vector<1x384x256xbf16>
    %2 = vector.shape_cast %1 : vector<1x384x256xbf16> to vector<384x256xbf16>
    %cst = arith.constant dense<0.000000e+00> : vector<32x256xf32>
    %3 = tpu.matmul %0, %2, %cst {dimension_numbers = #tpu.dot_dimension_numbers<[1], [0], [0], [1], [0, 0, 1, 1], [], []>} : vector<32x384xbf16>, vector<384x256xbf16>, vector<32x256xf32> -> vector<32x256xf32>
    %c0_4 = arith.constant 0 : index
    %c0_5 = arith.constant 0 : index
    %4 = vector.load %arg4[%c0_4, %c0_5] : memref<32x1xf32, #tpu.memory_space<vmem>>, vector<32x1xf32>
    %5 = vector.broadcast %4 : vector<32x1xf32> to vector<32x256xf32>
    %6 = arith.addf %3, %5 : vector<32x256xf32>
    %c0_6 = arith.constant 0 : index
    %c0_7 = arith.constant 0 : index
    %c0_8 = arith.constant 0 : index
    %7 = vector.load %arg6[%c0_6, %c0_7, %c0_8] : memref<1x32x256xf32, #tpu.memory_space<vmem>>, vector<1x32x256xf32>
    %8 = vector.shape_cast %7 : vector<1x32x256xf32> to vector<32x256xf32>
    %9 = arith.addf %6, %8 : vector<32x256xf32>
    %c0_9 = arith.constant 0 : index
    %c0_10 = arith.constant 0 : index
    %c0_11 = arith.constant 0 : index
    %10 = vector.load %arg5[%c0_9, %c0_10, %c0_11] : memref<1x32x1xf32, #tpu.memory_space<vmem>>, vector<1x32x1xf32>
    %11 = vector.shape_cast %10 : vector<1x32x1xf32> to vector<32x1xf32>
    %12 = vector.broadcast %11 : vector<32x1xf32> to vector<32x256xf32>
    %13 = arith.addf %9, %12 : vector<32x256xf32>
    %c0_12 = arith.constant 0 : index
    %c0_13 = arith.constant 0 : index
    %c0_14 = arith.constant 0 : index
    %14 = vector.load %arg7[%c0_12, %c0_13, %c0_14] : memref<1x32x256xf32, #tpu.memory_space<vmem>>, vector<1x32x256xf32>
    %15 = vector.shape_cast %14 : vector<1x32x256xf32> to vector<32x256xf32>
    %16 = vector.shape_cast %13 : vector<32x256xf32> to vector<1x32x256xf32>
    tpu.vector_store %arg7[%c0_12, %c0_13, %c0_14], %16 {strides = array<i32>} : memref<1x32x256xf32, #tpu.memory_space<vmem>>, vector<1x32x256xf32>,
    return
  }
  func.func @transform_0(%arg0: i32, %arg1: i32) -> (i32, i32, i32) {
    %c0_i32 = arith.constant 0 : i32
    %c0_i32_0 = arith.constant 0 : i32
    return %arg0, %c0_i32, %arg1 : i32, i32, i32
  }
  func.func @transform_1(%arg0: i32, %arg1: i32) -> (i32, i32) {
    %c0_i32 = arith.constant 0 : i32
    %c0_i32_0 = arith.constant 0 : i32
    %c0_i32_1 = arith.constant 0 : i32
    return %c0_i32, %c0_i32_0 : i32, i32
  }
  func.func @transform_2(%arg0: i32, %arg1: i32) -> (i32, i32) {
    %c0_i32 = arith.constant 0 : i32
    %c0_i32_0 = arith.constant 0 : i32
    %c0_i32_1 = arith.constant 0 : i32
    return %c0_i32, %c0_i32_0 : i32, i32
  }
  func.func @transform_3(%arg0: i32, %arg1: i32) -> (i32, i32, i32) {
    %c0_i32 = arith.constant 0 : i32
    %c0_i32_0 = arith.constant 0 : i32
    %c0_i32_1 = arith.constant 0 : i32
    return %arg0, %c0_i32, %c0_i32_0 : i32, i32, i32
  }
  func.func @transform_4(%arg0: i32, %arg1: i32) -> (i32, i32, i32) {
    %c0_i32 = arith.constant 0 : i32
    %c0_i32_0 = arith.constant 0 : i32
    return %arg0, %c0_i32, %arg1 : i32, i32, i32
  }
  func.func @transform_5(%arg0: i32, %arg1: i32) -> (i32, i32, i32) {
    %c0_i32 = arith.constant 0 : i32
    %c0_i32_0 = arith.constant 0 : i32
    return %arg0, %c0_i32, %arg1 : i32, i32, i32
  }
}

module attributes {stable_mosaic.version = 11 : i64} {
  func.func @kernel(%arg0: i32, %arg1: i32, %arg2: memref<1x384x256xbf16, #tpu.memory_space<vmem>>, %arg3: memref<32x384xbf16, #tpu.memory_space<vmem>>, %arg4: memref<32x1xf32, #tpu.memory_space<vmem>>, %arg5: memref<1x32x1xf32, #tpu.memory_space<vmem>>, %arg6: memref<1xf32, #tpu.memory_space<smem>>, %arg7: memref<1x32x256xf32, #tpu.memory_space<vmem>>) attributes {dimension_semantics = [#tpu.dimension_semantics<parallel>, #tpu.dimension_semantics<parallel>], iteration_bounds = array<i64: 2, 1>, scalar_prefetch = 0 : i64, scratch_operands = 0 : i64, tpu.core_type = #tpu.core_type<tc>, window_params = [{transform_indices = @transform_0, window_bounds = array<i64: 1, 384, 256>}, {pipeline_mode = #tpu.pipeline_mode<synchronous>, transform_indices = @transform_1, window_bounds = array<i64: 32, 384>}, {pipeline_mode = #tpu.pipeline_mode<synchronous>, transform_indices = @transform_2, window_bounds = array<i64: 32, 1>}, {transform_indices = @transform_3, window_bounds = array<i64: 1, 32, 1>}, {transform_indices = @transform_4, window_bounds = array<i64: 1>}, {transform_indices = @transform_5, window_bounds = array<i64: 1, 32, 256>}]} {
    %c0 = arith.constant 0 : index
    %c0_0 = arith.constant 0 : index
    %0 = vector.load %arg3[%c0, %c0_0] : memref<32x384xbf16, #tpu.memory_space<vmem>>, vector<32x384xbf16>
    %c0_1 = arith.constant 0 : index
    %c0_2 = arith.constant 0 : index
    %c0_3 = arith.constant 0 : index
    %1 = vector.load %arg2[%c0_1, %c0_2, %c0_3] : memref<1x384x256xbf16, #tpu.memory_space<vmem>>, vector<1x384x256xbf16>
    %2 = vector.shape_cast %1 : vector<1x384x256xbf16> to vector<384x256xbf16>
    %cst = arith.constant dense<0.000000e+00> : vector<32x256xf32>
    %3 = tpu.matmul %0, %2, %cst {dimension_numbers = #tpu.dot_dimension_numbers<[1], [0], [0], [1], [0, 0, 1, 1], [], []>} : vector<32x384xbf16>, vector<384x256xbf16>, vector<32x256xf32> -> vector<32x256xf32>
    %c0_4 = arith.constant 0 : index
    %c0_5 = arith.constant 0 : index
    %4 = vector.load %arg4[%c0_4, %c0_5] : memref<32x1xf32, #tpu.memory_space<vmem>>, vector<32x1xf32>
    %5 = vector.broadcast %4 : vector<32x1xf32> to vector<32x256xf32>
    %6 = arith.addf %3, %5 : vector<32x256xf32>
    %c0_6 = arith.constant 0 : index
    %7 = memref.load %arg6[%c0_6] : memref<1xf32, #tpu.memory_space<smem>>
    %cst_7 = arith.constant 0.000000e+00 : f32
    %8 = vector.broadcast %cst_7 : f32 to vector<32x256xf32>
    %9 = arith.cmpf oge, %6, %8 : vector<32x256xf32>
    %10 = vector.broadcast %7 : f32 to vector<32x256xf32>
    %11 = arith.mulf %10, %6 : vector<32x256xf32>
    %12 = arith.select %9, %6, %11 : vector<32x256xi1>, vector<32x256xf32>
    %c0_8 = arith.constant 0 : index
    %c0_9 = arith.constant 0 : index
    %c0_10 = arith.constant 0 : index
    %13 = vector.load %arg5[%c0_8, %c0_9, %c0_10] : memref<1x32x1xf32, #tpu.memory_space<vmem>>, vector<1x32x1xf32>
    %14 = vector.shape_cast %13 : vector<1x32x1xf32> to vector<32x1xf32>
    %15 = vector.broadcast %14 : vector<32x1xf32> to vector<32x256xf32>
    %16 = arith.addf %12, %15 : vector<32x256xf32>
    %c0_11 = arith.constant 0 : index
    %c0_12 = arith.constant 0 : index
    %c0_13 = arith.constant 0 : index
    %17 = vector.load %arg7[%c0_11, %c0_12, %c0_13] : memref<1x32x256xf32, #tpu.memory_space<vmem>>, vector<1x32x256xf32>
    %18 = vector.shape_cast %17 : vector<1x32x256xf32> to vector<32x256xf32>
    %19 = vector.shape_cast %16 : vector<32x256xf32> to vector<1x32x256xf32>
    tpu.vector_store %arg7[%c0_11, %c0_12, %c0_13], %19 {strides = array<i32>} : memref<1x32x256xf32, #tpu.memory_space<vmem>>, vector<1x32x256xf32>,
    return
  }
  func.func @transform_0(%arg0: i32, %arg1: i32) -> (i32, i32, i32) {
    %c0_i32 = arith.constant 0 : i32
    %c0_i32_0 = arith.constant 0 : i32
    return %arg0, %c0_i32, %arg1 : i32, i32, i32
  }
  func.func @transform_1(%arg0: i32, %arg1: i32) -> (i32, i32) {
    %c0_i32 = arith.constant 0 : i32
    %c0_i32_0 = arith.constant 0 : i32
    %c0_i32_1 = arith.constant 0 : i32
    return %c0_i32, %c0_i32_0 : i32, i32
  }
  func.func @transform_2(%arg0: i32, %arg1: i32) -> (i32, i32) {
    %c0_i32 = arith.constant 0 : i32
    %c0_i32_0 = arith.constant 0 : i32
    %c0_i32_1 = arith.constant 0 : i32
    return %c0_i32, %c0_i32_0 : i32, i32
  }
  func.func @transform_3(%arg0: i32, %arg1: i32) -> (i32, i32, i32) {
    %c0_i32 = arith.constant 0 : i32
    %c0_i32_0 = arith.constant 0 : i32
    %c0_i32_1 = arith.constant 0 : i32
    return %arg0, %c0_i32, %c0_i32_0 : i32, i32, i32
  }
  func.func @transform_4(%arg0: i32, %arg1: i32) -> i32 {
    %c0_i32 = arith.constant 0 : i32
    %c0_i32_0 = arith.constant 0 : i32
    return %c0_i32 : i32
  }
  func.func @transform_5(%arg0: i32, %arg1: i32) -> (i32, i32, i32) {
    %c0_i32 = arith.constant 0 : i32
    %c0_i32_0 = arith.constant 0 : i32
    return %arg0, %c0_i32, %arg1 : i32, i32, i32
  }
}

module attributes {stable_mosaic.version = 11 : i64} {
  func.func @kernel(%arg0: i32, %arg1: i32, %arg2: memref<1x128x256xbf16, #tpu.memory_space<vmem>>, %arg3: memref<8x128xbf16, #tpu.memory_space<vmem>>, %arg4: memref<8x1xf32, #tpu.memory_space<vmem>>, %arg5: memref<1x8x1xf32, #tpu.memory_space<vmem>>, %arg6: memref<1xf32, #tpu.memory_space<smem>>, %arg7: memref<1x8x256xf32, #tpu.memory_space<vmem>>) attributes {dimension_semantics = [#tpu.dimension_semantics<parallel>, #tpu.dimension_semantics<parallel>], iteration_bounds = array<i64: 2, 4>, scalar_prefetch = 0 : i64, scratch_operands = 0 : i64, tpu.core_type = #tpu.core_type<tc>, window_params = [{transform_indices = @transform_0, window_bounds = array<i64: 1, 128, 256>}, {pipeline_mode = #tpu.pipeline_mode<synchronous>, transform_indices = @transform_1, window_bounds = array<i64: 8, 128>}, {pipeline_mode = #tpu.pipeline_mode<synchronous>, transform_indices = @transform_2, window_bounds = array<i64: 8, 1>}, {transform_indices = @transform_3, window_bounds = array<i64: 1, 8, 1>}, {transform_indices = @transform_4, window_bounds = array<i64: 1>}, {transform_indices = @transform_5, window_bounds = array<i64: 1, 8, 256>}]} {
    %c0 = arith.constant 0 : index
    %c0_0 = arith.constant 0 : index
    %0 = vector.load %arg3[%c0, %c0_0] : memref<8x128xbf16, #tpu.memory_space<vmem>>, vector<8x128xbf16>
    %c0_1 = arith.constant 0 : index
    %c0_2 = arith.constant 0 : index
    %c0_3 = arith.constant 0 : index
    %1 = vector.load %arg2[%c0_1, %c0_2, %c0_3] : memref<1x128x256xbf16, #tpu.memory_space<vmem>>, vector<1x128x256xbf16>
    %2 = vector.shape_cast %1 : vector<1x128x256xbf16> to vector<128x256xbf16>
    %cst = arith.constant dense<0.000000e+00> : vector<8x256xf32>
    %3 = tpu.matmul %0, %2, %cst {dimension_numbers = #tpu.dot_dimension_numbers<[1], [0], [0], [1], [0, 0, 1, 1], [], []>} : vector<8x128xbf16>, vector<128x256xbf16>, vector<8x256xf32> -> vector<8x256xf32>
    %c0_4 = arith.constant 0 : index
    %c0_5 = arith.constant 0 : index
    %4 = vector.load %arg4[%c0_4, %c0_5] : memref<8x1xf32, #tpu.memory_space<vmem>>, vector<8x1xf32>
    %5 = vector.broadcast %4 : vector<8x1xf32> to vector<8x256xf32>
    %6 = arith.addf %3, %5 : vector<8x256xf32>
    %c0_6 = arith.constant 0 : index
    %7 = memref.load %arg6[%c0_6] : memref<1xf32, #tpu.memory_space<smem>>
    %cst_7 = arith.constant 0.000000e+00 : f32
    %8 = vector.broadcast %cst_7 : f32 to vector<8x256xf32>
    %9 = arith.cmpf oge, %6, %8 : vector<8x256xf32>
    %10 = vector.broadcast %7 : f32 to vector<8x256xf32>
    %11 = arith.mulf %10, %6 : vector<8x256xf32>
    %12 = arith.select %9, %6, %11 : vector<8x256xi1>, vector<8x256xf32>
    %c0_8 = arith.constant 0 : index
    %c0_9 = arith.constant 0 : index
    %c0_10 = arith.constant 0 : index
    %13 = vector.load %arg5[%c0_8, %c0_9, %c0_10] : memref<1x8x1xf32, #tpu.memory_space<vmem>>, vector<1x8x1xf32>
    %14 = vector.shape_cast %13 : vector<1x8x1xf32> to vector<8x1xf32>
    %15 = vector.broadcast %14 : vector<8x1xf32> to vector<8x256xf32>
    %16 = arith.addf %12, %15 : vector<8x256xf32>
    %c0_11 = arith.constant 0 : index
    %c0_12 = arith.constant 0 : index
    %c0_13 = arith.constant 0 : index
    %17 = vector.load %arg7[%c0_11, %c0_12, %c0_13] : memref<1x8x256xf32, #tpu.memory_space<vmem>>, vector<1x8x256xf32>
    %18 = vector.shape_cast %17 : vector<1x8x256xf32> to vector<8x256xf32>
    %19 = vector.shape_cast %16 : vector<8x256xf32> to vector<1x8x256xf32>
    tpu.vector_store %arg7[%c0_11, %c0_12, %c0_13], %19 {strides = array<i32>} : memref<1x8x256xf32, #tpu.memory_space<vmem>>, vector<1x8x256xf32>,
    return
  }
  func.func @transform_0(%arg0: i32, %arg1: i32) -> (i32, i32, i32) {
    %c0_i32 = arith.constant 0 : i32
    %c0_i32_0 = arith.constant 0 : i32
    return %arg0, %c0_i32, %arg1 : i32, i32, i32
  }
  func.func @transform_1(%arg0: i32, %arg1: i32) -> (i32, i32) {
    %c0_i32 = arith.constant 0 : i32
    %c0_i32_0 = arith.constant 0 : i32
    %c0_i32_1 = arith.constant 0 : i32
    return %c0_i32, %c0_i32_0 : i32, i32
  }
  func.func @transform_2(%arg0: i32, %arg1: i32) -> (i32, i32) {
    %c0_i32 = arith.constant 0 : i32
    %c0_i32_0 = arith.constant 0 : i32
    %c0_i32_1 = arith.constant 0 : i32
    return %c0_i32, %c0_i32_0 : i32, i32
  }
  func.func @transform_3(%arg0: i32, %arg1: i32) -> (i32, i32, i32) {
    %c0_i32 = arith.constant 0 : i32
    %c0_i32_0 = arith.constant 0 : i32
    %c0_i32_1 = arith.constant 0 : i32
    return %arg0, %c0_i32, %c0_i32_0 : i32, i32, i32
  }
  func.func @transform_4(%arg0: i32, %arg1: i32) -> i32 {
    %c0_i32 = arith.constant 0 : i32
    %c0_i32_0 = arith.constant 0 : i32
    return %c0_i32 : i32
  }
  func.func @transform_5(%arg0: i32, %arg1: i32) -> (i32, i32, i32) {
    %c0_i32 = arith.constant 0 : i32
    %c0_i32_0 = arith.constant 0 : i32
    return %arg0, %c0_i32, %arg1 : i32, i32, i32
  }
}

module attributes {stable_mosaic.version = 11 : i64} {
  func.func @kernel(%arg0: i32, %arg1: i32, %arg2: memref<1x256x256xbf16, #tpu.memory_space<vmem>>, %arg3: memref<8x256xbf16, #tpu.memory_space<vmem>>, %arg4: memref<8x1xf32, #tpu.memory_space<vmem>>, %arg5: memref<1x8x256xf32, #tpu.memory_space<vmem>>) attributes {dimension_semantics = [#tpu.dimension_semantics<parallel>, #tpu.dimension_semantics<parallel>], iteration_bounds = array<i64: 2, 1>, scalar_prefetch = 0 : i64, scratch_operands = 0 : i64, tpu.core_type = #tpu.core_type<tc>, window_params = [{transform_indices = @transform_0, window_bounds = array<i64: 1, 256, 256>}, {pipeline_mode = #tpu.pipeline_mode<synchronous>, transform_indices = @transform_1, window_bounds = array<i64: 8, 256>}, {pipeline_mode = #tpu.pipeline_mode<synchronous>, transform_indices = @transform_2, window_bounds = array<i64: 8, 1>}, {transform_indices = @transform_3, window_bounds = array<i64: 1, 8, 256>}]} {
    %c0 = arith.constant 0 : index
    %c0_0 = arith.constant 0 : index
    %0 = vector.load %arg3[%c0, %c0_0] : memref<8x256xbf16, #tpu.memory_space<vmem>>, vector<8x256xbf16>
    %c0_1 = arith.constant 0 : index
    %c0_2 = arith.constant 0 : index
    %c0_3 = arith.constant 0 : index
    %1 = vector.load %arg2[%c0_1, %c0_2, %c0_3] : memref<1x256x256xbf16, #tpu.memory_space<vmem>>, vector<1x256x256xbf16>
    %2 = vector.shape_cast %1 : vector<1x256x256xbf16> to vector<256x256xbf16>
    %cst = arith.constant dense<0.000000e+00> : vector<8x256xf32>
    %3 = tpu.matmul %0, %2, %cst {dimension_numbers = #tpu.dot_dimension_numbers<[1], [0], [0], [1], [0, 0, 1, 1], [], []>} : vector<8x256xbf16>, vector<256x256xbf16>, vector<8x256xf32> -> vector<8x256xf32>
    %c0_4 = arith.constant 0 : index
    %c0_5 = arith.constant 0 : index
    %4 = vector.load %arg4[%c0_4, %c0_5] : memref<8x1xf32, #tpu.memory_space<vmem>>, vector<8x1xf32>
    %5 = vector.broadcast %4 : vector<8x1xf32> to vector<8x256xf32>
    %6 = arith.addf %3, %5 : vector<8x256xf32>
    %c0_6 = arith.constant 0 : index
    %c0_7 = arith.constant 0 : index
    %c0_8 = arith.constant 0 : index
    %7 = vector.load %arg5[%c0_6, %c0_7, %c0_8] : memref<1x8x256xf32, #tpu.memory_space<vmem>>, vector<1x8x256xf32>
    %8 = vector.shape_cast %7 : vector<1x8x256xf32> to vector<8x256xf32>
    %9 = vector.shape_cast %6 : vector<8x256xf32> to vector<1x8x256xf32>
    tpu.vector_store %arg5[%c0_6, %c0_7, %c0_8], %9 {strides = array<i32>} : memref<1x8x256xf32, #tpu.memory_space<vmem>>, vector<1x8x256xf32>,
    return
  }
  func.func @transform_0(%arg0: i32, %arg1: i32) -> (i32, i32, i32) {
    %c0_i32 = arith.constant 0 : i32
    %c0_i32_0 = arith.constant 0 : i32
    return %arg0, %c0_i32, %arg1 : i32, i32, i32
  }
  func.func @transform_1(%arg0: i32, %arg1: i32) -> (i32, i32) {
    %c0_i32 = arith.constant 0 : i32
    %c0_i32_0 = arith.constant 0 : i32
    %c0_i32_1 = arith.constant 0 : i32
    return %c0_i32, %c0_i32_0 : i32, i32
  }
  func.func @transform_2(%arg0: i32, %arg1: i32) -> (i32, i32) {
    %c0_i32 = arith.constant 0 : i32
    %c0_i32_0 = arith.constant 0 : i32
    %c0_i32_1 = arith.constant 0 : i32
    return %c0_i32, %c0_i32_0 : i32, i32
  }
  func.func @transform_3(%arg0: i32, %arg1: i32) -> (i32, i32, i32) {
    %c0_i32 = arith.constant 0 : i32
    %c0_i32_0 = arith.constant 0 : i32
    return %arg0, %c0_i32, %arg1 : i32, i32, i32
  }
}

</mosaic_0001>

<bundles_post_ra>
// kernel: forward.6
= control target key start
LH: loop header
LB: loop body
LE: loop exit
PB: predicated region body
PF: predicated region fallthrough
CT: control target
= control target key end

     0   :  { %12 = vsyncpa [#allocation3], 0  ;;  %s2354_s0 = inlined_call_operand.vmem [shape: f32[2,1], index: 0, kind: input, shape index: {}]   ;;  %s2355_s1 = inlined_call_operand.hbm [shape: f32[1,320], index: 1, kind: input, shape index: {}]   ;;  %s2356_s2 = inlined_call_operand.hbm [shape: f32[1,320], index: 2, kind: input, shape index: {}]   ;;  %s2357_s3 = inlined_call_operand.hbm [shape: f32[320,320], index: 3, kind: input, shape index: {}]   ;;  %s2358_s4 = inlined_call_operand.hbm [shape: f32[1,320], index: 4, kind: input, shape index: {}]   ;;  %s2359_s5 = inlined_call_operand.hbm [shape: f32[320,320], index: 5, kind: input, shape index: {}]   ;;  %s2360_s6 = inlined_call_operand.hbm [shape: f32[1,320], index: 6, kind: input, shape index: {}]   ;;  %s2361_s7 = inlined_call_operand.vmem [shape: f32[2,320], index: 7, kind: output, shape index: {}]  }
   0x1   :  { %13 = vsyncpa [#allocation5], 0 }
   0x2   :  { %14 = vsyncpa [#allocation8], 0 }
   0x3   :  { %15 = vsyncpa [#allocation11], 0  ;;  %s1949_s24 = smov [#allocation4]   ;;  %s1950_s26 = smov [#allocation7]  }
   0x4   :  { %s34_s25 = sshll.u32 %s1949_s24, 4  ;;  %s56_s27 = sshll.u32 %s1950_s26, 4  ;;  %s35_s25 = int_to_ptr.vmem [resolvable:$true] %s34_s25  ;;  %s57_s27 = int_to_ptr.vmem [resolvable:$true] %s56_s27 }
   0x5   :  { %s1809_s30 = scalar_lea.hbm %s2356_s2, 48 }
   0x6   :  { %p1810_p0 = scmp.ne.s32.totalorder %s2356_s2, %s1809_s30  ;;  %p1813_p1 = scmp.lt.u32.totalorder %s1809_s30, %s2356_s2 }
   0x8   :  { %p1815_p2 = pnand %p1813_p1, %p1810_p0 }
   0xa   :  { %1818 = shalt.err (!%p1815_p2)
}
   0xb   :  { %s1819_s12 = scalar_lea.vmem %s35_s25, 48  ;;  %s1823_s13 = scalar_lea.vmem %s35_s25, 64 }
   0xc   :  { %p1820_p3 = scmp.ne.s32.totalorder %s35_s25, %s1819_s12  ;;  %p1824_p4 = scmp.lt.s32.totalorder %s35_s25, %s35_s25 }
   0xd   :  { %p1825_p5 = scmp.lt.s32.totalorder %s1823_s13, %s1819_s12 }
   0xf   :  { %p1826_p6 = por %p1825_p5, %p1824_p4 }
  0x11   :  { %p1827_p7 = pnand %p1826_p6, %p1820_p3 }
  0x13   :  { %1830 = shalt.err (!%p1827_p7)
}
  0x14   :  { %37 = dma.hbm_to_vmem [thread:$0]  %s2356_s2, 48, %s35_s25, [#allocation5]  }
  0x15   :  { %s1831_s18 = scalar_lea.hbm %s2358_s4, 48 }
  0x16   :  { %p1832_p8 = scmp.ne.s32.totalorder %s2358_s4, %s1831_s18  ;;  %p1835_p9 = scmp.lt.u32.totalorder %s1831_s18, %s2358_s4 }
  0x18   :  { %p1837_p10 = pnand %p1835_p9, %p1832_p8 }
  0x1a   :  { %1840 = shalt.err (!%p1837_p10)
}
  0x1b   :  { %s1841_s23 = scalar_lea.vmem %s57_s27, 48  ;;  %s1845_s24 = scalar_lea.vmem %s57_s27, 64 }
  0x1c   :  { %p1842_p11 = scmp.ne.s32.totalorder %s57_s27, %s1841_s23  ;;  %p1846_p12 = scmp.lt.s32.totalorder %s57_s27, %s57_s27 }
  0x1d   :  { %p1847_p13 = scmp.lt.s32.totalorder %s1845_s24, %s1841_s23 }
  0x1f   :  { %p1848_p0 = por %p1847_p13, %p1846_p12 }
  0x21   :  { %p1849_p1 = pnand %p1848_p0, %p1842_p11 }
  0x23   :  { %1852 = shalt.err (!%p1849_p1)
}
  0x24   :  { %59 = dma.hbm_to_vmem [thread:$0]  %s2358_s4, 48, %s57_s27, [#allocation8]  }
  0x25   :  { %s1951_s26 = smov [#allocation2]   ;;  %s1952_s29 = smov [#allocation6]  }
  0x26   :  { %s24_s28 = sshll.u32 %s1951_s26, 4  ;;  %s43_s30 = sshll.u32 %s1952_s29, 4  ;;  %s25_s28 = int_to_ptr.vmem [resolvable:$true] %s24_s28  ;;  %s2032_s30 = int_to_ptr.vmem [resolvable:$true] %s43_s30 }
  0x27   :  { %s1853_s10 = scalar_lea.hbm %s2355_s1, 48 }
  0x28   :  { %p1854_p2 = scmp.ne.s32.totalorder %s2355_s1, %s1853_s10  ;;  %p1857_p3 = scmp.lt.u32.totalorder %s1853_s10, %s2355_s1 }
  0x2a   :  { %p1859_p4 = pnand %p1857_p3, %p1854_p2 }
  0x2c   :  { %1862 = shalt.err (!%p1859_p4)
}
  0x2d   :  { %s1863_s4 = scalar_lea.vmem %s25_s28, 48  ;;  %s1867_s27 = scalar_lea.vmem %s25_s28, 64 }
  0x2e   :  { %p1864_p5 = scmp.ne.s32.totalorder %s25_s28, %s1863_s4  ;;  %p1868_p6 = scmp.lt.s32.totalorder %s25_s28, %s25_s28 }
  0x2f   :  { %p1869_p7 = scmp.lt.s32.totalorder %s1867_s27, %s1863_s4 }
  0x31   :  { %p1870_p8 = por %p1869_p7, %p1868_p6 }
  0x33   :  { %p1871_p9 = pnand %p1870_p8, %p1864_p5 }
  0x35   :  { %1874 = shalt.err (!%p1871_p9)
}
  0x36   :  { %27 = dma.hbm_to_vmem [thread:$0]  %s2355_s1, 48, %s25_s28, [#allocation3]  }
  0x37   :  { %s1875_s19 = scalar_lea.hbm %s2357_s3, 15360 }
  0x38   :  { %p1876_p10 = scmp.ne.s32.totalorder %s2357_s3, %s1875_s19  ;;  %p1879_p11 = scmp.lt.u32.totalorder %s1875_s19, %s2357_s3 }
  0x3a   :  { %p1881_p12 = pnand %p1879_p11, %p1876_p10 }
  0x3c   :  { %1884 = shalt.err (!%p1881_p12)
}
  0x3d   :  { %s1885_s24 = scalar_lea.vmem %s2032_s30, 15360  ;;  %p1890_p0 = scmp.lt.s32.totalorder %s2032_s30, %s2032_s30 }
  0x3e   :  { %p1886_p13 = scmp.ne.s32.totalorder %s2032_s30, %s1885_s24  ;;  %p1891_p1 = scmp.lt.s32.totalorder %s1885_s24, %s1885_s24 }
  0x40   :  { %p1892_p2 = por %p1891_p1, %p1890_p0 }
  0x42   :  { %p1893_p3 = pnand %p1892_p2, %p1886_p13 }
  0x44   :  { %1896 = shalt.err (!%p1893_p3)
}
  0x45   :  { %s1953_s1 = smov 384   ;;  %s1954_s2 = smov 24  }
  0x46   :  { %49 = dma.hbm_to_vmem [thread:$0]  %s2357_s3, 15360, %s2032_s30, [#allocation5], %s1953_s1, %s1953_s1, %s1954_s2  }
  0x47   :  { %s1955_s28 = smov [#allocation9]   ;;  %s1956_s8 = smov [#allocation10]  }
  0x48   :  { %s65_s29 = sshll.u32 %s1955_s28, 4  ;;  %s78_s9 = sshll.u32 %s1956_s8, 4  ;;  %s66_s29 = int_to_ptr.vmem [resolvable:$true] %s65_s29  ;;  %s79_s9 = int_to_ptr.vmem [resolvable:$true] %s78_s9 }
  0x49   :  { %s1897_s12 = scalar_lea.hbm %s2359_s5, 15360 }
  0x4a   :  { %p1898_p4 = scmp.ne.s32.totalorder %s2359_s5, %s1897_s12  ;;  %p1901_p5 = scmp.lt.u32.totalorder %s1897_s12, %s2359_s5 }
  0x4c   :  { %p1903_p6 = pnand %p1901_p5, %p1898_p4 }
  0x4e   :  { %1906 = shalt.err (!%p1903_p6)
}
  0x4f   :  { %s1907_s3 = scalar_lea.vmem %s66_s29, 15360  ;;  %p1912_p8 = scmp.lt.s32.totalorder %s66_s29, %s66_s29 }
  0x50   :  { %p1908_p7 = scmp.ne.s32.totalorder %s66_s29, %s1907_s3  ;;  %p1913_p9 = scmp.lt.s32.totalorder %s1907_s3, %s1907_s3 }
  0x52   :  { %p1914_p10 = por %p1913_p9, %p1912_p8 }
  0x54   :  { %p1915_p11 = pnand %p1914_p10, %p1908_p7 }
  0x56   :  { %1918 = shalt.err (!%p1915_p11)
}
  0x57   :  { %71 = dma.hbm_to_vmem [thread:$0]  %s2359_s5, 15360, %s66_s29, [#allocation8], %s1953_s1, %s1953_s1, %s1954_s2  }
  0x58   :  { %s1919_s18 = scalar_lea.hbm %s2360_s6, 48 }
  0x59   :  { %p1920_p12 = scmp.ne.s32.totalorder %s2360_s6, %s1919_s18  ;;  %p1923_p13 = scmp.lt.u32.totalorder %s1919_s18, %s2360_s6 }
  0x5b   :  { %p1925_p0 = pnand %p1923_p13, %p1920_p12 }
  0x5d   :  { %1928 = shalt.err (!%p1925_p0)
}
  0x5e   :  { %s1929_s23 = scalar_lea.vmem %s79_s9, 48  ;;  %s1933_s24 = scalar_lea.vmem %s79_s9, 64 }
  0x5f   :  { %p1930_p1 = scmp.ne.s32.totalorder %s79_s9, %s1929_s23  ;;  %p1934_p2 = scmp.lt.s32.totalorder %s79_s9, %s79_s9 }
  0x60   :  { %p1935_p3 = scmp.lt.s32.totalorder %s1933_s24, %s1929_s23 }
  0x62   :  { %p1936_p4 = por %p1935_p3, %p1934_p2 }
  0x64   :  { %p1937_p5 = pnand %p1936_p4, %p1930_p1 }
  0x66   :  { %1940 = shalt.err (!%p1937_p5)
}
  0x67   :  { %81 = dma.hbm_to_vmem [thread:$0]  %s2360_s6, 48, %s79_s9, [#allocation11]  }
  0x68   :  { %1941 = dma.done.wait [#allocation3], 48  }
  0x69   :  { %1942 = vsyncadd [#allocation3], 4294967248 }
  0x6a   :  { %1943 = dma.done.wait [#allocation5], 15408  }
  0x6b   :  { %1944 = vsyncadd [#allocation5], 4294951888 }
  0x6c   :  { %1945 = dma.done.wait [#allocation8], 15408  }
  0x6d   :  { %1946 = vsyncadd [#allocation8], 4294951888 }
  0x6e   :  { %1947 = dma.done.wait [#allocation11], 48  }
  0x6f   :  { %1948 = vsyncadd [#allocation11], 4294967248  ;;  %v1957_v0 = vmov 0   ;;  %v100_v1 = vld [vmem:[%s2354_s0] sm:$0x3]  ;;  %v456_v2 = vld [vmem:[#allocation6 + $0x8] sm:$0xff] }
  0x70   :  { %1784 = vset.pattern.permute.xlu0 %v1957_v0  ;;  %v459_v3 = vld [vmem:[#allocation6 + $0x20] sm:$0xff]  ;;  %v458_v6 = vld [vmem:[#allocation6 + $0x18] sm:$0xff]  ;;  %v465_v9 = vld [vmem:[#allocation6 + $0x50] sm:$0xff] }
  0x71   :  { %104 = vperm.xlu0 %1784, %v100_v1   ;;  %v1497_v4 = vpack.c.bf16 %v459_v3, %v456_v2  ;;  %v455_v5 = vld [vmem:[#allocation6] sm:$0xff]  ;;  %v462_v8 = vld [vmem:[#allocation6 + $0x38] sm:$0xff]  ;;  %v461_v11 = vld [vmem:[#allocation6 + $0x30] sm:$0xff] }
  0x72   :  { %v1499_v7 = vpack.c.bf16 %v458_v6, %v455_v5  ;;  %v1501_v10 = vpack.c.bf16 %v465_v9, %v462_v8  ;;  %v464_v12 = vld [vmem:[#allocation6 + $0x48] sm:$0xff]  ;;  %v471_v15 = vld [vmem:[#allocation6 + $0x80] sm:$0xff]  ;;  %v470_v18 = vld [vmem:[#allocation6 + $0x78] sm:$0xff] }
  0x73   :  { %1498 = vmatprep.subr.bf16.mxu0 %v1497_v4  ;;  %v1503_v13 = vpack.c.bf16 %v464_v12, %v461_v11  ;;  %v468_v14 = vld [vmem:[#allocation6 + $0x68] sm:$0xff]  ;;  %v467_v17 = vld [vmem:[#allocation6 + $0x60] sm:$0xff]  ;;  %v474_v20 = vld [vmem:[#allocation6 + $0x98] sm:$0xff] }
  0x74   :  { %1500 = vmatpush1.bf16.msra.mxu0 %v1499_v7  ;;  %v1505_v16 = vpack.c.bf16 %v471_v15, %v468_v14  ;;  %v1507_v19 = vpack.c.bf16 %v470_v18, %v467_v17  ;;  %v477_v21 = vld [vmem:[#allocation6 + $0xb0] sm:$0xff]  ;;  %v476_v24 = vld [vmem:[#allocation6 + $0xa8] sm:$0xff]  ;;  %v483_v27 = vld [vmem:[#allocation6 + $0xe0] sm:$0xff] }
  0x75   :  { %1502 = vmatprep.subr.bf16.mxu0 %v1501_v10  ;;  %v1509_v22 = vpack.c.bf16 %v477_v21, %v474_v20  ;;  %v473_v23 = vld [vmem:[#allocation6 + $0x90] sm:$0xff]  ;;  %v480_v26 = vld [vmem:[#allocation6 + $0xc8] sm:$0xff]  ;;  %v479_v29 = vld [vmem:[#allocation6 + $0xc0] sm:$0xff] }
  0x76   :  { %v1511_v25 = vpack.c.bf16 %v476_v24, %v473_v23  ;;  %v1513_v28 = vpack.c.bf16 %v483_v27, %v480_v26  ;;  %v482_v30 = vld [vmem:[#allocation6 + $0xd8] sm:$0xff]  ;;  %v489_v33 = vld [vmem:[#allocation6 + $0x110] sm:$0xff]  ;;  %v488_v36 = vld [vmem:[#allocation6 + $0x108] sm:$0xff] }
  0x77   :  { %v1515_v31 = vpack.c.bf16 %v482_v30, %v479_v29  ;;  %v486_v32 = vld [vmem:[#allocation6 + $0xf8] sm:$0xff]  ;;  %v485_v35 = vld [vmem:[#allocation6 + $0xf0] sm:$0xff]  ;;  %v492_v38 = vld [vmem:[#allocation6 + $0x128] sm:$0xff] }
  0x78   :  { %1504 = vmatpush1.bf16.msra.mxu0 %v1503_v13  ;;  %v1517_v34 = vpack.c.bf16 %v489_v33, %v486_v32  ;;  %v1519_v37 = vpack.c.bf16 %v488_v36, %v485_v35  ;;  %v495_v39 = vld [vmem:[#allocation6 + $0x140] sm:$0xff]  ;;  %v494_v42 = vld [vmem:[#allocation6 + $0x138] sm:$0xff]  ;;  %v501_v45 = vld [vmem:[#allocation6 + $0x170] sm:$0xff] }
  0x79   :  { %1506 = vmatprep.subr.bf16.mxu0 %v1505_v16  ;;  %v1521_v40 = vpack.c.bf16 %v495_v39, %v492_v38  ;;  %v491_v41 = vld [vmem:[#allocation6 + $0x120] sm:$0xff]  ;;  %v498_v44 = vld [vmem:[#allocation6 + $0x158] sm:$0xff]  ;;  %v497_v47 = vld [vmem:[#allocation6 + $0x150] sm:$0xff] }
  0x7a   :  { %v1523_v43 = vpack.c.bf16 %v494_v42, %v491_v41  ;;  %v1525_v46 = vpack.c.bf16 %v501_v45, %v498_v44  ;;  %v500_v48 = vld [vmem:[#allocation6 + $0x168] sm:$0xff]  ;;  %v507_v51 = vld [vmem:[#allocation6 + $0x1a0] sm:$0xff]  ;;  %v505_v52 = vld [vmem:[#allocation6 + $0x190] sm:$0xff] }
  0x7b   :  { %v1527_v49 = vpack.c.bf16 %v500_v48, %v497_v47  ;;  %v504_v50 = vld [vmem:[#allocation6 + $0x188] sm:$0xff]  ;;  %v503_v55 = vld [vmem:[#allocation6 + $0x180] sm:$0xff]  ;;  %v506_v56 = vld [vmem:[#allocation6 + $0x198] sm:$0xff] }
  0x7c   :  { %1508 = vmatpush1.bf16.msra.mxu0 %v1507_v19  ;;  %v1529_v53 = vpack.c.bf16 %v507_v51, %v504_v50  ;;  %v508_v54 = vld [vmem:[#allocation6 + $0x1a8] sm:$0xff]  ;;  %v1531_v58 = vpack.c.bf16 %v506_v56, %v503_v55  ;;  %v457_v59 = vld [vmem:[#allocation6 + $0x10] sm:$0xff]  ;;  %v510_v62 = vld [vmem:[#allocation6 + $0x1b8] sm:$0xff] }
  0x7d   :  { %1510 = vmatprep.subr.bf16.mxu0 %v1509_v22  ;;  %v1577_v57 = vpack.c.bf16 %v508_v54, %v505_v52  ;;  %v460_v60 = vld [vmem:[#allocation6 + $0x28] sm:$0xff]  ;;  %v513_v63 = vld [vmem:[#allocation6 + $0x1d0] sm:$0xff]  ;;  %v511_v0 = vld [vmem:[#allocation6 + $0x1c0] sm:$0xff] }
  0x7e   :  { %v1579_v61 = vpack.c.bf16 %v460_v60, %v457_v59  ;;  %v1533_v1 = vpack.c.bf16 %v513_v63, %v510_v62  ;;  %v514_v2 = vld [vmem:[#allocation6 + $0x1d8] sm:$0xff]  ;;  %v509_v3 = vld [vmem:[#allocation6 + $0x1b0] sm:$0xff]  ;;  %v512_v4 = vld [vmem:[#allocation6 + $0x1c8] sm:$0xff] }
  0x7f   :  { %1578 = vmatprep.subr.bf16.mxu1 %v1577_v57  ;;  %v1581_v5 = vpack.c.bf16 %v514_v2, %v511_v0  ;;  %v1535_v6 = vpack.c.bf16 %v512_v4, %v509_v3  ;;  %v463_v7 = vld [vmem:[#allocation6 + $0x40] sm:$0xff]  ;;  %v466_v8 = vld [vmem:[#allocation6 + $0x58] sm:$0xff]  ;;  %v516_v10 = vld [vmem:[#allocation6 + $0x1e8] sm:$0xff] }
  0x80   :  { %1512 = vmatpush1.bf16.msra.mxu0 %v1511_v25  ;;  %1580 = vmatpush3.bf16.msra.mxu1 %v1579_v61  ;;  %v1583_v9 = vpack.c.bf16 %v466_v8, %v463_v7  ;;  %v519_v11 = vld [vmem:[#allocation6 + $0x200] sm:$0xff]  ;;  %v517_v12 = vld [vmem:[#allocation6 + $0x1f0] sm:$0xff]  ;;  %v520_v14 = vld [vmem:[#allocation6 + $0x208] sm:$0xff] }
  0x81   :  { %1514 = vmatprep.subr.bf16.mxu0 %v1513_v28  ;;  %1582 = vmatprep.subr.bf16.mxu1 %v1581_v5  ;;  %v1537_v13 = vpack.c.bf16 %v519_v11, %v516_v10  ;;  %v515_v15 = vld [vmem:[#allocation6 + $0x1e0] sm:$0xff]  ;;  %v518_v16 = vld [vmem:[#allocation6 + $0x1f8] sm:$0xff]  ;;  %v1585_v17 = vpack.c.bf16 %v520_v14, %v517_v12  ;;  %v469_v19 = vld [vmem:[#allocation6 + $0x70] sm:$0xff] }
  0x82   :  { %v1539_v18 = vpack.c.bf16 %v518_v16, %v515_v15  ;;  %v472_v20 = vld [vmem:[#allocation6 + $0x88] sm:$0xff]  ;;  %v522_v22 = vld [vmem:[#allocation6 + $0x218] sm:$0xff]  ;;  %v525_v23 = vld [vmem:[#allocation6 + $0x230] sm:$0xff] }
  0x83   :  { %v1587_v21 = vpack.c.bf16 %v472_v20, %v469_v19  ;;  %v523_v24 = vld [vmem:[#allocation6 + $0x220] sm:$0xff]  ;;  %v1541_v25 = vpack.c.bf16 %v525_v23, %v522_v22  ;;  %v526_v26 = vld [vmem:[#allocation6 + $0x238] sm:$0xff]  ;;  %v521_v27 = vld [vmem:[#allocation6 + $0x210] sm:$0xff]  ;;  %v108_v22 = vlaneseq }
  0x84   :  { %1516 = vmatpush1.bf16.msra.mxu0 %v1515_v31  ;;  %1584 = vmatpush3.bf16.msra.mxu1 %v1583_v9  ;;  %v524_v28 = vld [vmem:[#allocation6 + $0x228] sm:$0xff]  ;;  %v1589_v29 = vpack.c.bf16 %v526_v26, %v523_v24  ;;  %v475_v31 = vld [vmem:[#allocation6 + $0xa0] sm:$0xff]  ;;  %v478_v32 = vld [vmem:[#allocation6 + $0xb8] sm:$0xff] }
  0x85   :  { %1518 = vmatprep.subr.bf16.mxu0 %v1517_v34  ;;  %1586 = vmatprep.subr.bf16.mxu1 %v1585_v17  ;;  %v1543_v30 = vpack.c.bf16 %v524_v28, %v521_v27  ;;  %v1591_v33 = vpack.c.bf16 %v478_v32, %v475_v31  ;;  %v528_v34 = vld [vmem:[#allocation6 + $0x248] sm:$0xff]  ;;  %v531_v35 = vld [vmem:[#allocation6 + $0x260] sm:$0xff]  ;;  %v529_v36 = vld [vmem:[#allocation6 + $0x250] sm:$0xff]  ;;  %v2091_v23 = vshrl.u32 %v108_v22, 7 }
  0x86   :  { %v532_v38 = vld [vmem:[#allocation6 + $0x268] sm:$0xff]  ;;  %v527_v39 = vld [vmem:[#allocation6 + $0x240] sm:$0xff]  ;;  %v534_v45 = vld [vmem:[#allocation6 + $0x278] sm:$0xff] }
  0x87   :  { %v1593_v41 = vpack.c.bf16 %v532_v38, %v529_v36  ;;  %v484_v44 = vld [vmem:[#allocation6 + $0xe8] sm:$0xff]  ;;  %v537_v47 = vld [vmem:[#allocation6 + $0x290] sm:$0xff]  ;;  %v535_v48 = vld [vmem:[#allocation6 + $0x280] sm:$0xff]  ;;  %v2094_v24 = vsub.s32 0, %v2091_v23  ;;  %v2100_v26 = vsub.s32 2, %v2091_v23 }
  0x88   :  { %1520 = vmatpush1.bf16.msra.mxu0 %v1519_v37  ;;  %1588 = vmatpush3.bf16.msra.mxu1 %v1587_v21  ;;  %v1545_v37 = vpack.c.bf16 %v531_v35, %v528_v34  ;;  %v1549_v50 = vpack.c.bf16 %v537_v47, %v534_v45  ;;  %v533_v52 = vld [vmem:[#allocation6 + $0x270] sm:$0xff]  ;;  %v487_v54 = vld [vmem:[#allocation6 + $0x100] sm:$0xff]  ;;  %v490_v56 = vld [vmem:[#allocation6 + $0x118] sm:$0xff]  ;;  %v1958_v21 = vmov 0.0|0.0  }
  0x89   :  { %1522 = vmatprep.subr.bf16.mxu0 %v1521_v40  ;;  %1590 = vmatprep.subr.bf16.mxu1 %v1589_v29  ;;  %v530_v40 = vld [vmem:[#allocation6 + $0x258] sm:$0xff]  ;;  %v540_v57 = vld [vmem:[#allocation6 + $0x2a8] sm:$0xff]  ;;  %v1599_v59 = vpack.c.bf16 %v490_v56, %v487_v54  ;;  %v541_v61 = vld [vmem:[#allocation6 + $0x2b0] sm:$0xff] }
  0x8a   :  { %v1547_v42 = vpack.c.bf16 %v530_v40, %v527_v39  ;;  %v544_v62 = vld [vmem:[#allocation6 + $0x2c8] sm:$0xff]  ;;  %v539_v63 = vld [vmem:[#allocation6 + $0x2a0] sm:$0xff]  ;;  %v493_v2 = vld [vmem:[#allocation6 + $0x130] sm:$0xff] }
  0x8b   :  { %v1601_v0 = vpack.c.bf16 %v544_v62, %v541_v61  ;;  %v496_v3 = vld [vmem:[#allocation6 + $0x148] sm:$0xff]  ;;  %v546_v4 = vld [vmem:[#allocation6 + $0x2d8] sm:$0xff]  ;;  %v549_v5 = vld [vmem:[#allocation6 + $0x2f0] sm:$0xff] }
  0x8c   :  { %1524 = vmatpush1.bf16.msra.mxu0 %v1523_v43  ;;  %1592 = vmatpush3.bf16.msra.mxu1 %v1591_v33  ;;  %v481_v43 = vld [vmem:[#allocation6 + $0xd0] sm:$0xff]  ;;  %v550_v8 = vld [vmem:[#allocation6 + $0x2f8] sm:$0xff]  ;;  %v1603_v9 = vpack.c.bf16 %v496_v3, %v493_v2  ;;  %v1557_v10 = vpack.c.bf16 %v549_v5, %v546_v4  ;;  %v548_v12 = vld [vmem:[#allocation6 + $0x2e8] sm:$0xff] }
  0x8d   :  { %1526 = vmatprep.subr.bf16.mxu0 %v1525_v46  ;;  %v1595_v46 = vpack.c.bf16 %v484_v44, %v481_v43  ;;  %1594 = vmatprep.subr.bf16.mxu1 %v1593_v41  ;;  %v545_v11 = vld [vmem:[#allocation6 + $0x2d0] sm:$0xff]  ;;  %v499_v14 = vld [vmem:[#allocation6 + $0x160] sm:$0xff]  ;;  %v502_v15 = vld [vmem:[#allocation6 + $0x178] sm:$0xff] }
  0x8e   :  { %v1559_v16 = vpack.c.bf16 %v548_v12, %v545_v11  ;;  %v1607_v17 = vpack.c.bf16 %v502_v15, %v499_v14  ;;  %v555_v19 = vld [vmem:[#allocation6 + $0x320] sm:$0xff]  ;;  %v101_v27 = vld [vmem:[#allocation2] sm:$0x7]  ;;  %v126_v28 = vld [vmem:[#allocation4] sm:$0x7] }
  0x8f   :  { %v111_v29 = vrot.slane %v101_v27, %v2094_v24  ;;  %v119_v31 = vrot.slane %v101_v27, %v2100_v26  ;;  %v131_v32 = vrot.slane %v126_v28, %v2094_v24  ;;  %v139_v34 = vrot.slane %v126_v28, %v2100_v26 }
  0x90   :  { %1528 = vmatpush1.bf16.msra.mxu0 %v1527_v49  ;;  %v538_v49 = vld [vmem:[#allocation6 + $0x298] sm:$0xff]  ;;  %1596 = vmatpush3.bf16.msra.mxu1 %v1595_v46  ;;  %v1960_v11 = vmov 2475754826   ;;  %v1961_v15 = vmov 2131351028  }
  0x91   :  { %1530 = vmatprep.subr.bf16.mxu0 %v1529_v53  ;;  %v1597_v51 = vpack.c.bf16 %v538_v49, %v535_v48  ;;  %v536_v53 = vld [vmem:[#allocation6 + $0x288] sm:$0xff] }
  0x92   :  { %v1551_v55 = vpack.c.bf16 %v536_v53, %v533_v52 }
  0x93   :  { %1598 = vmatprep.subr.bf16.mxu1 %v1597_v51 }
  0x94   :  { %1532 = vmatpush1.bf16.msra.mxu0 %v1531_v58  ;;  %v543_v58 = vld [vmem:[#allocation6 + $0x2c0] sm:$0xff]  ;;  %1600 = vmatpush3.bf16.msra.mxu1 %v1599_v59 }
  0x95   :  { %1534 = vmatprep.subr.bf16.mxu0 %v1533_v1  ;;  %v1553_v60 = vpack.c.bf16 %v543_v58, %v540_v57  ;;  %v542_v1 = vld [vmem:[#allocation6 + $0x2b8] sm:$0xff]  ;;  %1602 = vmatprep.subr.bf16.mxu1 %v1601_v0 }
  0x96   :  { %v1555_v7 = vpack.c.bf16 %v542_v1, %v539_v63 }
  0x98   :  { %1536 = vmatpush1.bf16.msra.mxu0 %v1535_v6  ;;  %v547_v6 = vld [vmem:[#allocation6 + $0x2e0] sm:$0xff]  ;;  %1604 = vmatpush3.bf16.msra.mxu1 %v1603_v9  ;;  %v1959_v9 = vmov 683565275  }
  0x99   :  { %1538 = vmatprep.subr.bf16.mxu0 %v1537_v13  ;;  %v1605_v13 = vpack.c.bf16 %v550_v8, %v547_v6 }
  0x9b   :  { %1606 = vmatprep.subr.bf16.mxu1 %v1605_v13 }
  0x9c   :  { %1540 = vmatpush1.bf16.msra.mxu0 %v1539_v18  ;;  %1608 = vmatpush3.bf16.msra.mxu1 %v1607_v17  ;;  %v552_v18 = vld [vmem:[#allocation6 + $0x308] sm:$0xff]  ;;  %v1962_v17 = vmov 2102212464  }
  0x9d   :  { %1542 = vmatprep.subr.bf16.mxu0 %v1541_v25  ;;  %v1561_v20 = vpack.c.bf16 %v555_v19, %v552_v18  ;;  %1609 = vmatprep.subr.bf16.mxu1 %v1958_v21  ;;  %v2097_v25 = vsub.s32 1, %v2091_v23 }
  0x9f   :  { %v135_v33 = vrot.slane %v126_v28, %v2097_v25 }
  0xa0   :  { %1544 = vmatpush1.bf16.msra.mxu0 %v1543_v30  ;;  %v115_v30 = vrot.slane %v101_v27, %v2097_v25  ;;  %v1963_v27 = vmov 920167782  }
  0xa1   :  { %1546 = vmatprep.subr.bf16.mxu0 %v1545_v37 }
  0xa4   :  { %1548 = vmatpush1.bf16.msra.mxu0 %v1547_v42 }
  0xa5   :  { %1550 = vmatprep.subr.bf16.mxu0 %v1549_v50 }
  0xa8   :  { %1552 = vmatpush1.bf16.msra.mxu0 %v1551_v55 }
  0xa9   :  { %1554 = vmatprep.subr.bf16.mxu0 %v1553_v60 }
  0xac   :  { %1556 = vmatpush1.bf16.msra.mxu0 %v1555_v7 }
  0xad   :  { %1558 = vmatprep.subr.bf16.mxu0 %v1557_v10 }
  0xb0   :  { %1560 = vmatpush1.bf16.msra.mxu0 %v1559_v16 }
  0xb1   :  { %1562 = vmatprep.subr.bf16.mxu0 %v1561_v20 }
  0xf0   :  { %v105_v35 = vpop.permute.xlu0 %104 }
  0xf1   :  { %v123_v36 = vmul.f32 %v111_v29, %v105_v35  ;;  %v124_v37 = vmul.f32 %v115_v30, %v105_v35  ;;  %v125_v38 = vmul.f32 %v119_v31, %v105_v35 }
  0xf3   :  { %v2108_v39 = vadd.f32 %v131_v32, %v123_v36  ;;  %v2110_v40 = vadd.f32 %v135_v33, %v124_v37  ;;  %v2112_v41 = vadd.f32 %v139_v34, %v125_v38  ;;  %v1964_v34 = vmov 1326507024  }
  0xf5   :  { %v149_v42 = vand.u32 2139095040, %v2108_v39  ;;  %v252_v43 = vand.u32 2139095040, %v2110_v40  ;;  %v352_v44 = vand.u32 2147483647, %v2112_v41  ;;  %v355_v45 = vand.u32 2139095040, %v2112_v41 }
  0xf6   :  { %v249_v46 = vand.u32 2147483647, %v2110_v40  ;;  %v146_v59 = vand.u32 2147483647, %v2108_v39 }
  0xf7   :  { %v150_v47 = vshrl.u32 %v149_v42, 23  ;;  %v253_v48 = vshrl.u32 %v252_v43, 23  ;;  %v356_v49 = vshrl.u32 %v355_v45, 23  ;;  %v359_v50 = vand.u32 8388607, %v352_v44 }
  0xf8   :  { %v256_v53 = vand.u32 8388607, %v249_v46  ;;  %v2130_v2 = vand.u32 8388607, %v146_v59 }
  0xf9   :  { %v1355_v51 = vadd.s32 4294967169, %v150_v47  ;;  %v1359_v52 = vadd.s32 4294967169, %v253_v48  ;;  %v1363_v54 = vadd.s32 4294967169, %v356_v49  ;;  %v360_v57 = vor.u32 8388608, %v359_v50 }
  0xfa   :  { %v257_v60 = vor.u32 8388608, %v256_v53 }
  0xfb   :  { %v156_v55 = vadd.s32 1, %v1355_v51  ;;  %v259_v56 = vadd.s32 1, %v1359_v52  ;;  %v362_v58 = vadd.s32 1, %v1363_v54  ;;  %v2126_v1 = vshll.u32 %v360_v57, 8 }
  0xfc   :  { %v2135_v6 = vshll.u32 %v257_v60, 8 }
  0xfd   :  { %vm157_vm0 = vcmp.gt.s32.totalorder %v156_v55, 0  ;;  %vm260_vm1 = vcmp.gt.s32.totalorder %v259_v56, 0  ;;  %vm363_vm2 = vcmp.gt.s32.totalorder %v362_v58, 0 }
  0xfe   :  { %v2124_v61 = vsel %vm157_vm0, %v156_v55, 0  ;;  %v261_v62 = vsel %vm260_vm1, %v259_v56, 0  ;;  %v364_v0 = vsel %vm363_vm2, %v362_v58, 0 }
  0xff   :  { %v263_v63 = vand.u32 31, %v261_v62  ;;  %v2133_v3 = vand.u32 31, %v2124_v61  ;;  %v365_v4 = vshrl.u32 %v364_v0, 5  ;;  %v366_v5 = vand.u32 31, %v364_v0 }
 0x100   :  { %v2137_v7 = vshrl.u32 %v261_v62, 5 }
 0x101   :  { %v264_v8 = vsub.s32 32, %v263_v63  ;;  %v266_v10 = vshll.u32 %v1959_v9, %v263_v63  ;;  %v269_v12 = vshll.u32 %v1960_v11, %v263_v63  ;;  %v367_v13 = vsub.s32 32, %v366_v5 }
 0x102   :  { %v369_v14 = vshll.u32 %v1959_v9, %v366_v5  ;;  %v272_v16 = vshll.u32 %v1961_v15, %v263_v63  ;;  %v275_v18 = vshll.u32 %v1962_v17, %v263_v63  ;;  %v372_v19 = vshll.u32 %v1960_v11, %v366_v5 }
 0x103   :  { %v375_v20 = vshll.u32 %v1961_v15, %v366_v5  ;;  %v378_v22 = vshll.u32 %v1962_v17, %v366_v5  ;;  %v381_v28 = vshll.u32 %v1963_v27, %v366_v5  ;;  %v370_v29 = vshrl.u32 %v1960_v11, %v367_v13 }
 0x104   :  { %v373_v30 = vshrl.u32 %v1961_v15, %v367_v13  ;;  %v376_v31 = vshrl.u32 %v1962_v17, %v367_v13  ;;  %vm384_vm3 = vcmp.lt.s32.totalorder %v365_v4, 1  ;;  %v368_v32 = vshrl.u32 %v1959_v9, %v367_v13 }
 0x105   :  { %v379_v33 = vshrl.u32 %v1963_v27, %v367_v13  ;;  %v382_v35 = vshrl.u32 %v1964_v34, %v367_v13  ;;  %vm386_vm4 = vcmp.lt.s32.totalorder %v365_v4, 3  ;;  %v371_v36 = vor.u32 %v370_v29, %v369_v14 }
 0x106   :  { %v374_v37 = vor.u32 %v373_v30, %v372_v19  ;;  %v377_v38 = vor.u32 %v376_v31, %v375_v20  ;;  %vm387_vm5 = vcmp.lt.s32.totalorder %v365_v4, 4  ;;  %v267_v45 = vshrl.u32 %v1960_v11, %v264_v8 }
 0x107   :  { %v380_v42 = vor.u32 %v379_v33, %v378_v22  ;;  %v383_v43 = vor.u32 %v382_v35, %v381_v28  ;;  %v270_v47 = vshrl.u32 %v1961_v15, %v264_v8  ;;  %v388_v48 = vsel %vm384_vm3, %v368_v32, %v371_v36 }
 0x108   :  { %v389_v49 = vsel %vm387_vm5, %v377_v38, 2102212464  ;;  %v392_v50 = vsel %vm384_vm3, %v371_v36, %v374_v37  ;;  %v396_v51 = vsel %vm384_vm3, %v374_v37, %v377_v38  ;;  %vm385_vm6 = vcmp.lt.s32.totalorder %v365_v4, 2 }
 0x109   :  { %v390_v52 = vsel %vm386_vm4, %v374_v37, %v389_v49  ;;  %v393_v53 = vsel %vm387_vm5, %v380_v42, 920167782  ;;  %v397_v54 = vsel %vm387_vm5, %v383_v43, 1326507024  ;;  %v268_v58 = vor.u32 %v267_v45, %v266_v10 }
 0x10a   :  { %v391_v55 = vsel %vm385_vm6, %v388_v48, %v390_v52  ;;  %v394_v56 = vsel %vm386_vm4, %v377_v38, %v393_v53  ;;  %v398_v57 = vsel %vm386_vm4, %v380_v42, %v397_v54  ;;  %v271_v0 = vor.u32 %v270_v47, %v269_v12 }
 0x10b   :  { %v395_v60 = vsel %vm385_vm6, %v392_v50, %v394_v56  ;;  %v399_v62 = vsel %vm385_vm6, %v396_v51, %v398_v57  ;;  %v273_v5 = vshrl.u32 %v1962_v17, %v264_v8  ;;  %v276_v28 = vshrl.u32 %v1963_v27, %v264_v8 }
 0x10c   :  { %v2164_v13 = vmul.u32.u64.low %v2126_v1, %v399_v62  ;;  %v2165_v14 = vmul.u32.u64.high %v2126_v1, %v399_v62, %v2164_v13  ;;  %v2168_v19 = vmul.u32.u64.low %v2126_v1, %v395_v60  ;;  %v2169_v20 = vmul.u32.u64.high %v2126_v1, %v395_v60, %v2168_v19 }
 0x10d   :  { %v274_v22 = vor.u32 %v273_v5, %v272_v16  ;;  %v278_v4 = vshll.u32 %v1963_v27, %v263_v63  ;;  %v279_v10 = vshrl.u32 %v1964_v34, %v264_v8  ;;  %v2176_v12 = vsub.s32 32, %v2133_v3 }
 0x10e   :  { %v407_v29 = vmul.u32 %v2126_v1, %v391_v55  ;;  %v265_v30 = vshrl.u32 %v1959_v9, %v264_v8  ;;  %vm284_vm7 = vcmp.lt.s32.totalorder %v2137_v7, 4  ;;  %v277_v31 = vor.u32 %v276_v28, %v275_v18 }
 0x10f   :  { %v280_v32 = vor.u32 %v279_v10, %v278_v4  ;;  %vm281_vm8 = vcmp.lt.s32.totalorder %v2137_v7, 1  ;;  %v286_v16 = vsel %vm284_vm7, %v274_v22, 2102212464  ;;  %vm409_vm9 = vc.u32 %v2165_v14, %v2168_v19 }
 0x110   :  { %v410_v63 = vadd.s32 1, %v2169_v20  ;;  %vm283_vm10 = vcmp.lt.s32.totalorder %v2137_v7, 3  ;;  %v285_v33 = vsel %vm281_vm8, %v265_v30, %v268_v58  ;;  %v289_v35 = vsel %vm281_vm8, %v268_v58, %v271_v0 }
 0x111   :  { %v287_v1 = vsel %vm283_vm10, %v271_v0, %v286_v16  ;;  %v290_v8 = vsel %vm284_vm7, %v277_v31, 920167782  ;;  %v293_v18 = vsel %vm281_vm8, %v271_v0, %v274_v22  ;;  %vm282_vm11 = vcmp.lt.s32.totalorder %v2137_v7, 2 }
 0x112   :  { %v411_v36 = vsel %vm409_vm9, %v410_v63, %v2169_v20  ;;  %v291_v37 = vsel %vm283_vm10, %v274_v22, %v290_v8  ;;  %v294_v38 = vsel %vm284_vm7, %v280_v32, 1326507024  ;;  %v154_v47 = vor.u32 8388608, %v2130_v2 }
 0x113   :  { %v412_v42 = vadd.s32 %v411_v36, %v407_v29  ;;  %v292_v43 = vsel %vm282_vm11, %v289_v35, %v291_v37  ;;  %v295_v45 = vsel %vm283_vm10, %v277_v31, %v294_v38  ;;  %v288_v48 = vsel %vm282_vm11, %v285_v33, %v287_v1 }
 0x114   :  { %v296_v49 = vsel %vm282_vm11, %v293_v18, %v295_v45  ;;  %v2196_v50 = vmul.u32.u64.low %v2135_v6, %v292_v43  ;;  %v2197_v51 = vmul.u32.u64.high %v2135_v6, %v292_v43, %v2196_v50  ;;  %v164_v7 = vshrl.u32 %v1960_v11, %v2176_v12 }
 0x115   :  { %v413_v52 = vadd.s32 536870912, %v412_v42  ;;  %v2201_v53 = vmul.u32.u64.low %v2135_v6, %v296_v49  ;;  %v2202_v54 = vmul.u32.u64.high %v2135_v6, %v296_v49, %v2201_v53  ;;  %v163_v55 = vshll.u32 %v1959_v9, %v2133_v3 }
 0x116   :  { %v166_v2 = vshll.u32 %v1960_v11, %v2133_v3  ;;  %v167_v56 = vshrl.u32 %v1961_v15, %v2176_v12  ;;  %v170_v57 = vshrl.u32 %v1962_v17, %v2176_v12  ;;  %v159_v58 = vshrl.u32 %v2124_v61, 5 }
 0x117   :  { %v2215_v60 = vshrl.u32 %v413_v52, 30  ;;  %v172_v62 = vshll.u32 %v1962_v17, %v2133_v3  ;;  %v173_v0 = vshrl.u32 %v1963_v27, %v2176_v12  ;;  %v307_v5 = vadd.s32 1, %v2197_v51 }
 0x118   :  { %v165_v13 = vor.u32 %v164_v7, %v163_v55  ;;  %v168_v11 = vor.u32 %v167_v56, %v166_v2  ;;  %v169_v20 = vshll.u32 %v1961_v15, %v2133_v3  ;;  %v304_v28 = vmul.u32 %v2135_v6, %v288_v48 }
 0x119   :  { %v415_v22 = vshll.u32 %v2215_v60, 30  ;;  %vm306_vm12 = vc.u32 %v2202_v54, %v2196_v50  ;;  %v174_v61 = vor.u32 %v173_v0, %v172_v62  ;;  %v175_v10 = vshll.u32 %v1963_v27, %v2133_v3 }
 0x11a   :  { %v308_v17 = vsel %vm306_vm12, %v307_v5, %v2197_v51  ;;  %v171_v4 = vor.u32 %v170_v57, %v169_v20  ;;  %v176_v29 = vshrl.u32 %v1964_v34, %v2176_v12  ;;  %vm178_vm13 = vcmp.lt.s32.totalorder %v159_v58, 1 }
 0x11b   :  { %v2233_v30 = vsub.s32 %v412_v42, %v415_v22  ;;  %v309_v15 = vadd.s32 %v308_v17, %v304_v28  ;;  %v194_v31 = vshll.u32 %v154_v47, 8  ;;  %vm179_vm14 = vcmp.lt.s32.totalorder %v159_v58, 2 }
 0x11c   :  { %v177_v32 = vor.u32 %v176_v29, %v175_v10  ;;  %vm181_vm15 = vcmp.lt.s32.totalorder %v159_v58, 4  ;;  %v186_v6 = vsel %vm178_vm13, %v165_v13, %v168_v11  ;;  %vm180_vm0 = vcmp.lt.s32.totalorder %v159_v58, 3 }
 0x11d   :  { %v418_v16 = vsub.s32 0, %v2233_v30  ;;  %v310_v63 = vadd.s32 536870912, %v309_v15  ;;  %v187_v33 = vsel %vm181_vm15, %v174_v61, 920167782  ;;  %v183_v1 = vsel %vm181_vm15, %v171_v4, 2102212464 }
 0x11e   :  { %v188_v3 = vsel %vm180_vm0, %v171_v4, %v187_v33  ;;  %v190_v27 = vsel %vm178_vm13, %v168_v11, %v171_v4  ;;  %v191_v34 = vsel %vm181_vm15, %v177_v32, 1326507024  ;;  %v162_v8 = vshrl.u32 %v1959_v9, %v2176_v12 }
 0x11f   :  { %v2238_v35 = vshrl.u32 %v310_v63, 30  ;;  %v189_v18 = vsel %vm179_vm14, %v186_v6, %v188_v3  ;;  %v192_v36 = vsel %vm180_vm0, %v174_v61, %v191_v34  ;;  %v1364_v43 = vmin.u32 %v418_v16, %v2233_v30 }
 0x120   :  { %v193_v37 = vsel %vm179_vm14, %v190_v27, %v192_v36  ;;  %v2244_v38 = vmul.u32.u64.low %v194_v31, %v189_v18  ;;  %v2245_v42 = vmul.u32.u64.high %v194_v31, %v189_v18, %v2244_v38  ;;  %v182_v47 = vsel %vm178_vm13, %v162_v8, %v165_v13 }
 0x121   :  { %v312_v45 = vshll.u32 %v2238_v35, 30  ;;  %v184_v48 = vsel %vm180_vm0, %v168_v11, %v183_v1  ;;  %v2250_v49 = vmul.u32.u64.low %v194_v31, %v193_v37  ;;  %v2251_v51 = vmul.u32.u64.high %v194_v31, %v193_v37, %v2250_v49 }
 0x122   :  { %v185_v9 = vsel %vm179_vm14, %v182_v47, %v184_v48  ;;  %v204_v12 = vadd.s32 1, %v2245_v42  ;;  %v420_v53 = vclz %v1364_v43  ;;  %v305_v20 = vadd.s32 %v2196_v50, %v2202_v54 }
 0x123   :  { %v313_v52 = vsub.s32 %v309_v15, %v312_v45  ;;  %vm203_vm1 = vc.u32 %v2251_v51, %v2244_v38  ;;  %v201_v2 = vmul.u32 %v194_v31, %v185_v9  ;;  %v408_v37 = vadd.s32 %v2168_v19, %v2165_v14 }
 0x124   :  { %v205_v56 = vsel %vm203_vm1, %v204_v12, %v2245_v42  ;;  %v1365_v57 = vadd.s32 4294967294, %v420_v53  ;;  %vm2266_vm4 = vcmp.le.f32.partialorder %v249_v46, 0.7853982  ;;  %vm251_vm5 = vcmp.lt.s32.totalorder %v2110_v40, 0  ;;  %v558_v42 = vld [vmem:[#allocation6 + $0x338] sm:$0xff] }
 0x125   :  { %v315_v7 = vsub.s32 0, %v313_v52  ;;  %v206_v0 = vadd.s32 %v205_v56, %v201_v2  ;;  %v335_v45 = vsub.s32 4, %v2238_v35  ;;  %v202_v47 = vadd.s32 %v2244_v38, %v2251_v51 }
 0x126   :  { %vm1366_vm2 = vcmp.lt.s32.totalorder %v1365_v57, 0  ;;  %vm148_vm7 = vcmp.lt.s32.totalorder %v2108_v39, 0  ;;  %vm2287_vm10 = vcmp.le.f32.partialorder %v146_v59, 0.7853982  ;;  %vm341_vm12 = vweird.f32 %v2110_v40 }
 0x127   :  { %v1360_v55 = vmin.u32 %v315_v7, %v313_v52  ;;  %v207_v13 = vadd.s32 536870912, %v206_v0  ;;  %v423_v61 = vsel %vm1366_vm2, 0, %v1365_v57  ;;  %v336_v38 = vsel %vm251_vm5, %v335_v45, %v2238_v35 }
 0x128   :  { %v428_v31 = vsub.s32 4294967266, %v423_v61  ;;  %v424_v54 = vsub.s32 32, %v423_v61  ;;  %v338_v57 = vsel %vm2266_vm4, 0, %v336_v38  ;;  %vm354_vm13 = vcmp.lt.s32.totalorder %v2112_v41, 0  ;;  %v564_v38 = vld [vmem:[#allocation6 + $0x368] sm:$0xff] }
 0x129   :  { %v317_v62 = vclz %v1360_v55  ;;  %v2257_v11 = vshrl.u32 %v207_v13, 30  ;;  %v342_v13 = vand.u32 3, %v338_v57  ;;  %vm2306_vm14 = vcmp.le.f32.partialorder %v352_v44, 0.7853982  ;;  %v556_v44 = vld [vmem:[#allocation6 + $0x328] sm:$0xff] }
 0x12a   :  { %v429_v1 = vadd.s32 127, %v428_v31  ;;  %v426_v49 = vshrl.u32 %v408_v37, %v424_v54  ;;  %vm238_vm2 = vweird.f32 %v2108_v39 }
 0x12b   :  { %v1361_v5 = vadd.s32 4294967294, %v317_v62  ;;  %v209_v17 = vshll.u32 %v2257_v11, 30  ;;  %vm344_vm8 = vcmp.eq.s32.totalorder %v342_v13, 0  ;;  %vm347_vm9 = vcmp.eq.s32.totalorder %v342_v13, 2 }
 0x12c   :  { %v430_v18 = vshll.u32 %v429_v1, 23  ;;  %v232_v31 = vsub.s32 4, %v2257_v11  ;;  %vm343_vm11 = vcmp.lt.s32.totalorder %v342_v13, 2  ;;  %v570_v13 = vld [vmem:[#allocation6 + $0x398] sm:$0xff] }
 0x12d   :  { %vm1362_vm3 = vcmp.lt.s32.totalorder %v1361_v5, 0  ;;  %v210_v15 = vsub.s32 %v206_v0, %v209_v17 }
 0x12e   :  { %v320_v58 = vsel %vm1362_vm3, 0, %v1361_v5  ;;  %v431_v9 = vor.u32 4788187, %v430_v18  ;;  %v553_v18 = vld [vmem:[#allocation6 + $0x310] sm:$0xff]  ;;  %vm1966_vm3 = vmmov 0  }
 0x12f   :  { %v321_v22 = vsub.s32 32, %v320_v58  ;;  %v325_v28 = vsub.s32 4294967266, %v320_v58  ;;  %v322_v4 = vshll.u32 %v313_v52, %v320_v58  ;;  %v212_v16 = vsub.s32 0, %v210_v15 }
 0x130   :  { %v425_v52 = vshll.u32 %v2233_v30, %v423_v61  ;;  %v432_v56 = vand.u32 2147483647, %v431_v9  ;;  %v559_v9 = vld [vmem:[#allocation6 + $0x340] sm:$0xff] }
 0x131   :  { %v323_v10 = vshrl.u32 %v305_v20, %v321_v22  ;;  %v326_v29 = vadd.s32 127, %v325_v28  ;;  %v1356_v33 = vmin.u32 %v212_v16, %v210_v15 }
 0x132   :  { %v427_v51 = vor.u32 %v426_v49, %v425_v52  ;;  %v1610_v49 = vpack.c.bf16 %v556_v44, %v553_v18  ;;  %v560_v52 = vld [vmem:[#allocation6 + $0x348] sm:$0xff] }
 0x133   :  { %v324_v32 = vor.u32 %v323_v10, %v322_v4  ;;  %v327_v6 = vshll.u32 %v326_v29, 23  ;;  %v214_v34 = vclz %v1356_v33  ;;  %v233_v33 = vsel %vm148_vm7, %v232_v31, %v2257_v11  ;;  %v574_v31 = vld [vmem:[#allocation6 + $0x3b8] sm:$0xff]  ;;  %v908_v18 = vld [vmem:[#allocation9 + $0x48] sm:$0xff] }
 0x134   :  { %v434_v0 = vcvt.s32.f32 %v427_v51  ;;  %v567_v51 = vld [vmem:[#allocation6 + $0x380] sm:$0xff] }
 0x135   :  { %v328_v63 = vor.u32 4788187, %v327_v6  ;;  %v331_v27 = vcvt.s32.f32 %v324_v32  ;;  %v1357_v8 = vadd.s32 4294967294, %v214_v34 }
 0x136   :  { %v435_v58 = vmul.f32 %v434_v0, %v432_v56  ;;  %v1569_v0 = vpack.c.bf16 %v567_v51, %v564_v38  ;;  %v926_v38 = vld [vmem:[#allocation9 + $0xd8] sm:$0xff] }
 0x137   :  { %v329_v3 = vand.u32 2147483647, %v328_v63  ;;  %vm1358_vm6 = vcmp.lt.s32.totalorder %v1357_v8, 0 }
 0x138   :  { %v217_v48 = vsel %vm1358_vm6, 0, %v1357_v8  ;;  %v436_v10 = vxor.u32 2147483648, %v435_v58  ;;  %v554_v8 = vld [vmem:[#allocation6 + $0x318] sm:$0xff] }
 0x139   :  { %v332_v50 = vmul.f32 %v331_v27, %v329_v3  ;;  %v218_v46 = vsub.s32 32, %v217_v48  ;;  %v222_v19 = vsub.s32 4294967266, %v217_v48  ;;  %v219_v12 = vshll.u32 %v210_v15, %v217_v48 }
 0x13a   :  { %v437_v63 = vsel %vm354_vm13, %v436_v10, %v435_v58  ;;  %v573_v58 = vld [vmem:[#allocation6 + $0x3b0] sm:$0xff] }
 0x13b   :  { %v333_v36 = vxor.u32 2147483648, %v332_v50  ;;  %v220_v53 = vshrl.u32 %v202_v47, %v218_v46  ;;  %v223_v7 = vadd.s32 127, %v222_v19  ;;  %v440_v3 = vsel %vm2306_vm14, %v2112_v41, %v437_v63 }
 0x13d   :  { %v334_v43 = vsel %vm251_vm5, %v333_v36, %v332_v50  ;;  %v221_v55 = vor.u32 %v220_v53, %v219_v12  ;;  %v224_v2 = vshll.u32 %v223_v7, 23  ;;  %v551_v50 = vld [vmem:[#allocation6 + $0x300] sm:$0xff]  ;;  %v438_v36 = vsub.s32 4, %v2215_v60  ;;  %v562_v12 = vld [vmem:[#allocation6 + $0x358] sm:$0xff] }
 0x13e   :  { %v337_v14 = vsel %vm2266_vm4, %v2110_v40, %v334_v43  ;;  %v235_v40 = vsel %vm2287_vm10, 0, %v233_v33  ;;  %v561_v43 = vld [vmem:[#allocation6 + $0x350] sm:$0xff]  ;;  %v1563_v48 = vpack.c.bf16 %v554_v8, %v551_v50  ;;  %v1613_v56 = vpack.c.bf16 %v562_v12, %v559_v9  ;;  %v927_v12 = vld [vmem:[#allocation9 + $0xe0] sm:$0xff] }
 0x13f   :  { %1785 = vcosq.f32 %v337_v14  ;;  %v225_v62 = vor.u32 4788187, %v224_v2  ;;  %v228_v5 = vcvt.s32.f32 %v221_v55  ;;  %v239_v27 = vand.u32 3, %v235_v40  ;;  %v899_v40 = vld [vmem:[#allocation9] sm:$0xff]  ;;  %v905_v8 = vld [vmem:[#allocation9 + $0x30] sm:$0xff]  ;;  %v924_v9 = vld [vmem:[#allocation9 + $0xc8] sm:$0xff] }
 0x140   :  { %1787 = vsinq.f32 %v337_v14  ;;  %v557_v14 = vld [vmem:[#allocation6 + $0x330] sm:$0xff]  ;;  %v1565_v19 = vpack.c.bf16 %v561_v43, %v558_v42  ;;  %v439_v53 = vsel %vm354_vm13, %v438_v36, %v2215_v60  ;;  %v566_v60 = vld [vmem:[#allocation6 + $0x378] sm:$0xff]  ;;  %v1627_v42 = vpack.c.bf16 %v908_v18, %v905_v8 }
 0x141   :  { %v226_v30 = vand.u32 2147483647, %v225_v62  ;;  %vm244_vm15 = vcmp.eq.s32.totalorder %v239_v27, 2  ;;  %vm241_vm0 = vcmp.eq.s32.totalorder %v239_v27, 0  ;;  %vm240_vm1 = vcmp.lt.s32.totalorder %v239_v27, 2  ;;  %v906_v27 = vld [vmem:[#allocation9 + $0x38] sm:$0xff] }
 0x142   :  { %v1567_v2 = vpack.c.bf16 %v560_v52, %v557_v14  ;;  %v441_v57 = vsel %vm2306_vm14, 0, %v439_v53  ;;  %v912_v36 = vld [vmem:[#allocation9 + $0x68] sm:$0xff]  ;;  %v1637_v53 = vpack.c.bf16 %v927_v12, %v924_v9 }
 0x143   :  { %v229_v20 = vmul.f32 %v228_v5, %v226_v30  ;;  %v565_v30 = vld [vmem:[#allocation6 + $0x370] sm:$0xff]  ;;  %v568_v5 = vld [vmem:[#allocation6 + $0x388] sm:$0xff] }
 0x144   :  { %v956_v8 = vld [vmem:[#allocation9 + $0x1c8] sm:$0xff] }
 0x145   :  { %v230_v35 = vxor.u32 2147483648, %v229_v20  ;;  %v916_v9 = vld [vmem:[#allocation9 + $0x88] sm:$0xff] }
 0x147   :  { %v231_v15 = vsel %vm148_vm7, %v230_v35, %v229_v20  ;;  %v1965_v20 = vmov 0.0   ;;  %v569_v35 = vld [vmem:[#allocation6 + $0x390] sm:$0xff]  ;;  %vm592_vm7 = vcmask 523264  }
 0x148   :  { %v234_v6 = vsel %vm2287_vm10, %v2108_v39, %v231_v15  ;;  %v563_v39 = vld [vmem:[#allocation6 + $0x360] sm:$0xff]  ;;  %vm1342_vm10 = vcmask 1043458  }
 0x149   :  { %v1786_v22 = vpop.eup %1785  ;;  %1789 = vcosq.f32 %v234_v6  ;;  %v571_v15 = vld [vmem:[#allocation6 + $0x3a0] sm:$0xff] }
 0x14a   :  { %v1788_v28 = vpop.eup %1787  ;;  %v348_v61 = vxor.u32 2147483648, %v1786_v22  ;;  %1791 = vsinq.f32 %v234_v6  ;;  %v903_v6 = vld [vmem:[#allocation9 + $0x20] sm:$0xff] }
 0x14b   :  { %v345_v17 = vxor.u32 2147483648, %v1788_v28  ;;  %1793 = vcosq.f32 %v440_v3 }
 0x14c   :  { %v349_v29 = vsel %vm347_vm9, %v348_v61, %v1788_v28  ;;  %1795 = vsinq.f32 %v440_v3  ;;  %v1571_v28 = vpack.c.bf16 %v566_v60, %v563_v39  ;;  %v1616_v61 = vpack.c.bf16 %v568_v5, %v565_v30  ;;  %v902_v3 = vld [vmem:[#allocation9 + $0x18] sm:$0xff]  ;;  %v935_v5 = vld [vmem:[#allocation9 + $0x120] sm:$0xff] }
 0x14d   :  { %v346_v32 = vsel %vm344_vm8, %v1786_v22, %v345_v17  ;;  %v445_v22 = vand.u32 3, %v441_v57  ;;  %v572_v17 = vld [vmem:[#allocation6 + $0x3a8] sm:$0xff]  ;;  %vm444_vm8 = vweird.f32 %v2112_v41  ;;  %vm1341_vm9 = vcmask 1041408  }
 0x14e   :  { %v350_v16 = vsel %vm343_vm11, %v346_v32, %v349_v29  ;;  %v1573_v29 = vpack.c.bf16 %v573_v58, %v570_v13  ;;  %v900_v32 = vld [vmem:[#allocation9 + $0x8] sm:$0xff]  ;;  %v938_v13 = vld [vmem:[#allocation9 + $0x138] sm:$0xff]  ;;  %vm1343_vm11 = vmor %vm1342_vm10, %vm1341_vm9 }
 0x14f   :  { %v351_v59 = vsel %vm341_vm12, nan, %v350_v16  ;;  %v1575_v16 = vpack.c.bf16 %v572_v17, %v569_v35  ;;  %vm447_vm4 = vcmp.eq.s32.totalorder %v445_v22, 0  ;;  %vm450_vm5 = vcmp.eq.s32.totalorder %v445_v22, 2  ;;  %v932_v57 = vld [vmem:[#allocation9 + $0x108] sm:$0xff]  ;;  %v942_v58 = vld [vmem:[#allocation9 + $0x158] sm:$0xff]  ;;  %v941_v35 = vld [vmem:[#allocation9 + $0x150] sm:$0xff] }
 0x150   :  { %660 = vmatprep.mubr.f32.mxu0 %v351_v59  ;;  %802 = vmatprep.mubr.f32.mxu1 %v351_v59  ;;  %v1619_v59 = vpack.c.bf16 %v574_v31, %v571_v15  ;;  %v1621_v1 = vpack.c.bf16 %v903_v6, %v900_v32  ;;  %vm446_vm6 = vcmp.lt.s32.totalorder %v445_v22, 2  ;;  %v945_v22 = vld [vmem:[#allocation9 + $0x170] sm:$0xff]  ;;  %v944_v17 = vld [vmem:[#allocation9 + $0x168] sm:$0xff]  ;;  %v947_v6 = vld [vmem:[#allocation9 + $0x180] sm:$0xff]  ;;  %vm1344_vm12 = vcmask 521220  }
 0x151   :  { %v949_v15 = vld [vmem:[#allocation9 + $0x190] sm:$0xff]  ;;  %v952_v32 = vld [vmem:[#allocation9 + $0x1a8] sm:$0xff]  ;;  %vm1345_vm13 = vmor %vm1344_vm12, %vm1343_vm11 }
 0x153   :  { %v1790_v34 = vpop.eup %1789 }
 0x154   :  { %v1792_v54 = vpop.eup %1791  ;;  %v245_v11 = vxor.u32 2147483648, %v1790_v34 }
 0x155   :  { %v242_v37 = vxor.u32 2147483648, %v1792_v54  ;;  %v1794_v55 = vpop.eup %1793 }
 0x156   :  { %v246_v45 = vsel %vm244_vm15, %v245_v11, %v1792_v54  ;;  %v1796_v62 = vpop.eup %1795  ;;  %v451_v10 = vxor.u32 2147483648, %v1794_v55  ;;  %v1623_v54 = vpack.c.bf16 %v902_v3, %v899_v40  ;;  %v954_v3 = vld [vmem:[#allocation9 + $0x1b8] sm:$0xff] }
 0x157   :  { %v243_v47 = vsel %vm241_vm0, %v1790_v34, %v242_v37  ;;  %v448_v4 = vxor.u32 2147483648, %v1796_v62  ;;  %v909_v34 = vld [vmem:[#allocation9 + $0x50] sm:$0xff]  ;;  %v915_v37 = vld [vmem:[#allocation9 + $0x80] sm:$0xff] }
 0x158   :  { %v247_v46 = vsel %vm240_vm1, %v243_v47, %v246_v45  ;;  %v452_v33 = vsel %vm450_vm5, %v451_v10, %v1796_v62  ;;  %v1625_v11 = vpack.c.bf16 %v909_v34, %v906_v27  ;;  %v1629_v43 = vpack.c.bf16 %v915_v37, %v912_v36  ;;  %v911_v45 = vld [vmem:[#allocation9 + $0x60] sm:$0xff]  ;;  %v914_v47 = vld [vmem:[#allocation9 + $0x78] sm:$0xff]  ;;  %v936_v62 = vld [vmem:[#allocation9 + $0x128] sm:$0xff] }
 0x159   :  { %v248_v7 = vsel %vm238_vm2, nan, %v247_v46  ;;  %v449_v63 = vsel %vm447_vm4, %v1794_v55, %v448_v4  ;;  %v1631_v41 = vpack.c.bf16 %v914_v47, %v911_v45  ;;  %v917_v46 = vld [vmem:[#allocation9 + $0x90] sm:$0xff]  ;;  %v930_v55 = vld [vmem:[#allocation9 + $0xf8] sm:$0xff]  ;;  %v1651_v4 = vpack.c.bf16 %v944_v17, %v941_v35  ;;  %v948_v10 = vld [vmem:[#allocation9 + $0x188] sm:$0xff] }
 0x15a   :  { %661 = vmatmul.mubr.f32.vlgmr.msra.gmra.mrb[0].mxu0 %v248_v7  ;;  %803 = vmatmul.mubr.f32.vlgmr.msra.gmra.mrb[0].mxu1 %v248_v7  ;;  %v453_v50 = vsel %vm446_vm6, %v449_v63, %v452_v33  ;;  %v923_v7 = vld [vmem:[#allocation9 + $0xc0] sm:$0xff]  ;;  %v901_v33 = vld [vmem:[#allocation9 + $0x10] sm:$0xff]  ;;  %v910_v37 = vld [vmem:[#allocation9 + $0x58] sm:$0xff] }
 0x15b   :  { %1564 = vmatpush1.bf16.msra.mxu0 %v1563_v48  ;;  %1611 = vmatpush3.bf16.msra.mxu1 %v1610_v49  ;;  %v454_v44 = vsel %vm444_vm8, nan, %v453_v50  ;;  %v918_v48 = vld [vmem:[#allocation9 + $0x98] sm:$0xff]  ;;  %v921_v49 = vld [vmem:[#allocation9 + $0xb0] sm:$0xff]  ;;  %v1639_v51 = vpack.c.bf16 %v926_v38, %v923_v7  ;;  %v955_v34 = vld [vmem:[#allocation9 + $0x1c0] sm:$0xff] }
 0x15c   :  { %1566 = vmatprep.subr.bf16.mxu0 %v1565_v19  ;;  %1612 = vmatprep.subr.bf16.mxu1 %v1958_v21  ;;  %v1633_v14 = vpack.c.bf16 %v921_v49, %v918_v48  ;;  %v920_v19 = vld [vmem:[#allocation9 + $0xa8] sm:$0xff]  ;;  %v957_v27 = vld [vmem:[#allocation9 + $0x1d0] sm:$0xff]  ;;  %v907_v36 = vld [vmem:[#allocation9 + $0x40] sm:$0xff] }
 0x15d   :  { %731 = vmatprep.mubr.f32.mxu0 %v1965_v20  ;;  %1475 = vmatprep.mubr.msk.f32.mxu1 %vm1966_vm3, %v1965_v20  ;;  %v1635_v52 = vpack.c.bf16 %v920_v19, %v917_v46  ;;  %v1657_v50 = vpack.c.bf16 %v957_v27, %v954_v3  ;;  %v963_v45 = vld [vmem:[#allocation9 + $0x200] sm:$0xff]  ;;  %v961_v47 = vld [vmem:[#allocation9 + $0x1f0] sm:$0xff]  ;;  %v964_v49 = vld [vmem:[#allocation9 + $0x208] sm:$0xff] }
 0x15e   :  { %v1709_v46 = vpack.c.bf16 %v964_v49, %v961_v47  ;;  %v969_v7 = vld [vmem:[#allocation9 + $0x230] sm:$0xff]  ;;  %v967_v38 = vld [vmem:[#allocation9 + $0x220] sm:$0xff]  ;;  %v934_v3 = vld [vmem:[#allocation9 + $0x118] sm:$0xff] }
 0x15f   :  { %1568 = vmatpush1.bf16.msra.mxu0 %v1567_v2  ;;  %1614 = vmatpush3.bf16.msra.mxu1 %v1613_v56  ;;  %v933_v2 = vld [vmem:[#allocation9 + $0x110] sm:$0xff]  ;;  %v990_v47 = vld [vmem:[#allocation9 + $0x2d8] sm:$0xff]  ;;  %v991_v49 = vld [vmem:[#allocation9 + $0x2e0] sm:$0xff] }
 0x160   :  { %1570 = vmatprep.subr.bf16.mxu0 %v1569_v0  ;;  %1615 = vmatprep.subr.bf16.mxu1 %v1958_v21  ;;  %v929_v56 = vld [vmem:[#allocation9 + $0xf0] sm:$0xff]  ;;  %v1641_v39 = vpack.c.bf16 %v933_v2, %v930_v55  ;;  %v939_v0 = vld [vmem:[#allocation9 + $0x140] sm:$0xff]  ;;  %v970_v55 = vld [vmem:[#allocation9 + $0x238] sm:$0xff] }
 0x161   :  { %v1643_v60 = vpack.c.bf16 %v932_v57, %v929_v56  ;;  %v1645_v30 = vpack.c.bf16 %v939_v0, %v936_v62  ;;  %v965_v2 = vld [vmem:[#allocation9 + $0x210] sm:$0xff]  ;;  %v968_v56 = vld [vmem:[#allocation9 + $0x228] sm:$0xff]  ;;  %v919_v62 = vld [vmem:[#allocation9 + $0xa0] sm:$0xff] }
 0x162   :  { %v1667_v57 = vpack.c.bf16 %v968_v56, %v965_v2  ;;  %v922_v0 = vld [vmem:[#allocation9 + $0xb8] sm:$0xff] }
 0x163   :  { %1572 = vmatpush1.bf16.msra.mxu0 %v1571_v28  ;;  %1617 = vmatpush3.bf16.msra.mxu1 %v1616_v61  ;;  %v1647_v28 = vpack.c.bf16 %v938_v13, %v935_v5  ;;  %v1649_v61 = vpack.c.bf16 %v945_v22, %v942_v58  ;;  %v975_v5 = vld [vmem:[#allocation9 + $0x260] sm:$0xff]  ;;  %v973_v13 = vld [vmem:[#allocation9 + $0x250] sm:$0xff]  ;;  %v976_v22 = vld [vmem:[#allocation9 + $0x268] sm:$0xff] }
 0x164   :  { %1574 = vmatprep.subr.bf16.mxu0 %v1573_v29  ;;  %1618 = vmatprep.subr.bf16.mxu1 %v1958_v21  ;;  %v951_v29 = vld [vmem:[#allocation9 + $0x1a0] sm:$0xff]  ;;  %v1717_v35 = vpack.c.bf16 %v976_v22, %v973_v13 }
 0x165   :  { %v1653_v31 = vpack.c.bf16 %v951_v29, %v948_v10  ;;  %v928_v10 = vld [vmem:[#allocation9 + $0xe8] sm:$0xff] }
 0x167   :  { %1576 = vmatpush1.bf16.msra.mxu0 %v1575_v16  ;;  %1620 = vmatpush3.bf16.msra.mxu1 %v1619_v59  ;;  %v950_v16 = vld [vmem:[#allocation9 + $0x198] sm:$0xff]  ;;  %v1701_v59 = vpack.c.bf16 %v952_v32, %v949_v15  ;;  %v979_v32 = vld [vmem:[#allocation9 + $0x280] sm:$0xff] }
 0x168   :  { %1622 = vmatprep.subr.bf16.mxu1 %v1621_v1  ;;  %v1655_v63 = vpack.c.bf16 %v950_v16, %v947_v6  ;;  %v904_v1 = vld [vmem:[#allocation9 + $0x28] sm:$0xff]  ;;  %v978_v15 = vld [vmem:[#allocation9 + $0x278] sm:$0xff] }
 0x169   :  { %v1703_v40 = vpack.c.bf16 %v904_v1, %v901_v33  ;;  %1702 = vmatprep.subr.bf16.mxu0 %v1701_v59  ;;  %v982_v16 = vld [vmem:[#allocation9 + $0x298] sm:$0xff]  ;;  %v977_v59 = vld [vmem:[#allocation9 + $0x270] sm:$0xff] }
 0x16a   :  { %1367 = vmatmul.mubr.msk.f32.vlgmr.msra.gmra.mrb[0].mxu0 %vm592_vm7, %v454_v44  ;;  %1476 = vmatmul.mubr.msk.f32.vlgmr.msra.gmra.mrb[2].mxu1 %vm592_vm7, %v454_v44  ;;  %v1721_v33 = vpack.c.bf16 %v982_v16, %v979_v32 }
 0x16b   :  { %1624 = vmatpush1.bf16.msra.mxu1 %v1623_v54  ;;  %1704 = vmatpush3.bf16.msra.mxu0 %v1703_v40  ;;  %v958_v54 = vld [vmem:[#allocation9 + $0x1d8] sm:$0xff]  ;;  %v931_v40 = vld [vmem:[#allocation9 + $0x100] sm:$0xff] }
 0x16c   :  { %1626 = vmatprep.subr.bf16.mxu1 %v1625_v11  ;;  %v953_v11 = vld [vmem:[#allocation9 + $0x1b0] sm:$0xff]  ;;  %v1705_v18 = vpack.c.bf16 %v958_v54, %v955_v34  ;;  %v1723_v27 = vpack.c.bf16 %v934_v3, %v931_v40  ;;  %v984_v34 = vld [vmem:[#allocation9 + $0x2a8] sm:$0xff] }
 0x16d   :  { %v1659_v44 = vpack.c.bf16 %v956_v8, %v953_v11  ;;  %v985_v54 = vld [vmem:[#allocation9 + $0x2b0] sm:$0xff]  ;;  %v988_v8 = vld [vmem:[#allocation9 + $0x2c8] sm:$0xff] }
 0x16e   :  { %1706 = vmatprep.subr.bf16.mxu0 %v1705_v18  ;;  %v983_v18 = vld [vmem:[#allocation9 + $0x2a0] sm:$0xff]  ;;  %v997_v40 = vld [vmem:[#allocation9 + $0x310] sm:$0xff]  ;;  %v1000_v3 = vld [vmem:[#allocation9 + $0x328] sm:$0xff] }
 0x16f   :  { %1628 = vmatpush1.bf16.msra.mxu1 %v1627_v42  ;;  %v1707_v42 = vpack.c.bf16 %v910_v37, %v907_v36  ;;  %v1725_v36 = vpack.c.bf16 %v988_v8, %v985_v54 }
 0x170   :  { %1630 = vmatprep.subr.bf16.mxu1 %v1629_v43  ;;  %v960_v43 = vld [vmem:[#allocation9 + $0x1e8] sm:$0xff] }
 0x171   :  { %1708 = vmatpush3.bf16.msra.mxu0 %v1707_v42  ;;  %v1661_v48 = vpack.c.bf16 %v963_v45, %v960_v43  ;;  %v937_v42 = vld [vmem:[#allocation9 + $0x130] sm:$0xff]  ;;  %v940_v43 = vld [vmem:[#allocation9 + $0x148] sm:$0xff] }
 0x172   :  { %1710 = vmatprep.subr.bf16.mxu0 %v1709_v46  ;;  %v1727_v45 = vpack.c.bf16 %v940_v43, %v937_v42  ;;  %v989_v46 = vld [vmem:[#allocation9 + $0x2d0] sm:$0xff]  ;;  %v1004_v43 = vld [vmem:[#allocation9 + $0x348] sm:$0xff] }
 0x173   :  { %1632 = vmatpush1.bf16.msra.mxu1 %v1631_v41  ;;  %v959_v41 = vld [vmem:[#allocation9 + $0x1e0] sm:$0xff] }
 0x174   :  { %1634 = vmatprep.subr.bf16.mxu1 %v1633_v14  ;;  %v962_v14 = vld [vmem:[#allocation9 + $0x1f8] sm:$0xff] }
 0x175   :  { %v1663_v19 = vpack.c.bf16 %v962_v14, %v959_v41  ;;  %v994_v14 = vld [vmem:[#allocation9 + $0x2f8] sm:$0xff] }
 0x177   :  { %1636 = vmatpush1.bf16.msra.mxu1 %v1635_v52  ;;  %v913_v52 = vld [vmem:[#allocation9 + $0x70] sm:$0xff] }
 0x178   :  { %1638 = vmatprep.subr.bf16.mxu1 %v1637_v53  ;;  %v1711_v12 = vpack.c.bf16 %v916_v9, %v913_v52  ;;  %v966_v53 = vld [vmem:[#allocation9 + $0x218] sm:$0xff]  ;;  %v1729_v52 = vpack.c.bf16 %v994_v14, %v991_v49  ;;  %v1011_v49 = vld [vmem:[#allocation9 + $0x380] sm:$0xff] }
 0x17a   :  { %1712 = vmatpush3.bf16.msra.mxu0 %v1711_v12  ;;  %v943_v12 = vld [vmem:[#allocation9 + $0x160] sm:$0xff] }
 0x17b   :  { %1640 = vmatpush1.bf16.msra.mxu1 %v1639_v51  ;;  %v1665_v51 = vpack.c.bf16 %v969_v7, %v966_v53  ;;  %v946_v53 = vld [vmem:[#allocation9 + $0x178] sm:$0xff] }
 0x17c   :  { %1642 = vmatprep.subr.bf16.mxu1 %v1641_v39  ;;  %v1713_v39 = vpack.c.bf16 %v970_v55, %v967_v38  ;;  %v1731_v7 = vpack.c.bf16 %v946_v53, %v943_v12  ;;  %v996_v38 = vld [vmem:[#allocation9 + $0x308] sm:$0xff]  ;;  %v1014_v53 = vld [vmem:[#allocation9 + $0x398] sm:$0xff] }
 0x17d   :  { %v1012_v12 = vld [vmem:[#allocation9 + $0x388] sm:$0xff] }
 0x17e   :  { %1714 = vmatprep.subr.bf16.mxu0 %v1713_v39 }
 0x17f   :  { %1644 = vmatpush1.bf16.msra.mxu1 %v1643_v60  ;;  %v1715_v60 = vpack.c.bf16 %v922_v0, %v919_v62 }
 0x180   :  { %1646 = vmatprep.subr.bf16.mxu1 %v1645_v30  ;;  %v972_v30 = vld [vmem:[#allocation9 + $0x248] sm:$0xff] }
 0x181   :  { %1716 = vmatpush3.bf16.msra.mxu0 %v1715_v60  ;;  %v1669_v58 = vpack.c.bf16 %v975_v5, %v972_v30 }
 0x182   :  { %1718 = vmatprep.subr.bf16.mxu0 %v1717_v35 }
 0x183   :  { %1648 = vmatpush1.bf16.msra.mxu1 %v1647_v28  ;;  %v971_v28 = vld [vmem:[#allocation9 + $0x240] sm:$0xff] }
 0x184   :  { %1650 = vmatprep.subr.bf16.mxu1 %v1649_v61  ;;  %v974_v61 = vld [vmem:[#allocation9 + $0x258] sm:$0xff] }
 0x185   :  { %v1671_v17 = vpack.c.bf16 %v974_v61, %v971_v28 }
 0x187   :  { %1652 = vmatpush1.bf16.msra.mxu1 %v1651_v4  ;;  %v925_v4 = vld [vmem:[#allocation9 + $0xd0] sm:$0xff] }
 0x188   :  { %1654 = vmatprep.subr.bf16.mxu1 %v1653_v31  ;;  %v1719_v29 = vpack.c.bf16 %v928_v10, %v925_v4  ;;  %v981_v31 = vld [vmem:[#allocation9 + $0x290] sm:$0xff] }
 0x189   :  { %v1673_v6 = vpack.c.bf16 %v981_v31, %v978_v15 }
 0x18a   :  { %1720 = vmatpush3.bf16.msra.mxu0 %v1719_v29 }
 0x18b   :  { %1656 = vmatpush1.bf16.msra.mxu1 %v1655_v63  ;;  %v980_v63 = vld [vmem:[#allocation9 + $0x288] sm:$0xff]  ;;  %1722 = vmatprep.subr.bf16.mxu0 %v1721_v33 }
 0x18c   :  { %1658 = vmatprep.subr.bf16.mxu1 %v1657_v50  ;;  %v1675_v1 = vpack.c.bf16 %v980_v63, %v977_v59  ;;  %v987_v50 = vld [vmem:[#allocation9 + $0x2c0] sm:$0xff] }
 0x18d   :  { %v1677_v11 = vpack.c.bf16 %v987_v50, %v984_v34  ;;  %v995_v63 = vld [vmem:[#allocation9 + $0x300] sm:$0xff]  ;;  %v1002_v34 = vld [vmem:[#allocation9 + $0x338] sm:$0xff]  ;;  %v1005_v50 = vld [vmem:[#allocation9 + $0x350] sm:$0xff] }
 0x18e   :  { %1724 = vmatpush3.bf16.msra.mxu0 %v1723_v27  ;;  %v1689_v42 = vpack.c.bf16 %v1005_v50, %v1002_v34 }
 0x18f   :  { %1660 = vmatpush1.bf16.msra.mxu1 %v1659_v44  ;;  %v986_v44 = vld [vmem:[#allocation9 + $0x2b8] sm:$0xff]  ;;  %1726 = vmatprep.subr.bf16.mxu0 %v1725_v36  ;;  %v1001_v36 = vld [vmem:[#allocation9 + $0x330] sm:$0xff] }
 0x190   :  { %1662 = vmatprep.subr.bf16.mxu1 %v1661_v48  ;;  %v1679_v37 = vpack.c.bf16 %v986_v44, %v983_v18  ;;  %v993_v48 = vld [vmem:[#allocation9 + $0x2f0] sm:$0xff]  ;;  %v1734_v44 = vpack.c.bf16 %v1000_v3, %v997_v40 }
 0x191   :  { %v1681_v41 = vpack.c.bf16 %v993_v48, %v990_v47  ;;  %v1006_v47 = vld [vmem:[#allocation9 + $0x358] sm:$0xff]  ;;  %v1008_v48 = vld [vmem:[#allocation9 + $0x368] sm:$0xff] }
 0x192   :  { %1728 = vmatpush3.bf16.msra.mxu0 %v1727_v45  ;;  %v1003_v45 = vld [vmem:[#allocation9 + $0x340] sm:$0xff] }
 0x193   :  { %1664 = vmatpush1.bf16.msra.mxu1 %v1663_v19  ;;  %v992_v19 = vld [vmem:[#allocation9 + $0x2e8] sm:$0xff]  ;;  %1730 = vmatprep.subr.bf16.mxu0 %v1729_v52  ;;  %v1737_v14 = vpack.c.bf16 %v1006_v47, %v1003_v45  ;;  %v1010_v52 = vld [vmem:[#allocation9 + $0x378] sm:$0xff] }
 0x194   :  { %1666 = vmatprep.subr.bf16.mxu1 %v1665_v51  ;;  %v1683_v9 = vpack.c.bf16 %v992_v19, %v989_v46  ;;  %v999_v51 = vld [vmem:[#allocation9 + $0x320] sm:$0xff]  ;;  %v1693_v19 = vpack.c.bf16 %v1011_v49, %v1008_v48 }
 0x195   :  { %v1685_v55 = vpack.c.bf16 %v999_v51, %v996_v38  ;;  %v1007_v46 = vld [vmem:[#allocation9 + $0x360] sm:$0xff] }
 0x196   :  { %1732 = vmatpush3.bf16.msra.mxu0 %v1731_v7  ;;  %v1017_v7 = vld [vmem:[#allocation9 + $0x3b0] sm:$0xff]  ;;  %v1695_v38 = vpack.c.bf16 %v1010_v52, %v1007_v46 }
 0x197   :  { %1668 = vmatpush1.bf16.msra.mxu1 %v1667_v57  ;;  %1733 = vmatprep.subr.bf16.mxu0 %v1958_v21  ;;  %v575_v57 = vld [vmem:[#allocation7] sm:$0x7] }
 0x198   :  { %1670 = vmatprep.subr.bf16.mxu1 %v1669_v58  ;;  %v588_v62 = vrot.slane %v575_v57, %v2100_v26  ;;  %v580_v0 = vrot.slane %v575_v57, %v2094_v24  ;;  %v584_v60 = vrot.slane %v575_v57, %v2097_v25  ;;  %v1018_v57 = vld [vmem:[#allocation9 + $0x3b8] sm:$0xff] }
 0x19b   :  { %1672 = vmatpush1.bf16.msra.mxu1 %v1671_v17 }
 0x19c   :  { %1674 = vmatprep.subr.bf16.mxu1 %v1673_v6 }
 0x19f   :  { %1676 = vmatpush1.bf16.msra.mxu1 %v1675_v1  ;;  %v998_v1 = vld [vmem:[#allocation9 + $0x318] sm:$0xff] }
 0x1a0   :  { %1678 = vmatprep.subr.bf16.mxu1 %v1677_v11  ;;  %v1687_v18 = vpack.c.bf16 %v998_v1, %v995_v63 }
 0x1a3   :  { %1680 = vmatpush1.bf16.msra.mxu1 %v1679_v37 }
 0x1a4   :  { %1682 = vmatprep.subr.bf16.mxu1 %v1681_v41  ;;  %v1691_v41 = vpack.c.bf16 %v1004_v43, %v1001_v36 }
 0x1a7   :  { %1684 = vmatpush1.bf16.msra.mxu1 %v1683_v9  ;;  %v1009_v9 = vld [vmem:[#allocation9 + $0x370] sm:$0xff] }
 0x1a8   :  { %1686 = vmatprep.subr.bf16.mxu1 %v1685_v55  ;;  %v1740_v51 = vpack.c.bf16 %v1012_v12, %v1009_v9  ;;  %v1013_v55 = vld [vmem:[#allocation9 + $0x390] sm:$0xff] }
 0x22d   :  { %v1403_v2 = vpop.f32.mrb[0].mxu1 }
 0x22e   :  { %v1404_v56 = vpop.f32.mrb[1].mxu1 }
 0x22f   :  { %v1405_v39 = vadd.f32 %v1404_v56, %v1403_v2  ;;  %v1697_v2 = vpack.c.bf16 %v1017_v7, %v1014_v53  ;;  %v1016_v56 = vld [vmem:[#allocation9 + $0x3a8] sm:$0xff] }
 0x231   :  { %v805_v30 = vadd.f32 %v1405_v39, %v588_v62  ;;  %v1015_v39 = vld [vmem:[#allocation9 + $0x3a0] sm:$0xff]  ;;  %v1699_v62 = vpack.c.bf16 %v1016_v56, %v1013_v55 }
 0x23d   :  { %v733_v5 = vpop.f32.mrb[0].mxu0  ;;  %v874_v13 = vpop.f32.mrb[2].mxu1 }
 0x23e   :  { %v1745_v58 = vadd.f32 %v733_v5, %v580_v0  ;;  %v2335_v22 = vadd.f32 %v874_v13, %v805_v30  ;;  %v735_v28 = vpop.f32.mrb[1].mxu0  ;;  %v1477_v61 = vpop.f32.mrb[3].mxu1  ;;  %v1743_v0 = vpack.c.bf16 %v1018_v57, %v1015_v39 }
 0x23f   :  { %v1746_v35 = vadd.f32 %v735_v28, %v584_v60  ;;  %v1967_v28 = vmov 1983009808  }
 0x240   :  { %v878_v17 = vsub.f32 0.0, %v1745_v58  ;;  %v880_v15 = vsub.f32 0.0, %v2335_v22  ;;  %v1326_v61 = vunpack.c.l.s4 %v1967_v28 }
 0x241   :  { %v879_v4 = vsub.f32 0.0, %v1746_v35 }
 0x242   :  { %v881_v10 = vmul.f32 1.442695, %v878_v17  ;;  %v885_v31 = vmul.f32 1.442695, %v880_v15 }
 0x243   :  { %v883_v29 = vmul.f32 1.442695, %v879_v4 }
 0x244   :  { %1797 = vpow2.f32 %v881_v10 }
 0x245   :  { %1799 = vpow2.f32 %v883_v29 }
 0x246   :  { %1801 = vpow2.f32 %v885_v31 }
 0x24e   :  { %v1798_v32 = vpop.eup %1797 }
 0x24f   :  { %v887_v6 = vadd.f32 1.0, %v1798_v32  ;;  %v1800_v16 = vpop.eup %1799 }
 0x250   :  { %v888_v59 = vadd.f32 1.0, %v1800_v16  ;;  %v1802_v33 = vpop.eup %1801 }
 0x251   :  { %1803 = vrcp.f32 %v887_v6  ;;  %v889_v11 = vadd.f32 1.0, %v1802_v33 }
 0x252   :  { %1805 = vrcp.f32 %v888_v59 }
 0x253   :  { %1807 = vrcp.f32 %v889_v11 }
 0x25b   :  { %v1804_v27 = vpop.eup %1803 }
 0x25c   :  { %v1806_v54 = vpop.eup %1805  ;;  %v896_v37 = vmul.f32 %v1804_v27, %v1745_v58  ;;  %v1019_v58 = vld [vmem:[#allocation10] sm:$0x7] }
 0x25d   :  { %v897_v8 = vmul.f32 %v1806_v54, %v1746_v35  ;;  %v1032_v35 = vrot.slane %v1019_v58, %v2100_v26  ;;  %v1024_v17 = vrot.slane %v1019_v58, %v2094_v24  ;;  %v1028_v4 = vrot.slane %v1019_v58, %v2097_v25 }
 0x25f   :  { %1103 = vmatprep.mubr.f32.mxu1 %v897_v8  ;;  %1245 = vmatprep.mubr.f32.mxu0 %v897_v8 }
 0x260   :  { %1104 = vmatmul.mubr.f32.vlgmr.msra.gmra.mrb[4].mxu1 %v896_v37  ;;  %1246 = vmatmul.mubr.f32.vlgmr.msra.gmra.mrb[2].mxu0 %v896_v37 }
 0x261   :  { %1688 = vmatpush1.bf16.msra.mxu1 %v1687_v18  ;;  %1735 = vmatpush3.bf16.msra.mxu0 %v1734_v44 }
 0x262   :  { %1690 = vmatprep.subr.bf16.mxu1 %v1689_v42  ;;  %1736 = vmatprep.subr.bf16.mxu0 %v1958_v21 }
 0x263   :  { %1174 = vmatprep.mubr.f32.mxu1 %v1965_v20  ;;  %1494 = vmatprep.mubr.msk.f32.mxu0 %vm1966_vm3, %v1965_v20  ;;  %v1808_v20 = vpop.eup %1807 }
 0x264   :  { %v898_v60 = vmul.f32 %v1808_v20, %v2335_v22 }
 0x265   :  { %1692 = vmatpush1.bf16.msra.mxu1 %v1691_v41  ;;  %1738 = vmatpush3.bf16.msra.mxu0 %v1737_v14 }
 0x266   :  { %1694 = vmatprep.subr.bf16.mxu1 %v1693_v19  ;;  %1739 = vmatprep.subr.bf16.mxu0 %v1958_v21 }
 0x269   :  { %1696 = vmatpush1.bf16.msra.mxu1 %v1695_v38  ;;  %1741 = vmatpush3.bf16.msra.mxu0 %v1740_v51 }
 0x26a   :  { %1698 = vmatprep.subr.bf16.mxu1 %v1697_v2  ;;  %1742 = vmatprep.subr.bf16.mxu0 %v1958_v21  ;;  %v1327_v21 = vunpack.c.0.s8 %v1326_v61 }
 0x26c   :  { %v1330_v16 = vsub.s32 %v1327_v21, %v2091_v23 }
 0x26d   :  { %1700 = vmatpush1.bf16.msra.mxu1 %v1699_v62  ;;  %1744 = vmatpush3.bf16.msra.mxu0 %v1743_v0 }
 0x270   :  { %1369 = vmatmul.mubr.msk.f32.vlgmr.msra.gmra.mrb[4].mxu1 %vm592_vm7, %v898_v60  ;;  %1495 = vmatmul.mubr.msk.f32.vlgmr.msra.gmra.mrb[4].mxu0 %vm592_vm7, %v898_v60 }
 0x333   :  { %v1447_v30 = vpop.f32.mrb[2].mxu0 }
 0x334   :  { %v1448_v5 = vpop.f32.mrb[3].mxu0 }
 0x335   :  { %v1449_v13 = vadd.f32 %v1448_v5, %v1447_v30 }
 0x337   :  { %v1248_v10 = vadd.f32 %v1449_v13, %v1032_v35 }
 0x343   :  { %v1176_v29 = vpop.f32.mrb[4].mxu1  ;;  %v1317_v22 = vpop.f32.mrb[4].mxu0 }
 0x344   :  { %v1747_v15 = vadd.f32 %v1176_v29, %v1024_v17  ;;  %v1318_v31 = vadd.f32 %v1317_v22, %v1248_v10  ;;  %v1178_v32 = vpop.f32.mrb[5].mxu1  ;;  %v1496_v6 = vpop.f32.mrb[5].mxu0 }
 0x345   :  { %v1748_v59 = vadd.f32 %v1178_v32, %v1028_v4 }
 0x346   :  { %v1338_v26 = vrot.slane %v1318_v31, %v1330_v16 }
 0x347   :  { %v1324_v63 = vcombine.low %v1747_v15, %v1748_v59 }
 0x349   :  { %v1331_v24 = vrot.slane %v1324_v63, %v1330_v16 }
 0x34b   :  { %v1339_v33 = vcombine.low %v1331_v24, %v1338_v26 }
 0x34d   :  { %1346 = vst.msk [vmem:[%s2361_s7] sm:$0x3f] %vm1345_vm13, %v1339_v33 }
 0x34e   :  { %1351 = vsyncpa [#allocation3], 1 }
 0x34f   :  { %1352 = vsyncpa [#allocation5], 1 }
 0x350   :  { %1353 = vsyncpa [#allocation8], 1 }
 0x351   :  { %1354 = vsyncpa [#allocation11], 1 }

// kernel: forward.7
= control target key start
LH: loop header
LB: loop body
LE: loop exit
PB: predicated region body
PF: predicated region fallthrough
CT: control target
= control target key end

     0   :  { %s867_s17 = smov 0   ;;  %s869_s18 = smov 0   ;;  %s972_s0 = inlined_call_operand.vmem [shape: bf16[2,256,256], index: 0, kind: input, shape index: {}]   ;;  %s973_s1 = inlined_call_operand.vmem [shape: bf16[32,256], index: 1, kind: input, shape index: {}]   ;;  %s974_s2 = inlined_call_operand.vmem [shape: f32[32,1], index: 2, kind: input, shape index: {}]   ;;  %s975_s3 = inlined_call_operand.<no memory space> [shape: f32[1], index: 3, kind: input, shape index: {}]   ;;  %s976_s4 = inlined_call_operand.vmem [shape: f32[2,32,256], index: 4, kind: output, shape index: {}]  }
   0x1   :  { %9 = sst [smem:[#allocation2]] %s975_s3  ;;  %s871_s19 = smov 0  }
   0x2 LB: > { %s27_s3 = sadd.s32 1, %s832_s18  ;;  %p656_p0 = scmp.ge.s32.totalorder %s836_s19, 1  ;;  %s836_s19 = sphi %s871_s19, %s15_s19   ;;  %s832_s18 = sphi %s869_s18, %s978_s18   ;;  %s828_s17 = sphi %s867_s17, %s977_s17  }
   0x3   : > { %p29_p1 = scmp.ge.s32.totalorder %s27_s3, 2  ;;  %p184_p2 = scmp.lt.s32.totalorder %s836_s19, 3 }
   0x5   : > { %s980_s3 = smov (%p29_p1, %s27_s3), 0  ;;  %p185_p3 = pnand %p656_p0, %p184_p2 }
   0x6   : > { %p219_p4 = scmp.lt.s32.totalorder (!%p185_p3), %s828_s17, 1  ;;  %v810_v0 = vld [vmem:[%s973_s1 + $0x4] ss:$8 sps:$4 sm:$0xff] (!%p185_p3)   ;;  %v838_v1 = vmov (!%p185_p3), 0   ;;  %v813_v2 = vld [vmem:[%s973_s1 + $0x14] ss:$8 sps:$4 sm:$0xff] (!%p185_p3)  }
   0x7   : > { %188 = sbr.rel (%p185_p3) target bundleno = 306 (0x132), region = 36  ;;  %759 = vset.pattern.permute.xlu1 (!%p185_p3), %v838_v1  ;;  %758 = vset.pattern.permute.xlu0 (!%p185_p3), %v838_v1  ;;  %v276_v3 = vld [vmem:[%s974_s2 + $0x10] sm:$0xff] (!%p185_p3)  ;;  %v274_v4 = vld [vmem:[%s974_s2] sm:$0xff] (!%p185_p3)  ;;  %v277_v5 = vld [vmem:[%s974_s2 + $0x18] sm:$0xff] (!%p185_p3)  ;;  %s531_s14 = sld [smem:[#allocation2]] (!%p185_p3) }
   0x8   : > { %510 = vmatprep.mubr.bf16.mxu0 (!%p185_p3), %v810_v0  ;;  %290 = vperm.xlu1 (!%p185_p3), %759, %v276_v3   ;;  %v275_v9 = vld [vmem:[%s974_s2 + $0x8] sm:$0xff] (!%p185_p3)  ;;  %v811_v40 = vld [vmem:[%s973_s1 + $0x10] ss:$8 sps:$4 sm:$0xff] (!%p185_p3)  }
   0x9   : > { %520 = vmatprep.mubr.bf16.mxu1 (!%p185_p3), %v813_v2  ;;  %280 = vperm.xlu0 (!%p185_p3), %758, %v274_v4   ;;  %v808_v39 = vld [vmem:[%s973_s1] ss:$8 sps:$4 sm:$0xff] (!%p185_p3)  }
   0xc   : > { %295 = vperm.xlu1 (!%p185_p3), %759, %v277_v5  }
   0xd   : > { %285 = vperm.xlu0 (!%p185_p3), %758, %v275_v9   ;;  %v540_v44 = vstv (!%p185_p3), %s531_s14 }
   0xe   : > { %s982_s17 = smov (!%p219_p4, %s828_s17), 1 }
   0xf   : > { %s699_s28 = sshll.u32 %s982_s17, 8  ;;  %s700_s15 = sshll.u32 %s982_s17, 6 }
  0x10   : > { %s906_s7 = scalar_lea.vmem %s972_s0, %s699_s28  ;;  %s953_s21 = scalar_lea.vmem %s976_s4, %s700_s15 }
  0x11   : > { %v760_v6 = vld [vmem:[%s906_s7 + $0x4] ss:$8 sps:$4 sm:$0xff]   ;;  %v762_v7 = vld [vmem:[%s906_s7] ss:$8 sps:$4 sm:$0xff]   ;;  %v763_v8 = vld [vmem:[%s906_s7 + $0x14] ss:$8 sps:$4 sm:$0xff]  }
  0x12   : > { %478 = vmatprep.subr.bf16.mxu0 %v760_v6  ;;  %701 = vmatprep.subr.bf16.mxu1 %v760_v6  ;;  %v765_v10 = vld [vmem:[%s906_s7 + $0x10] ss:$8 sps:$4 sm:$0xff]   ;;  %v766_v11 = vld [vmem:[%s906_s7 + $0x24] ss:$8 sps:$4 sm:$0xff]   ;;  %v768_v12 = vld [vmem:[%s906_s7 + $0x20] ss:$8 sps:$4 sm:$0xff]  }
  0x13   : > { %479 = vmatpush1.bf16.msra.mxu0 %v762_v7  ;;  %717 = vmatpush1.bf16.msra.mxu1 %v762_v7  ;;  %v769_v13 = vld [vmem:[%s906_s7 + $0x34] ss:$8 sps:$4 sm:$0xff]   ;;  %v771_v14 = vld [vmem:[%s906_s7 + $0x30] ss:$8 sps:$4 sm:$0xff]   ;;  %v772_v15 = vld [vmem:[%s906_s7 + $0x44] ss:$8 sps:$4 sm:$0xff]  }
  0x14   : > { %480 = vmatprep.subr.bf16.mxu0 %v763_v8  ;;  %702 = vmatprep.subr.bf16.mxu1 %v763_v8  ;;  %v774_v16 = vld [vmem:[%s906_s7 + $0x40] ss:$8 sps:$4 sm:$0xff]   ;;  %v775_v17 = vld [vmem:[%s906_s7 + $0x54] ss:$8 sps:$4 sm:$0xff]   ;;  %v777_v18 = vld [vmem:[%s906_s7 + $0x50] ss:$8 sps:$4 sm:$0xff]  }
  0x15   : > { %v778_v19 = vld [vmem:[%s906_s7 + $0x64] ss:$8 sps:$4 sm:$0xff]   ;;  %v780_v20 = vld [vmem:[%s906_s7 + $0x60] ss:$8 sps:$4 sm:$0xff]   ;;  %v781_v21 = vld [vmem:[%s906_s7 + $0x74] ss:$8 sps:$4 sm:$0xff]  }
  0x16   : > { %v783_v22 = vld [vmem:[%s906_s7 + $0x70] ss:$8 sps:$4 sm:$0xff]   ;;  %v784_v23 = vld [vmem:[%s906_s7 + $0x84] ss:$8 sps:$4 sm:$0xff]   ;;  %v786_v24 = vld [vmem:[%s906_s7 + $0x80] ss:$8 sps:$4 sm:$0xff]  }
  0x17   : > { %481 = vmatpush1.bf16.msra.mxu0 %v765_v10  ;;  %718 = vmatpush1.bf16.msra.mxu1 %v765_v10  ;;  %v787_v25 = vld [vmem:[%s906_s7 + $0x94] ss:$8 sps:$4 sm:$0xff]   ;;  %v789_v26 = vld [vmem:[%s906_s7 + $0x90] ss:$8 sps:$4 sm:$0xff]   ;;  %v790_v27 = vld [vmem:[%s906_s7 + $0xa4] ss:$8 sps:$4 sm:$0xff]  }
  0x18   : > { %482 = vmatprep.subr.bf16.mxu0 %v766_v11  ;;  %703 = vmatprep.subr.bf16.mxu1 %v766_v11  ;;  %v792_v28 = vld [vmem:[%s906_s7 + $0xa0] ss:$8 sps:$4 sm:$0xff]   ;;  %v793_v29 = vld [vmem:[%s906_s7 + $0xb4] ss:$8 sps:$4 sm:$0xff]   ;;  %v795_v30 = vld [vmem:[%s906_s7 + $0xb0] ss:$8 sps:$4 sm:$0xff]  }
  0x19   : > { %v796_v31 = vld [vmem:[%s906_s7 + $0xc4] ss:$8 sps:$4 sm:$0xff]   ;;  %v798_v32 = vld [vmem:[%s906_s7 + $0xc0] ss:$8 sps:$4 sm:$0xff]   ;;  %v799_v33 = vld [vmem:[%s906_s7 + $0xd4] ss:$8 sps:$4 sm:$0xff]  }
  0x1a   : > { %v801_v34 = vld [vmem:[%s906_s7 + $0xd0] ss:$8 sps:$4 sm:$0xff]   ;;  %v802_v35 = vld [vmem:[%s906_s7 + $0xe4] ss:$8 sps:$4 sm:$0xff]   ;;  %v804_v36 = vld [vmem:[%s906_s7 + $0xe0] ss:$8 sps:$4 sm:$0xff]  }
  0x1b   : > { %483 = vmatpush1.bf16.msra.mxu0 %v768_v12  ;;  %719 = vmatpush1.bf16.msra.mxu1 %v768_v12  ;;  %v805_v37 = vld [vmem:[%s906_s7 + $0xf4] ss:$8 sps:$4 sm:$0xff]   ;;  %v807_v38 = vld [vmem:[%s906_s7 + $0xf0] ss:$8 sps:$4 sm:$0xff]  }
  0x1c   : > { %484 = vmatprep.subr.bf16.mxu0 %v769_v13  ;;  %704 = vmatprep.subr.bf16.mxu1 %v769_v13 }
  0x1f   : > { %485 = vmatpush1.bf16.msra.mxu0 %v771_v14  ;;  %720 = vmatpush1.bf16.msra.mxu1 %v771_v14 }
  0x20   : > { %486 = vmatprep.subr.bf16.mxu0 %v772_v15  ;;  %705 = vmatprep.subr.bf16.mxu1 %v772_v15 }
  0x23   : > { %487 = vmatpush1.bf16.msra.mxu0 %v774_v16  ;;  %721 = vmatpush1.bf16.msra.mxu1 %v774_v16 }
  0x24   : > { %488 = vmatprep.subr.bf16.mxu0 %v775_v17  ;;  %706 = vmatprep.subr.bf16.mxu1 %v775_v17 }
  0x27   : > { %489 = vmatpush1.bf16.msra.mxu0 %v777_v18  ;;  %722 = vmatpush1.bf16.msra.mxu1 %v777_v18 }
  0x28   : > { %490 = vmatprep.subr.bf16.mxu0 %v778_v19  ;;  %707 = vmatprep.subr.bf16.mxu1 %v778_v19 }
  0x2b   : > { %491 = vmatpush1.bf16.msra.mxu0 %v780_v20  ;;  %723 = vmatpush1.bf16.msra.mxu1 %v780_v20 }
  0x2c   : > { %492 = vmatprep.subr.bf16.mxu0 %v781_v21  ;;  %708 = vmatprep.subr.bf16.mxu1 %v781_v21 }
  0x2f   : > { %493 = vmatpush1.bf16.msra.mxu0 %v783_v22  ;;  %724 = vmatpush1.bf16.msra.mxu1 %v783_v22 }
  0x30   : > { %494 = vmatprep.subr.bf16.mxu0 %v784_v23  ;;  %709 = vmatprep.subr.bf16.mxu1 %v784_v23 }
  0x33   : > { %495 = vmatpush1.bf16.msra.mxu0 %v786_v24  ;;  %725 = vmatpush1.bf16.msra.mxu1 %v786_v24 }
  0x34   : > { %496 = vmatprep.subr.bf16.mxu0 %v787_v25  ;;  %710 = vmatprep.subr.bf16.mxu1 %v787_v25 }
  0x37   : > { %497 = vmatpush1.bf16.msra.mxu0 %v789_v26  ;;  %726 = vmatpush1.bf16.msra.mxu1 %v789_v26 }
  0x38   : > { %498 = vmatprep.subr.bf16.mxu0 %v790_v27  ;;  %711 = vmatprep.subr.bf16.mxu1 %v790_v27 }
  0x3b   : > { %499 = vmatpush1.bf16.msra.mxu0 %v792_v28  ;;  %727 = vmatpush1.bf16.msra.mxu1 %v792_v28 }
  0x3c   : > { %500 = vmatprep.subr.bf16.mxu0 %v793_v29  ;;  %712 = vmatprep.subr.bf16.mxu1 %v793_v29 }
  0x3f   : > { %501 = vmatpush1.bf16.msra.mxu0 %v795_v30  ;;  %728 = vmatpush1.bf16.msra.mxu1 %v795_v30 }
  0x40   : > { %502 = vmatprep.subr.bf16.mxu0 %v796_v31  ;;  %713 = vmatprep.subr.bf16.mxu1 %v796_v31 }
  0x43   : > { %503 = vmatpush1.bf16.msra.mxu0 %v798_v32  ;;  %729 = vmatpush1.bf16.msra.mxu1 %v798_v32 }
  0x44   : > { %504 = vmatprep.subr.bf16.mxu0 %v799_v33  ;;  %714 = vmatprep.subr.bf16.mxu1 %v799_v33 }
  0x47   : > { %505 = vmatpush1.bf16.msra.mxu0 %v801_v34  ;;  %730 = vmatpush1.bf16.msra.mxu1 %v801_v34 }
  0x48   : > { %506 = vmatprep.subr.bf16.mxu0 %v802_v35  ;;  %715 = vmatprep.subr.bf16.mxu1 %v802_v35 }
  0x4b   : > { %507 = vmatpush1.bf16.msra.mxu0 %v804_v36  ;;  %731 = vmatpush1.bf16.msra.mxu1 %v804_v36 }
  0x4c   : > { %508 = vmatprep.subr.bf16.mxu0 %v805_v37  ;;  %716 = vmatprep.subr.bf16.mxu1 %v805_v37 }
  0x4f   : > { %509 = vmatpush1.bf16.msra.mxu0 %v807_v38  ;;  %732 = vmatpush1.bf16.msra.mxu1 %v807_v38 }
  0x52   : > { %511 = vmatmul.mubr.bf16.vlgmr.msra.gmra.mrb[0].mxu0 %v808_v39  ;;  %521 = vmatmul.mubr.bf16.vlgmr.msra.gmra.mrb[0].mxu1 %v811_v40 }
  0x87   : > { %v291_v41 = vpop.permute.xlu1 %290 }
  0x88   : > { %v281_v42 = vpop.permute.xlu0 %280 }
  0x8b   : > { %v296_v58 = vpop.permute.xlu1 %295 }
  0x8c   : > { %v286_v59 = vpop.permute.xlu0 %285 }
 0x125   : > { %v512_v43 = vpop.f32.mrb[0].mxu0  ;;  %v522_v45 = vpop.f32.mrb[0].mxu1 }
 0x126   : > { %v513_v46 = vadd.f32 %v512_v43, %v281_v42  ;;  %v523_v47 = vadd.f32 %v522_v45, %v291_v41  ;;  %v514_v48 = vpop.f32.mrb[1].mxu0  ;;  %v524_v49 = vpop.f32.mrb[1].mxu1 }
 0x127   : > { %v515_v50 = vadd.f32 %v514_v48, %v281_v42  ;;  %v525_v51 = vadd.f32 %v524_v49, %v291_v41  ;;  %v516_v52 = vpop.f32.mrb[2].mxu0  ;;  %v526_v53 = vpop.f32.mrb[2].mxu1 }
 0x128   : > { %vm532_vm0 = vcmp.ge.f32.partialorder %v513_v46, 0.0  ;;  %v541_v54 = vmul.f32 %v540_v44, %v513_v46  ;;  %vm536_vm1 = vcmp.ge.f32.partialorder %v523_v47, 0.0  ;;  %v545_v55 = vmul.f32 %v540_v44, %v523_v47  ;;  %v518_v56 = vpop.f32.mrb[3].mxu0  ;;  %v528_v57 = vpop.f32.mrb[3].mxu1 }
 0x129   : > { %vm533_vm2 = vcmp.ge.f32.partialorder %v515_v50, 0.0  ;;  %v542_v60 = vmul.f32 %v540_v44, %v515_v50  ;;  %vm537_vm3 = vcmp.ge.f32.partialorder %v525_v51, 0.0  ;;  %v546_v61 = vmul.f32 %v540_v44, %v525_v51 }
 0x12a   : > { %v549_v62 = vsel %vm532_vm0, %v513_v46, %v541_v54  ;;  %v553_v63 = vsel %vm536_vm1, %v523_v47, %v545_v55  ;;  %v517_v0 = vadd.f32 %v516_v52, %v286_v59  ;;  %v527_v1 = vadd.f32 %v526_v53, %v296_v58 }
 0x12b   : > { %557 = vst [vmem:[%s953_s21] sm:$0xff] %v549_v62  ;;  %561 = vst [vmem:[%s953_s21 + $0x20] sm:$0xff] %v553_v63  ;;  %v550_v2 = vsel %vm533_vm2, %v515_v50, %v542_v60  ;;  %v554_v3 = vsel %vm537_vm3, %v525_v51, %v546_v61  ;;  %v519_v4 = vadd.f32 %v518_v56, %v286_v59 }
 0x12c   : > { %v529_v5 = vadd.f32 %v528_v57, %v296_v58  ;;  %558 = vst [vmem:[%s953_s21 + $0x8] sm:$0xff] %v550_v2  ;;  %562 = vst [vmem:[%s953_s21 + $0x28] sm:$0xff] %v554_v3  ;;  %vm534_vm4 = vcmp.ge.f32.partialorder %v517_v0, 0.0  ;;  %v543_v6 = vmul.f32 %v540_v44, %v517_v0  ;;  %vm538_vm5 = vcmp.ge.f32.partialorder %v527_v1, 0.0 }
 0x12d   : > { %v547_v7 = vmul.f32 %v540_v44, %v527_v1  ;;  %vm535_vm6 = vcmp.ge.f32.partialorder %v519_v4, 0.0  ;;  %v544_v8 = vmul.f32 %v540_v44, %v519_v4 }
 0x12e   : > { %vm539_vm7 = vcmp.ge.f32.partialorder %v529_v5, 0.0  ;;  %v548_v9 = vmul.f32 %v540_v44, %v529_v5  ;;  %v551_v10 = vsel %vm534_vm4, %v517_v0, %v543_v6 }
 0x12f   : > { %v555_v11 = vsel %vm538_vm5, %v527_v1, %v547_v7  ;;  %559 = vst [vmem:[%s953_s21 + $0x10] sm:$0xff] %v551_v10  ;;  %v552_v12 = vsel %vm535_vm6, %v519_v4, %v544_v8 }
 0x130   : > { %563 = vst [vmem:[%s953_s21 + $0x30] sm:$0xff] %v555_v11  ;;  %v556_v13 = vsel %vm539_vm7, %v529_v5, %v548_v9  ;;  %560 = vst [vmem:[%s953_s21 + $0x18] sm:$0xff] %v552_v12 }
 0x131   : > { %564 = vst [vmem:[%s953_s21 + $0x38] sm:$0xff] %v556_v13 }
 0x132 PF: > { %s15_s19 = sadd.s32 1, %s836_s19   ;;  %s977_s17 = smov %s832_s18 }
 0x133   : > { %p12_p5 = scmp.ge.s32.totalorder %s15_s19, 4   ;;  %s978_s18 = smov %s980_s3 }
 0x135   :  { %14 = sbr.rel (!%p12_p5) target bundleno = 2 (0x2), region = 66 }

// kernel: closed_call.13
= control target key start
LH: loop header
LB: loop body
LE: loop exit
PB: predicated region body
PF: predicated region fallthrough
CT: control target
= control target key end

     0   :  { %s1060_s17 = smov 0   ;;  %s1062_s18 = smov 0   ;;  %s1191_s0 = inlined_call_operand.vmem [shape: bf16[2,384,256], index: 0, kind: input, shape index: {}]   ;;  %s1192_s1 = inlined_call_operand.vmem [shape: bf16[32,384], index: 1, kind: input, shape index: {}]   ;;  %s1193_s2 = inlined_call_operand.vmem [shape: f32[32,1], index: 2, kind: input, shape index: {}]   ;;  %s1194_s3 = inlined_call_operand.<no memory space> [shape: f32[1], index: 3, kind: input, shape index: {}]   ;;  %s1195_s4 = inlined_call_operand.vmem [shape: f32[2,32,256], index: 4, kind: output, shape index: {}]  }
   0x1   :  { %9 = sst [smem:[#allocation2]] %s1194_s3  ;;  %s1064_s19 = smov 0  }
   0x2 LB: > { %s27_s3 = sadd.s32 1, %s1025_s18  ;;  %p822_p0 = scmp.ge.s32.totalorder %s1029_s19, 1  ;;  %s1029_s19 = sphi %s1064_s19, %s15_s19   ;;  %s1025_s18 = sphi %s1062_s18, %s1197_s18   ;;  %s1021_s17 = sphi %s1060_s17, %s1196_s17  }
   0x3   : > { %p29_p1 = scmp.ge.s32.totalorder %s27_s3, 2  ;;  %p184_p2 = scmp.lt.s32.totalorder %s1029_s19, 3 }
   0x5   : > { %s1199_s3 = smov (%p29_p1, %s27_s3), 0  ;;  %p185_p3 = pnand %p822_p0, %p184_p2 }
   0x6   : > { %p219_p4 = scmp.lt.s32.totalorder (!%p185_p3), %s1021_s17, 1  ;;  %v1031_v0 = vmov (!%p185_p3), 0   ;;  %v1001_v1 = vld [vmem:[%s1192_s1 + $0x4] ss:$12 sps:$4 sm:$0xff] (!%p185_p3)   ;;  %v296_v4 = vld [vmem:[%s1193_s2 + $0x8] sm:$0xff] (!%p185_p3)  ;;  %v298_v5 = vld [vmem:[%s1193_s2 + $0x18] sm:$0xff] (!%p185_p3) }
   0x7   : > { %188 = sbr.rel (%p185_p3) target bundleno = 314 (0x13a), region = 36  ;;  %676 = vmatprep.mubr.bf16.mxu0 (!%p185_p3), %v1031_v0  ;;  %925 = vset.pattern.permute.xlu0 (!%p185_p3), %v1031_v0  ;;  %v295_v2 = vld [vmem:[%s1193_s2] sm:$0xff] (!%p185_p3)  ;;  %v297_v3 = vld [vmem:[%s1193_s2 + $0x10] sm:$0xff] (!%p185_p3)  ;;  %v1003_v57 = vld [vmem:[%s1192_s1 + $0x1c] ss:$12 sps:$4 sm:$0xff] (!%p185_p3)   ;;  %s697_s21 = sld [smem:[#allocation2]] (!%p185_p3) }
   0x8   : > { %926 = vset.pattern.permute.xlu1 (!%p185_p3), %v1031_v0  ;;  %623 = vmatprep.mubr.bf16.mxu1 (!%p185_p3), %v1001_v1  ;;  %v1002_v45 = vld [vmem:[%s1192_s1 + $0x8] ss:$12 sps:$4 sm:$0xff] (!%p185_p3)   ;;  %v1005_v50 = vld [vmem:[%s1192_s1 + $0x20] ss:$12 sps:$4 sm:$0xff] (!%p185_p3)   ;;  %v1006_v58 = vld [vmem:[%s1192_s1 + $0x18] ss:$12 sps:$4 sm:$0xff] (!%p185_p3)  }
   0x9   : > { %301 = vperm.xlu0 (!%p185_p3), %925, %v295_v2   ;;  %311 = vperm.xlu1 (!%p185_p3), %926, %v297_v3   ;;  %v999_v56 = vld [vmem:[%s1192_s1] ss:$12 sps:$4 sm:$0xff] (!%p185_p3)  }
   0xd   : > { %306 = vperm.xlu0 (!%p185_p3), %925, %v296_v4   ;;  %316 = vperm.xlu1 (!%p185_p3), %926, %v298_v5  }
   0xe   : > { %s1201_s17 = smov (!%p219_p4, %s1021_s17), 1 }
   0xf   : > { %s899_s22 = smul.u32 384, %s1201_s17 }
  0x11   : > { %s1096_s29 = scalar_lea.vmem %s1191_s0, %s899_s22  ;;  %s882_s22 = sshll.u32 %s1201_s17, 6 }
  0x12   : > { %v927_v6 = vld [vmem:[%s1096_s29 + $0x4] ss:$8 sps:$4 sm:$0xff]   ;;  %v929_v7 = vld [vmem:[%s1096_s29] ss:$8 sps:$4 sm:$0xff]   ;;  %v930_v8 = vld [vmem:[%s1096_s29 + $0x14] ss:$8 sps:$4 sm:$0xff]   ;;  %s1172_s25 = scalar_lea.vmem %s1195_s4, %s882_s22 }
  0x13   : > { %591 = vmatprep.subr.bf16.mxu1 %v927_v6  ;;  %v932_v9 = vld [vmem:[%s1096_s29 + $0x10] ss:$8 sps:$4 sm:$0xff]   ;;  %v933_v10 = vld [vmem:[%s1096_s29 + $0x24] ss:$8 sps:$4 sm:$0xff]   ;;  %v935_v11 = vld [vmem:[%s1096_s29 + $0x20] ss:$8 sps:$4 sm:$0xff]  }
  0x14   : > { %592 = vmatpush1.bf16.msra.mxu1 %v929_v7  ;;  %v936_v12 = vld [vmem:[%s1096_s29 + $0x34] ss:$8 sps:$4 sm:$0xff]   ;;  %v938_v13 = vld [vmem:[%s1096_s29 + $0x30] ss:$8 sps:$4 sm:$0xff]   ;;  %v951_v14 = vld [vmem:[%s1096_s29 + $0x104] ss:$8 sps:$4 sm:$0xff]  }
  0x15   : > { %593 = vmatprep.subr.bf16.mxu1 %v930_v8  ;;  %v939_v15 = vld [vmem:[%s1096_s29 + $0x44] ss:$8 sps:$4 sm:$0xff]   ;;  %v955_v16 = vld [vmem:[%s1096_s29 + $0x100] ss:$8 sps:$4 sm:$0xff]   ;;  %644 = vmatprep.subr.bf16.mxu0 %v951_v14  ;;  %v957_v17 = vld [vmem:[%s1096_s29 + $0x114] ss:$8 sps:$4 sm:$0xff]   ;;  %v706_v8 = vstv %s697_s21 }
  0x16   : > { %645 = vmatpush1.bf16.msra.mxu0 %v955_v16  ;;  %v941_v18 = vld [vmem:[%s1096_s29 + $0x40] ss:$8 sps:$4 sm:$0xff]   ;;  %v942_v19 = vld [vmem:[%s1096_s29 + $0x54] ss:$8 sps:$4 sm:$0xff]   ;;  %v961_v20 = vld [vmem:[%s1096_s29 + $0x110] ss:$8 sps:$4 sm:$0xff]  }
  0x17   : > { %646 = vmatprep.subr.bf16.mxu0 %v957_v17  ;;  %v963_v21 = vld [vmem:[%s1096_s29 + $0x124] ss:$8 sps:$4 sm:$0xff]   ;;  %v944_v22 = vld [vmem:[%s1096_s29 + $0x50] ss:$8 sps:$4 sm:$0xff]   ;;  %v967_v23 = vld [vmem:[%s1096_s29 + $0x120] ss:$8 sps:$4 sm:$0xff]  }
  0x18   : > { %594 = vmatpush1.bf16.msra.mxu1 %v932_v9  ;;  %v969_v24 = vld [vmem:[%s1096_s29 + $0x134] ss:$8 sps:$4 sm:$0xff]   ;;  %v945_v25 = vld [vmem:[%s1096_s29 + $0x64] ss:$8 sps:$4 sm:$0xff]   ;;  %v973_v26 = vld [vmem:[%s1096_s29 + $0x130] ss:$8 sps:$4 sm:$0xff]  }
  0x19   : > { %595 = vmatprep.subr.bf16.mxu1 %v933_v10  ;;  %v947_v27 = vld [vmem:[%s1096_s29 + $0x60] ss:$8 sps:$4 sm:$0xff]   ;;  %v975_v28 = vld [vmem:[%s1096_s29 + $0x144] ss:$8 sps:$4 sm:$0xff]   ;;  %v948_v29 = vld [vmem:[%s1096_s29 + $0x74] ss:$8 sps:$4 sm:$0xff]  }
  0x1a   : > { %647 = vmatpush1.bf16.msra.mxu0 %v961_v20  ;;  %v950_v30 = vld [vmem:[%s1096_s29 + $0x70] ss:$8 sps:$4 sm:$0xff]   ;;  %v979_v31 = vld [vmem:[%s1096_s29 + $0x140] ss:$8 sps:$4 sm:$0xff]   ;;  %v981_v32 = vld [vmem:[%s1096_s29 + $0x154] ss:$8 sps:$4 sm:$0xff]  }
  0x1b   : > { %648 = vmatprep.subr.bf16.mxu0 %v963_v21  ;;  %v953_v33 = vld [vmem:[%s1096_s29 + $0x84] ss:$8 sps:$4 sm:$0xff]   ;;  %v985_v34 = vld [vmem:[%s1096_s29 + $0x150] ss:$8 sps:$4 sm:$0xff]   ;;  %v956_v35 = vld [vmem:[%s1096_s29 + $0x80] ss:$8 sps:$4 sm:$0xff]  }
  0x1c   : > { %596 = vmatpush1.bf16.msra.mxu1 %v935_v11  ;;  %v987_v36 = vld [vmem:[%s1096_s29 + $0x164] ss:$8 sps:$4 sm:$0xff]   ;;  %v959_v37 = vld [vmem:[%s1096_s29 + $0x94] ss:$8 sps:$4 sm:$0xff]   ;;  %v991_v38 = vld [vmem:[%s1096_s29 + $0x160] ss:$8 sps:$4 sm:$0xff]  }
  0x1d   : > { %597 = vmatprep.subr.bf16.mxu1 %v936_v12  ;;  %v962_v39 = vld [vmem:[%s1096_s29 + $0x90] ss:$8 sps:$4 sm:$0xff]   ;;  %v993_v40 = vld [vmem:[%s1096_s29 + $0x174] ss:$8 sps:$4 sm:$0xff]   ;;  %v965_v41 = vld [vmem:[%s1096_s29 + $0xa4] ss:$8 sps:$4 sm:$0xff]  }
  0x1e   : > { %649 = vmatpush1.bf16.msra.mxu0 %v967_v23  ;;  %v997_v42 = vld [vmem:[%s1096_s29 + $0x170] ss:$8 sps:$4 sm:$0xff]   ;;  %v968_v43 = vld [vmem:[%s1096_s29 + $0xa0] ss:$8 sps:$4 sm:$0xff]   ;;  %v971_v44 = vld [vmem:[%s1096_s29 + $0xb4] ss:$8 sps:$4 sm:$0xff]  }
  0x1f   : > { %650 = vmatprep.subr.bf16.mxu0 %v969_v24  ;;  %v974_v46 = vld [vmem:[%s1096_s29 + $0xb0] ss:$8 sps:$4 sm:$0xff]   ;;  %v977_v47 = vld [vmem:[%s1096_s29 + $0xc4] ss:$8 sps:$4 sm:$0xff]   ;;  %v980_v48 = vld [vmem:[%s1096_s29 + $0xc0] ss:$8 sps:$4 sm:$0xff]  }
  0x20   : > { %598 = vmatpush1.bf16.msra.mxu1 %v938_v13  ;;  %v983_v49 = vld [vmem:[%s1096_s29 + $0xd4] ss:$8 sps:$4 sm:$0xff]   ;;  %v986_v51 = vld [vmem:[%s1096_s29 + $0xd0] ss:$8 sps:$4 sm:$0xff]   ;;  %v989_v52 = vld [vmem:[%s1096_s29 + $0xe4] ss:$8 sps:$4 sm:$0xff]  }
  0x21   : > { %599 = vmatprep.subr.bf16.mxu1 %v939_v15  ;;  %v992_v53 = vld [vmem:[%s1096_s29 + $0xe0] ss:$8 sps:$4 sm:$0xff]   ;;  %v995_v54 = vld [vmem:[%s1096_s29 + $0xf4] ss:$8 sps:$4 sm:$0xff]   ;;  %v998_v55 = vld [vmem:[%s1096_s29 + $0xf0] ss:$8 sps:$4 sm:$0xff]  }
  0x22   : > { %651 = vmatpush1.bf16.msra.mxu0 %v973_v26 }
  0x23   : > { %652 = vmatprep.subr.bf16.mxu0 %v975_v28 }
  0x24   : > { %600 = vmatpush1.bf16.msra.mxu1 %v941_v18 }
  0x25   : > { %601 = vmatprep.subr.bf16.mxu1 %v942_v19 }
  0x26   : > { %653 = vmatpush1.bf16.msra.mxu0 %v979_v31 }
  0x27   : > { %654 = vmatprep.subr.bf16.mxu0 %v981_v32 }
  0x28   : > { %602 = vmatpush1.bf16.msra.mxu1 %v944_v22 }
  0x29   : > { %603 = vmatprep.subr.bf16.mxu1 %v945_v25 }
  0x2a   : > { %655 = vmatpush1.bf16.msra.mxu0 %v985_v34 }
  0x2b   : > { %656 = vmatprep.subr.bf16.mxu0 %v987_v36 }
  0x2c   : > { %604 = vmatpush1.bf16.msra.mxu1 %v947_v27 }
  0x2d   : > { %605 = vmatprep.subr.bf16.mxu1 %v948_v29 }
  0x2e   : > { %657 = vmatpush1.bf16.msra.mxu0 %v991_v38 }
  0x2f   : > { %658 = vmatprep.subr.bf16.mxu0 %v993_v40 }
  0x30   : > { %606 = vmatpush1.bf16.msra.mxu1 %v950_v30 }
  0x31   : > { %607 = vmatprep.subr.bf16.mxu1 %v953_v33 }
  0x32   : > { %659 = vmatpush1.bf16.msra.mxu0 %v997_v42 }
  0x34   : > { %608 = vmatpush1.bf16.msra.mxu1 %v956_v35 }
  0x35   : > { %609 = vmatprep.subr.bf16.mxu1 %v959_v37  ;;  %677 = vmatmul.mubr.bf16.vlgmr.msra.gmra.mrb[0].mxu0 %v1002_v45 }
  0x36   : > { %686 = vmatprep.mubr.bf16.mxu0 %v1031_v0 }
  0x38   : > { %610 = vmatpush1.bf16.msra.mxu1 %v962_v39 }
  0x39   : > { %611 = vmatprep.subr.bf16.mxu1 %v965_v41 }
  0x3c   : > { %612 = vmatpush1.bf16.msra.mxu1 %v968_v43 }
  0x3d   : > { %613 = vmatprep.subr.bf16.mxu1 %v971_v44  ;;  %687 = vmatmul.mubr.bf16.gmra.mrb[4].mxu0 %v1005_v50 }
  0x40   : > { %614 = vmatpush1.bf16.msra.mxu1 %v974_v46 }
  0x41   : > { %615 = vmatprep.subr.bf16.mxu1 %v977_v47 }
  0x44   : > { %616 = vmatpush1.bf16.msra.mxu1 %v980_v48 }
  0x45   : > { %617 = vmatprep.subr.bf16.mxu1 %v983_v49 }
  0x48   : > { %618 = vmatpush1.bf16.msra.mxu1 %v986_v51 }
  0x49   : > { %619 = vmatprep.subr.bf16.mxu1 %v989_v52 }
  0x4c   : > { %620 = vmatpush1.bf16.msra.mxu1 %v992_v53 }
  0x4d   : > { %621 = vmatprep.subr.bf16.mxu1 %v995_v54 }
  0x50   : > { %622 = vmatpush1.bf16.msra.mxu1 %v998_v55 }
  0x53   : > { %624 = vmatmul.mubr.bf16.vlgmr.msra.gmra.mrb[0].mxu1 %v999_v56 }
  0x54   : > { %633 = vmatprep.mubr.bf16.mxu1 %v1003_v57 }
  0x5b   : > { %634 = vmatmul.mubr.bf16.gmra.mrb[4].mxu1 %v1006_v58 }
  0x88   : > { %v302_v3 = vpop.permute.xlu0 %301  ;;  %v312_v15 = vpop.permute.xlu1 %311 }
  0x8c   : > { %v307_v5 = vpop.permute.xlu0 %306  ;;  %v317_v30 = vpop.permute.xlu1 %316 }
 0x108   : > { %v678_v59 = vpop.f32.mrb[0].mxu0 }
 0x109   : > { %v680_v60 = vpop.f32.mrb[1].mxu0 }
 0x10a   : > { %v682_v61 = vpop.f32.mrb[2].mxu0 }
 0x10b   : > { %v684_v62 = vpop.f32.mrb[3].mxu0 }
 0x110   : > { %v688_v63 = vpop.f32.mrb[4].mxu0 }
 0x111   : > { %v690_v0 = vpop.f32.mrb[5].mxu0 }
 0x112   : > { %v692_v1 = vpop.f32.mrb[6].mxu0 }
 0x113   : > { %v694_v2 = vpop.f32.mrb[7].mxu0 }
 0x126   : > { %v625_v4 = vpop.f32.mrb[0].mxu1 }
 0x127   : > { %v626_v6 = vadd.f32 %v625_v4, %v302_v3  ;;  %v627_v7 = vpop.f32.mrb[1].mxu1 }
 0x128   : > { %v628_v9 = vadd.f32 %v627_v7, %v302_v3  ;;  %v629_v10 = vpop.f32.mrb[2].mxu1 }
 0x129   : > { %v679_v11 = vadd.f32 %v678_v59, %v626_v6  ;;  %v630_v12 = vadd.f32 %v629_v10, %v307_v5  ;;  %v631_v13 = vpop.f32.mrb[3].mxu1 }
 0x12a   : > { %v681_v14 = vadd.f32 %v680_v60, %v628_v9  ;;  %v632_v16 = vadd.f32 %v631_v13, %v307_v5 }
 0x12b   : > { %vm698_vm0 = vcmp.ge.f32.partialorder %v679_v11, 0.0  ;;  %v707_v17 = vmul.f32 %v706_v8, %v679_v11  ;;  %v683_v18 = vadd.f32 %v682_v61, %v630_v12 }
 0x12c   : > { %vm699_vm1 = vcmp.ge.f32.partialorder %v681_v14, 0.0  ;;  %v708_v19 = vmul.f32 %v706_v8, %v681_v14  ;;  %v685_v20 = vadd.f32 %v684_v62, %v632_v16 }
 0x12d   : > { %v715_v21 = vsel %vm698_vm0, %v679_v11, %v707_v17  ;;  %vm700_vm2 = vcmp.ge.f32.partialorder %v683_v18, 0.0  ;;  %v709_v22 = vmul.f32 %v706_v8, %v683_v18 }
 0x12e   : > { %723 = vst [vmem:[%s1172_s25] sm:$0xff] %v715_v21  ;;  %v716_v23 = vsel %vm699_vm1, %v681_v14, %v708_v19  ;;  %vm701_vm3 = vcmp.ge.f32.partialorder %v685_v20, 0.0  ;;  %v710_v24 = vmul.f32 %v706_v8, %v685_v20  ;;  %v635_v25 = vpop.f32.mrb[4].mxu1 }
 0x12f   : > { %724 = vst [vmem:[%s1172_s25 + $0x8] sm:$0xff] %v716_v23  ;;  %v717_v26 = vsel %vm700_vm2, %v683_v18, %v709_v22  ;;  %v636_v27 = vadd.f32 %v635_v25, %v312_v15  ;;  %v637_v28 = vpop.f32.mrb[5].mxu1 }
 0x130   : > { %725 = vst [vmem:[%s1172_s25 + $0x10] sm:$0xff] %v717_v26  ;;  %v718_v29 = vsel %vm701_vm3, %v685_v20, %v710_v24  ;;  %v638_v31 = vadd.f32 %v637_v28, %v312_v15  ;;  %v639_v32 = vpop.f32.mrb[6].mxu1 }
 0x131   : > { %726 = vst [vmem:[%s1172_s25 + $0x18] sm:$0xff] %v718_v29  ;;  %v689_v33 = vadd.f32 %v688_v63, %v636_v27  ;;  %v640_v34 = vadd.f32 %v639_v32, %v317_v30  ;;  %v641_v35 = vpop.f32.mrb[7].mxu1 }
 0x132   : > { %v691_v36 = vadd.f32 %v690_v0, %v638_v31  ;;  %v642_v37 = vadd.f32 %v641_v35, %v317_v30 }
 0x133   : > { %vm702_vm4 = vcmp.ge.f32.partialorder %v689_v33, 0.0  ;;  %v711_v38 = vmul.f32 %v706_v8, %v689_v33  ;;  %v693_v39 = vadd.f32 %v692_v1, %v640_v34 }
 0x134   : > { %vm703_vm5 = vcmp.ge.f32.partialorder %v691_v36, 0.0  ;;  %v712_v40 = vmul.f32 %v706_v8, %v691_v36  ;;  %v695_v41 = vadd.f32 %v694_v2, %v642_v37 }
 0x135   : > { %v719_v42 = vsel %vm702_vm4, %v689_v33, %v711_v38  ;;  %vm704_vm6 = vcmp.ge.f32.partialorder %v693_v39, 0.0  ;;  %v713_v43 = vmul.f32 %v706_v8, %v693_v39 }
 0x136   : > { %727 = vst [vmem:[%s1172_s25 + $0x20] sm:$0xff] %v719_v42  ;;  %v720_v44 = vsel %vm703_vm5, %v691_v36, %v712_v40  ;;  %vm705_vm7 = vcmp.ge.f32.partialorder %v695_v41, 0.0  ;;  %v714_v45 = vmul.f32 %v706_v8, %v695_v41 }
 0x137   : > { %728 = vst [vmem:[%s1172_s25 + $0x28] sm:$0xff] %v720_v44  ;;  %v721_v46 = vsel %vm704_vm6, %v693_v39, %v713_v43 }
 0x138   : > { %729 = vst [vmem:[%s1172_s25 + $0x30] sm:$0xff] %v721_v46  ;;  %v722_v47 = vsel %vm705_vm7, %v695_v41, %v714_v45 }
 0x139   : > { %730 = vst [vmem:[%s1172_s25 + $0x38] sm:$0xff] %v722_v47 }
 0x13a PF: > { %s15_s19 = sadd.s32 1, %s1029_s19   ;;  %s1196_s17 = smov %s1025_s18 }
 0x13b   : > { %p12_p5 = scmp.ge.s32.totalorder %s15_s19, 4   ;;  %s1197_s18 = smov %s1199_s3 }
 0x13d   :  { %14 = sbr.rel (!%p12_p5) target bundleno = 2 (0x2), region = 66 }

// kernel: closed_call.14
= control target key start
LH: loop header
LB: loop body
LE: loop exit
PB: predicated region body
PF: predicated region fallthrough
CT: control target
= control target key end

     0   :  { %s1264_s23 = smov 0   ;;  %s1266_s24 = smov 0   ;;  %s1432_s0 = inlined_call_operand.vmem [shape: bf16[2,384,256], index: 0, kind: input, shape index: {}]   ;;  %s1433_s1 = inlined_call_operand.vmem [shape: bf16[32,384], index: 1, kind: input, shape index: {}]   ;;  %s1434_s2 = inlined_call_operand.vmem [shape: f32[32,1], index: 2, kind: input, shape index: {}]   ;;  %s1435_s3 = inlined_call_operand.vmem [shape: f32[2,32,1], index: 3, kind: input, shape index: {}]   ;;  %s1436_s4 = inlined_call_operand.vmem [shape: f32[2,32,256], index: 4, kind: input, shape index: {}]   ;;  %s1437_s5 = inlined_call_operand.<no memory space> [shape: f32[1], index: 5, kind: input, shape index: {}]   ;;  %s1438_s6 = inlined_call_operand.vmem [shape: f32[2,32,256], index: 6, kind: output, shape index: {}]  }
   0x1   :  { %11 = sst [smem:[#allocation2]] %s1437_s5  ;;  %s1268_s25 = smov 0  }
   0x2 LB: > { %s29_s5 = sadd.s32 1, %s1219_s24  ;;  %p1010_p0 = scmp.ge.s32.totalorder %s1223_s25, 1  ;;  %s1223_s25 = sphi %s1268_s25, %s17_s25   ;;  %s1219_s24 = sphi %s1266_s24, %s1440_s24   ;;  %s1215_s23 = sphi %s1264_s23, %s1439_s23  }
   0x3   : > { %p31_p1 = scmp.ge.s32.totalorder %s29_s5, 2  ;;  %p261_p2 = scmp.lt.s32.totalorder %s1223_s25, 3 }
   0x5   : > { %s1442_s5 = smov (%p31_p1, %s29_s5), 0  ;;  %p262_p3 = pnand %p1010_p0, %p261_p2 }
   0x6   : > { %p314_p4 = scmp.lt.s32.totalorder (!%p262_p3), %s1215_s23, 1  ;;  %v1225_v0 = vmov (!%p262_p3), 0   ;;  %v1195_v1 = vld [vmem:[%s1433_s1 + $0x4] ss:$12 sps:$4 sm:$0xff] (!%p262_p3)   ;;  %v408_v4 = vld [vmem:[%s1434_s2 + $0x18] sm:$0xff] (!%p262_p3)  ;;  %v406_v5 = vld [vmem:[%s1434_s2 + $0x8] sm:$0xff] (!%p262_p3) }
   0x7   : > { %265 = sbr.rel (%p262_p3) target bundleno = 318 (0x13e), region = 44  ;;  %786 = vmatprep.mubr.bf16.mxu0 (!%p262_p3), %v1225_v0  ;;  %1120 = vset.pattern.permute.xlu1 (!%p262_p3), %v1225_v0  ;;  %v407_v2 = vld [vmem:[%s1434_s2 + $0x10] sm:$0xff] (!%p262_p3)  ;;  %v405_v3 = vld [vmem:[%s1434_s2] sm:$0xff] (!%p262_p3)  ;;  %v1197_v61 = vld [vmem:[%s1433_s1 + $0x1c] ss:$12 sps:$4 sm:$0xff] (!%p262_p3)   ;;  %s807_s9 = sld [smem:[#allocation2]] (!%p262_p3) }
   0x8   : > { %1119 = vset.pattern.permute.xlu0 (!%p262_p3), %v1225_v0  ;;  %733 = vmatprep.mubr.bf16.mxu1 (!%p262_p3), %v1195_v1  ;;  %v1196_v49 = vld [vmem:[%s1433_s1 + $0x8] ss:$12 sps:$4 sm:$0xff] (!%p262_p3)   ;;  %v1199_v54 = vld [vmem:[%s1433_s1 + $0x20] ss:$12 sps:$4 sm:$0xff] (!%p262_p3)   ;;  %v1200_v62 = vld [vmem:[%s1433_s1 + $0x18] ss:$12 sps:$4 sm:$0xff] (!%p262_p3)  }
   0x9   : > { %421 = vperm.xlu1 (!%p262_p3), %1120, %v407_v2   ;;  %411 = vperm.xlu0 (!%p262_p3), %1119, %v405_v3   ;;  %v1193_v60 = vld [vmem:[%s1433_s1] ss:$12 sps:$4 sm:$0xff] (!%p262_p3)  }
   0xd   : > { %426 = vperm.xlu1 (!%p262_p3), %1120, %v408_v4   ;;  %416 = vperm.xlu0 (!%p262_p3), %1119, %v406_v5  }
   0xe   : > { %s1444_s23 = smov (!%p314_p4, %s1215_s23), 1 }
   0xf   : > { %s1093_s28 = smul.u32 384, %s1444_s23  ;;  %s1074_s16 = sshll.u32 %s1444_s23, 5 }
  0x10   : > { %s327_s19 = scalar_lea.vmem %s1435_s3, %s1074_s16  ;;  %s1075_s10 = sshll.u32 %s1444_s23, 6 }
  0x11   : > { %s1300_s11 = scalar_lea.vmem %s1432_s0, %s1093_s28  ;;  %v850_v38 = vld [vmem:[%s327_s19 + $0x8] sm:$0xff]  ;;  %v849_v39 = vld [vmem:[%s327_s19] sm:$0xff]  ;;  %v852_v41 = vld [vmem:[%s327_s19 + $0x18] sm:$0xff]  ;;  %s1388_s13 = scalar_lea.vmem %s1436_s4, %s1075_s10 }
  0x12   : > { %v1121_v6 = vld [vmem:[%s1300_s11 + $0x4] ss:$8 sps:$4 sm:$0xff]   ;;  %v1123_v7 = vld [vmem:[%s1300_s11] ss:$8 sps:$4 sm:$0xff]   ;;  %v1124_v8 = vld [vmem:[%s1300_s11 + $0x14] ss:$8 sps:$4 sm:$0xff]   ;;  %860 = vperm.xlu1 %1120, %v850_v38   ;;  %855 = vperm.xlu0 %1119, %v849_v39   ;;  %s1403_s16 = scalar_lea.vmem %s1438_s6, %s1075_s10 }
  0x13   : > { %701 = vmatprep.subr.bf16.mxu1 %v1121_v6  ;;  %v1126_v9 = vld [vmem:[%s1300_s11 + $0x10] ss:$8 sps:$4 sm:$0xff]   ;;  %v1127_v10 = vld [vmem:[%s1300_s11 + $0x24] ss:$8 sps:$4 sm:$0xff]   ;;  %v1129_v11 = vld [vmem:[%s1300_s11 + $0x20] ss:$8 sps:$4 sm:$0xff]  }
  0x14   : > { %702 = vmatpush1.bf16.msra.mxu1 %v1123_v7  ;;  %v1130_v12 = vld [vmem:[%s1300_s11 + $0x34] ss:$8 sps:$4 sm:$0xff]   ;;  %v1132_v13 = vld [vmem:[%s1300_s11 + $0x30] ss:$8 sps:$4 sm:$0xff]   ;;  %v1145_v14 = vld [vmem:[%s1300_s11 + $0x104] ss:$8 sps:$4 sm:$0xff]  }
  0x15   : > { %703 = vmatprep.subr.bf16.mxu1 %v1124_v8  ;;  %v1133_v15 = vld [vmem:[%s1300_s11 + $0x44] ss:$8 sps:$4 sm:$0xff]   ;;  %v1149_v16 = vld [vmem:[%s1300_s11 + $0x100] ss:$8 sps:$4 sm:$0xff]   ;;  %754 = vmatprep.subr.bf16.mxu0 %v1145_v14  ;;  %v1151_v17 = vld [vmem:[%s1300_s11 + $0x114] ss:$8 sps:$4 sm:$0xff]  }
  0x16   : > { %755 = vmatpush1.bf16.msra.mxu0 %v1149_v16  ;;  %v1135_v18 = vld [vmem:[%s1300_s11 + $0x40] ss:$8 sps:$4 sm:$0xff]   ;;  %v1136_v19 = vld [vmem:[%s1300_s11 + $0x54] ss:$8 sps:$4 sm:$0xff]   ;;  %v1155_v20 = vld [vmem:[%s1300_s11 + $0x110] ss:$8 sps:$4 sm:$0xff]   ;;  %870 = vperm.xlu1 %1120, %v852_v41  }
  0x17   : > { %756 = vmatprep.subr.bf16.mxu0 %v1151_v17  ;;  %v1157_v21 = vld [vmem:[%s1300_s11 + $0x124] ss:$8 sps:$4 sm:$0xff]   ;;  %v1138_v22 = vld [vmem:[%s1300_s11 + $0x50] ss:$8 sps:$4 sm:$0xff]   ;;  %v1161_v23 = vld [vmem:[%s1300_s11 + $0x120] ss:$8 sps:$4 sm:$0xff]  }
  0x18   : > { %704 = vmatpush1.bf16.msra.mxu1 %v1126_v9  ;;  %v1163_v24 = vld [vmem:[%s1300_s11 + $0x134] ss:$8 sps:$4 sm:$0xff]   ;;  %v1139_v25 = vld [vmem:[%s1300_s11 + $0x64] ss:$8 sps:$4 sm:$0xff]   ;;  %v1167_v26 = vld [vmem:[%s1300_s11 + $0x130] ss:$8 sps:$4 sm:$0xff]  }
  0x19   : > { %705 = vmatprep.subr.bf16.mxu1 %v1127_v10  ;;  %v1141_v27 = vld [vmem:[%s1300_s11 + $0x60] ss:$8 sps:$4 sm:$0xff]   ;;  %v1169_v28 = vld [vmem:[%s1300_s11 + $0x144] ss:$8 sps:$4 sm:$0xff]   ;;  %v1142_v29 = vld [vmem:[%s1300_s11 + $0x74] ss:$8 sps:$4 sm:$0xff]  }
  0x1a   : > { %757 = vmatpush1.bf16.msra.mxu0 %v1155_v20  ;;  %v1144_v30 = vld [vmem:[%s1300_s11 + $0x70] ss:$8 sps:$4 sm:$0xff]   ;;  %v1173_v31 = vld [vmem:[%s1300_s11 + $0x140] ss:$8 sps:$4 sm:$0xff]   ;;  %v1175_v32 = vld [vmem:[%s1300_s11 + $0x154] ss:$8 sps:$4 sm:$0xff]  }
  0x1b   : > { %758 = vmatprep.subr.bf16.mxu0 %v1157_v21  ;;  %v1147_v33 = vld [vmem:[%s1300_s11 + $0x84] ss:$8 sps:$4 sm:$0xff]   ;;  %v1179_v34 = vld [vmem:[%s1300_s11 + $0x150] ss:$8 sps:$4 sm:$0xff]   ;;  %v1150_v35 = vld [vmem:[%s1300_s11 + $0x80] ss:$8 sps:$4 sm:$0xff]  }
  0x1c   : > { %706 = vmatpush1.bf16.msra.mxu1 %v1129_v11  ;;  %v1181_v36 = vld [vmem:[%s1300_s11 + $0x164] ss:$8 sps:$4 sm:$0xff]   ;;  %v1153_v37 = vld [vmem:[%s1300_s11 + $0x94] ss:$8 sps:$4 sm:$0xff]   ;;  %v1185_v40 = vld [vmem:[%s1300_s11 + $0x160] ss:$8 sps:$4 sm:$0xff]  }
  0x1d   : > { %707 = vmatprep.subr.bf16.mxu1 %v1130_v12  ;;  %v851_v42 = vld [vmem:[%s327_s19 + $0x10] sm:$0xff]  ;;  %v1159_v45 = vld [vmem:[%s1300_s11 + $0xa4] ss:$8 sps:$4 sm:$0xff]   ;;  %v1162_v47 = vld [vmem:[%s1300_s11 + $0xa0] ss:$8 sps:$4 sm:$0xff]  }
  0x1e   : > { %759 = vmatpush1.bf16.msra.mxu0 %v1161_v23  ;;  %v1156_v43 = vld [vmem:[%s1300_s11 + $0x90] ss:$8 sps:$4 sm:$0xff]   ;;  %v1187_v44 = vld [vmem:[%s1300_s11 + $0x174] ss:$8 sps:$4 sm:$0xff]   ;;  %865 = vperm.xlu0 %1119, %v851_v42   ;;  %v1171_v51 = vld [vmem:[%s1300_s11 + $0xc4] ss:$8 sps:$4 sm:$0xff]  }
  0x1f   : > { %760 = vmatprep.subr.bf16.mxu0 %v1163_v24  ;;  %v1191_v46 = vld [vmem:[%s1300_s11 + $0x170] ss:$8 sps:$4 sm:$0xff]   ;;  %v1165_v48 = vld [vmem:[%s1300_s11 + $0xb4] ss:$8 sps:$4 sm:$0xff]   ;;  %v1174_v52 = vld [vmem:[%s1300_s11 + $0xc0] ss:$8 sps:$4 sm:$0xff]  }
  0x20   : > { %708 = vmatpush1.bf16.msra.mxu1 %v1132_v13  ;;  %v1168_v50 = vld [vmem:[%s1300_s11 + $0xb0] ss:$8 sps:$4 sm:$0xff]   ;;  %v1177_v53 = vld [vmem:[%s1300_s11 + $0xd4] ss:$8 sps:$4 sm:$0xff]   ;;  %v1183_v56 = vld [vmem:[%s1300_s11 + $0xe4] ss:$8 sps:$4 sm:$0xff]   ;;  %v1381_v13 = vstv %s807_s9 }
  0x21   : > { %709 = vmatprep.subr.bf16.mxu1 %v1133_v15  ;;  %v1180_v55 = vld [vmem:[%s1300_s11 + $0xd0] ss:$8 sps:$4 sm:$0xff]   ;;  %v1186_v57 = vld [vmem:[%s1300_s11 + $0xe0] ss:$8 sps:$4 sm:$0xff]   ;;  %v1189_v58 = vld [vmem:[%s1300_s11 + $0xf4] ss:$8 sps:$4 sm:$0xff]  }
  0x22   : > { %761 = vmatpush1.bf16.msra.mxu0 %v1167_v26  ;;  %v1192_v59 = vld [vmem:[%s1300_s11 + $0xf0] ss:$8 sps:$4 sm:$0xff]   ;;  %v833_v24 = vld [vmem:[%s1388_s13] sm:$0xff]  ;;  %v834_v26 = vld [vmem:[%s1388_s13 + $0x8] sm:$0xff] }
  0x23   : > { %762 = vmatprep.subr.bf16.mxu0 %v1169_v28 }
  0x24   : > { %710 = vmatpush1.bf16.msra.mxu1 %v1135_v18 }
  0x25   : > { %711 = vmatprep.subr.bf16.mxu1 %v1136_v19 }
  0x26   : > { %763 = vmatpush1.bf16.msra.mxu0 %v1173_v31 }
  0x27   : > { %764 = vmatprep.subr.bf16.mxu0 %v1175_v32 }
  0x28   : > { %712 = vmatpush1.bf16.msra.mxu1 %v1138_v22 }
  0x29   : > { %713 = vmatprep.subr.bf16.mxu1 %v1139_v25 }
  0x2a   : > { %765 = vmatpush1.bf16.msra.mxu0 %v1179_v34  ;;  %v836_v34 = vld [vmem:[%s1388_s13 + $0x18] sm:$0xff] }
  0x2b   : > { %766 = vmatprep.subr.bf16.mxu0 %v1181_v36 }
  0x2c   : > { %714 = vmatpush1.bf16.msra.mxu1 %v1141_v27 }
  0x2d   : > { %715 = vmatprep.subr.bf16.mxu1 %v1142_v29  ;;  %v835_v29 = vld [vmem:[%s1388_s13 + $0x10] sm:$0xff] }
  0x2e   : > { %767 = vmatpush1.bf16.msra.mxu0 %v1185_v40 }
  0x2f   : > { %768 = vmatprep.subr.bf16.mxu0 %v1187_v44 }
  0x30   : > { %716 = vmatpush1.bf16.msra.mxu1 %v1144_v30 }
  0x31   : > { %717 = vmatprep.subr.bf16.mxu1 %v1147_v33 }
  0x32   : > { %769 = vmatpush1.bf16.msra.mxu0 %v1191_v46 }
  0x34   : > { %718 = vmatpush1.bf16.msra.mxu1 %v1150_v35 }
  0x35   : > { %719 = vmatprep.subr.bf16.mxu1 %v1153_v37  ;;  %787 = vmatmul.mubr.bf16.vlgmr.msra.gmra.mrb[0].mxu0 %v1196_v49 }
  0x36   : > { %796 = vmatprep.mubr.bf16.mxu0 %v1225_v0 }
  0x38   : > { %720 = vmatpush1.bf16.msra.mxu1 %v1156_v43 }
  0x39   : > { %721 = vmatprep.subr.bf16.mxu1 %v1159_v45 }
  0x3c   : > { %722 = vmatpush1.bf16.msra.mxu1 %v1162_v47 }
  0x3d   : > { %723 = vmatprep.subr.bf16.mxu1 %v1165_v48  ;;  %797 = vmatmul.mubr.bf16.gmra.mrb[4].mxu0 %v1199_v54 }
  0x40   : > { %724 = vmatpush1.bf16.msra.mxu1 %v1168_v50 }
  0x41   : > { %725 = vmatprep.subr.bf16.mxu1 %v1171_v51 }
  0x44   : > { %726 = vmatpush1.bf16.msra.mxu1 %v1174_v52 }
  0x45   : > { %727 = vmatprep.subr.bf16.mxu1 %v1177_v53 }
  0x48   : > { %728 = vmatpush1.bf16.msra.mxu1 %v1180_v55 }
  0x49   : > { %729 = vmatprep.subr.bf16.mxu1 %v1183_v56 }
  0x4c   : > { %730 = vmatpush1.bf16.msra.mxu1 %v1186_v57  ;;  %v837_v57 = vld [vmem:[%s1388_s13 + $0x20] sm:$0xff] }
  0x4d   : > { %731 = vmatprep.subr.bf16.mxu1 %v1189_v58 }
  0x50   : > { %732 = vmatpush1.bf16.msra.mxu1 %v1192_v59 }
  0x53   : > { %734 = vmatmul.mubr.bf16.vlgmr.msra.gmra.mrb[0].mxu1 %v1193_v60  ;;  %v838_v60 = vld [vmem:[%s1388_s13 + $0x28] sm:$0xff] }
  0x54   : > { %743 = vmatprep.mubr.bf16.mxu1 %v1197_v61 }
  0x5b   : > { %744 = vmatmul.mubr.bf16.gmra.mrb[4].mxu1 %v1200_v62 }
  0x88   : > { %v412_v7 = vpop.permute.xlu0 %411  ;;  %v422_v8 = vpop.permute.xlu1 %421 }
  0x8c   : > { %v417_v12 = vpop.permute.xlu0 %416  ;;  %v427_v21 = vpop.permute.xlu1 %426 }
  0x91   : > { %v856_v37 = vpop.permute.xlu0 %855  ;;  %v861_v46 = vpop.permute.xlu1 %860 }
 0x108   : > { %v788_v63 = vpop.f32.mrb[0].mxu0 }
 0x109   : > { %v790_v0 = vpop.f32.mrb[1].mxu0 }
 0x10a   : > { %v792_v1 = vpop.f32.mrb[2].mxu0 }
 0x10b   : > { %v794_v2 = vpop.f32.mrb[3].mxu0 }
 0x110   : > { %v798_v3 = vpop.f32.mrb[4].mxu0 }
 0x111   : > { %v800_v4 = vpop.f32.mrb[5].mxu0 }
 0x112   : > { %v1376_v5 = vpop.f32.mrb[6].mxu0 }
 0x113   : > { %v1378_v6 = vpop.f32.mrb[7].mxu0 }
 0x126   : > { %v735_v9 = vpop.f32.mrb[0].mxu1 }
 0x127   : > { %v736_v10 = vadd.f32 %v735_v9, %v412_v7  ;;  %v737_v11 = vpop.f32.mrb[1].mxu1 }
 0x128   : > { %v738_v14 = vadd.f32 %v737_v11, %v412_v7  ;;  %v739_v15 = vpop.f32.mrb[2].mxu1  ;;  %v871_v11 = vpop.permute.xlu1 %870 }
 0x129   : > { %v789_v16 = vadd.f32 %v788_v63, %v736_v10  ;;  %v740_v17 = vadd.f32 %v739_v15, %v417_v12  ;;  %v741_v18 = vpop.f32.mrb[3].mxu1 }
 0x12a   : > { %v791_v19 = vadd.f32 %v790_v0, %v738_v14  ;;  %v742_v20 = vadd.f32 %v741_v18, %v417_v12  ;;  %v839_v0 = vld [vmem:[%s1388_s13 + $0x30] sm:$0xff] }
 0x12b   : > { %v817_v22 = vmul.f32 %v1381_v13, %v789_v16  ;;  %v793_v23 = vadd.f32 %v792_v1, %v740_v17  ;;  %vm808_vm0 = vcmp.ge.f32.partialorder %v789_v16, 0.0 }
 0x12c   : > { %v818_v25 = vmul.f32 %v1381_v13, %v791_v19  ;;  %vm809_vm1 = vcmp.ge.f32.partialorder %v791_v19, 0.0  ;;  %v795_v27 = vadd.f32 %v794_v2, %v742_v20 }
 0x12d   : > { %v819_v28 = vmul.f32 %v1381_v13, %v793_v23  ;;  %vm810_vm2 = vcmp.ge.f32.partialorder %v793_v23, 0.0  ;;  %v825_v30 = vsel %vm808_vm0, %v789_v16, %v817_v22 }
 0x12e   : > { %v826_v31 = vsel %vm809_vm1, %v791_v19, %v818_v25  ;;  %v841_v32 = vadd.f32 %v833_v24, %v825_v30  ;;  %vm811_vm3 = vcmp.ge.f32.partialorder %v795_v27, 0.0  ;;  %v820_v33 = vmul.f32 %v1381_v13, %v795_v27  ;;  %v745_v35 = vpop.f32.mrb[4].mxu1 }
 0x12f   : > { %v827_v36 = vsel %vm810_vm2, %v793_v23, %v819_v28  ;;  %v842_v38 = vadd.f32 %v834_v26, %v826_v31  ;;  %v746_v39 = vadd.f32 %v745_v35, %v422_v8  ;;  %v747_v40 = vpop.f32.mrb[5].mxu1 }
 0x130   : > { %v843_v41 = vadd.f32 %v835_v29, %v827_v36  ;;  %v873_v42 = vadd.f32 %v856_v37, %v841_v32  ;;  %v828_v43 = vsel %vm811_vm3, %v795_v27, %v820_v33  ;;  %v748_v44 = vadd.f32 %v747_v40, %v422_v8  ;;  %v749_v45 = vpop.f32.mrb[6].mxu1 }
 0x131   : > { %v874_v47 = vadd.f32 %v856_v37, %v842_v38  ;;  %v844_v48 = vadd.f32 %v836_v34, %v828_v43  ;;  %v799_v49 = vadd.f32 %v798_v3, %v746_v39  ;;  %v750_v50 = vadd.f32 %v749_v45, %v427_v21  ;;  %v751_v51 = vpop.f32.mrb[7].mxu1 }
 0x132   : > { %v875_v52 = vadd.f32 %v861_v46, %v843_v41  ;;  %881 = vst [vmem:[%s1403_s16] sm:$0xff] %v873_v42  ;;  %v801_v53 = vadd.f32 %v800_v4, %v748_v44  ;;  %v752_v54 = vadd.f32 %v751_v51, %v427_v21  ;;  %v840_v4 = vld [vmem:[%s1388_s13 + $0x38] sm:$0xff] }
 0x133   : > { %882 = vst [vmem:[%s1403_s16 + $0x8] sm:$0xff] %v874_v47  ;;  %v876_v55 = vadd.f32 %v861_v46, %v844_v48  ;;  %vm812_vm4 = vcmp.ge.f32.partialorder %v799_v49, 0.0  ;;  %v821_v56 = vmul.f32 %v1381_v13, %v799_v49  ;;  %v803_v58 = vadd.f32 %v1376_v5, %v750_v50  ;;  %v866_v5 = vpop.permute.xlu0 %865 }
 0x134   : > { %883 = vst [vmem:[%s1403_s16 + $0x10] sm:$0xff] %v875_v52  ;;  %vm813_vm5 = vcmp.ge.f32.partialorder %v801_v53, 0.0  ;;  %v822_v59 = vmul.f32 %v1381_v13, %v801_v53  ;;  %v805_v61 = vadd.f32 %v1378_v6, %v752_v54 }
 0x135   : > { %884 = vst [vmem:[%s1403_s16 + $0x18] sm:$0xff] %v876_v55  ;;  %v829_v62 = vsel %vm812_vm4, %v799_v49, %v821_v56  ;;  %vm814_vm6 = vcmp.ge.f32.partialorder %v803_v58, 0.0  ;;  %v823_v63 = vmul.f32 %v1381_v13, %v803_v58 }
 0x136   : > { %v845_v1 = vadd.f32 %v837_v57, %v829_v62  ;;  %v830_v2 = vsel %vm813_vm5, %v801_v53, %v822_v59  ;;  %vm815_vm7 = vcmp.ge.f32.partialorder %v805_v61, 0.0  ;;  %v824_v3 = vmul.f32 %v1381_v13, %v805_v61 }
 0x137   : > { %v846_v7 = vadd.f32 %v838_v60, %v830_v2  ;;  %v831_v8 = vsel %vm814_vm6, %v803_v58, %v823_v63 }
 0x138   : > { %v877_v6 = vadd.f32 %v866_v5, %v845_v1  ;;  %v847_v9 = vadd.f32 %v839_v0, %v831_v8  ;;  %v832_v10 = vsel %vm815_vm7, %v805_v61, %v824_v3 }
 0x139   : > { %v878_v12 = vadd.f32 %v866_v5, %v846_v7  ;;  %v848_v14 = vadd.f32 %v840_v4, %v832_v10 }
 0x13a   : > { %885 = vst [vmem:[%s1403_s16 + $0x20] sm:$0xff] %v877_v6  ;;  %v879_v15 = vadd.f32 %v871_v11, %v847_v9 }
 0x13b   : > { %886 = vst [vmem:[%s1403_s16 + $0x28] sm:$0xff] %v878_v12  ;;  %v880_v16 = vadd.f32 %v871_v11, %v848_v14 }
 0x13c   : > { %887 = vst [vmem:[%s1403_s16 + $0x30] sm:$0xff] %v879_v15 }
 0x13d   : > { %888 = vst [vmem:[%s1403_s16 + $0x38] sm:$0xff] %v880_v16 }
 0x13e PF: > { %s17_s25 = sadd.s32 1, %s1223_s25   ;;  %s1439_s23 = smov %s1219_s24 }
 0x13f   : > { %p14_p5 = scmp.ge.s32.totalorder %s17_s25, 4   ;;  %s1440_s24 = smov %s1442_s5 }
 0x141   :  { %16 = sbr.rel (!%p14_p5) target bundleno = 2 (0x2), region = 80 }

// kernel: forward.8
= control target key start
LH: loop header
LB: loop body
LE: loop exit
PB: predicated region body
PF: predicated region fallthrough
CT: control target
= control target key end

     0   :  { %s1202_s18 = smov 0   ;;  %s1204_s19 = smov 0   ;;  %s1350_s0 = inlined_call_operand.vmem [shape: bf16[2,384,256], index: 0, kind: input, shape index: {}]   ;;  %s1351_s1 = inlined_call_operand.vmem [shape: bf16[32,384], index: 1, kind: input, shape index: {}]   ;;  %s1352_s2 = inlined_call_operand.vmem [shape: f32[32,1], index: 2, kind: input, shape index: {}]   ;;  %s1353_s3 = inlined_call_operand.vmem [shape: f32[2,32,1], index: 3, kind: input, shape index: {}]   ;;  %s1354_s4 = inlined_call_operand.vmem [shape: f32[2,32,256], index: 4, kind: input, shape index: {}]   ;;  %s1355_s5 = inlined_call_operand.vmem [shape: f32[2,32,256], index: 5, kind: output, shape index: {}]  }
   0x1   :  { %s1206_s20 = smov 0  }
   0x2 LB: > { %s27_s21 = sadd.s32 1, %s1165_s19  ;;  %p956_p0 = scmp.ge.s32.totalorder %s1169_s20, 1  ;;  %s1169_s20 = sphi %s1206_s20, %s15_s20   ;;  %s1165_s19 = sphi %s1204_s19, %s1357_s19   ;;  %s1161_s18 = sphi %s1202_s18, %s1356_s18  }
   0x3   : > { %p29_p1 = scmp.ge.s32.totalorder %s27_s21, 2  ;;  %p235_p2 = scmp.lt.s32.totalorder %s1169_s20, 3 }
   0x5   : > { %s1359_s21 = smov (%p29_p1, %s27_s21), 0  ;;  %p236_p3 = pnand %p956_p0, %p235_p2 }
   0x6   : > { %p286_p4 = scmp.lt.s32.totalorder (!%p236_p3), %s1161_s18, 1  ;;  %v1171_v0 = vmov (!%p236_p3), 0   ;;  %v1141_v1 = vld [vmem:[%s1351_s1 + $0x4] ss:$12 sps:$4 sm:$0xff] (!%p236_p3)   ;;  %v380_v4 = vld [vmem:[%s1352_s2 + $0x18] sm:$0xff] (!%p236_p3)  ;;  %v378_v5 = vld [vmem:[%s1352_s2 + $0x8] sm:$0xff] (!%p236_p3) }
   0x7   : > { %239 = sbr.rel (%p236_p3) target bundleno = 315 (0x13b), region = 40  ;;  %758 = vmatprep.mubr.bf16.mxu0 (!%p236_p3), %v1171_v0  ;;  %1066 = vset.pattern.permute.xlu1 (!%p236_p3), %v1171_v0  ;;  %v379_v2 = vld [vmem:[%s1352_s2 + $0x10] sm:$0xff] (!%p236_p3)  ;;  %v377_v3 = vld [vmem:[%s1352_s2] sm:$0xff] (!%p236_p3)  ;;  %v1143_v61 = vld [vmem:[%s1351_s1 + $0x1c] ss:$12 sps:$4 sm:$0xff] (!%p236_p3)  }
   0x8   : > { %1065 = vset.pattern.permute.xlu0 (!%p236_p3), %v1171_v0  ;;  %705 = vmatprep.mubr.bf16.mxu1 (!%p236_p3), %v1141_v1  ;;  %v1142_v49 = vld [vmem:[%s1351_s1 + $0x8] ss:$12 sps:$4 sm:$0xff] (!%p236_p3)   ;;  %v1145_v54 = vld [vmem:[%s1351_s1 + $0x20] ss:$12 sps:$4 sm:$0xff] (!%p236_p3)   ;;  %v1146_v62 = vld [vmem:[%s1351_s1 + $0x18] ss:$12 sps:$4 sm:$0xff] (!%p236_p3)  }
   0x9   : > { %393 = vperm.xlu1 (!%p236_p3), %1066, %v379_v2   ;;  %383 = vperm.xlu0 (!%p236_p3), %1065, %v377_v3   ;;  %v1139_v60 = vld [vmem:[%s1351_s1] ss:$12 sps:$4 sm:$0xff] (!%p236_p3)  }
   0xd   : > { %398 = vperm.xlu1 (!%p236_p3), %1066, %v380_v4   ;;  %388 = vperm.xlu0 (!%p236_p3), %1065, %v378_v5  }
   0xe   : > { %s1361_s18 = smov (!%p286_p4, %s1161_s18), 1 }
   0xf   : > { %s1039_s24 = smul.u32 384, %s1361_s18  ;;  %s1020_s11 = sshll.u32 %s1361_s18, 5 }
  0x10   : > { %s299_s14 = scalar_lea.vmem %s1353_s3, %s1020_s11  ;;  %s1021_s29 = sshll.u32 %s1361_s18, 6 }
  0x11   : > { %s1238_s6 = scalar_lea.vmem %s1350_s0, %s1039_s24  ;;  %v796_v38 = vld [vmem:[%s299_s14 + $0x8] sm:$0xff]  ;;  %v795_v39 = vld [vmem:[%s299_s14] sm:$0xff]  ;;  %v798_v41 = vld [vmem:[%s299_s14 + $0x18] sm:$0xff]  ;;  %s1318_s7 = scalar_lea.vmem %s1354_s4, %s1021_s29 }
  0x12   : > { %v1067_v6 = vld [vmem:[%s1238_s6 + $0x4] ss:$8 sps:$4 sm:$0xff]   ;;  %v1069_v7 = vld [vmem:[%s1238_s6] ss:$8 sps:$4 sm:$0xff]   ;;  %v1070_v8 = vld [vmem:[%s1238_s6 + $0x14] ss:$8 sps:$4 sm:$0xff]   ;;  %806 = vperm.xlu1 %1066, %v796_v38   ;;  %801 = vperm.xlu0 %1065, %v795_v39   ;;  %s1327_s9 = scalar_lea.vmem %s1355_s5, %s1021_s29 }
  0x13   : > { %673 = vmatprep.subr.bf16.mxu1 %v1067_v6  ;;  %v1072_v9 = vld [vmem:[%s1238_s6 + $0x10] ss:$8 sps:$4 sm:$0xff]   ;;  %v1073_v10 = vld [vmem:[%s1238_s6 + $0x24] ss:$8 sps:$4 sm:$0xff]   ;;  %v1075_v11 = vld [vmem:[%s1238_s6 + $0x20] ss:$8 sps:$4 sm:$0xff]  }
  0x14   : > { %674 = vmatpush1.bf16.msra.mxu1 %v1069_v7  ;;  %v1076_v12 = vld [vmem:[%s1238_s6 + $0x34] ss:$8 sps:$4 sm:$0xff]   ;;  %v1078_v13 = vld [vmem:[%s1238_s6 + $0x30] ss:$8 sps:$4 sm:$0xff]   ;;  %v1091_v14 = vld [vmem:[%s1238_s6 + $0x104] ss:$8 sps:$4 sm:$0xff]  }
  0x15   : > { %675 = vmatprep.subr.bf16.mxu1 %v1070_v8  ;;  %v1079_v15 = vld [vmem:[%s1238_s6 + $0x44] ss:$8 sps:$4 sm:$0xff]   ;;  %v1095_v16 = vld [vmem:[%s1238_s6 + $0x100] ss:$8 sps:$4 sm:$0xff]   ;;  %726 = vmatprep.subr.bf16.mxu0 %v1091_v14  ;;  %v1097_v17 = vld [vmem:[%s1238_s6 + $0x114] ss:$8 sps:$4 sm:$0xff]  }
  0x16   : > { %727 = vmatpush1.bf16.msra.mxu0 %v1095_v16  ;;  %v1081_v18 = vld [vmem:[%s1238_s6 + $0x40] ss:$8 sps:$4 sm:$0xff]   ;;  %v1082_v19 = vld [vmem:[%s1238_s6 + $0x54] ss:$8 sps:$4 sm:$0xff]   ;;  %v1101_v20 = vld [vmem:[%s1238_s6 + $0x110] ss:$8 sps:$4 sm:$0xff]   ;;  %816 = vperm.xlu1 %1066, %v798_v41  }
  0x17   : > { %728 = vmatprep.subr.bf16.mxu0 %v1097_v17  ;;  %v1103_v21 = vld [vmem:[%s1238_s6 + $0x124] ss:$8 sps:$4 sm:$0xff]   ;;  %v1084_v22 = vld [vmem:[%s1238_s6 + $0x50] ss:$8 sps:$4 sm:$0xff]   ;;  %v1107_v23 = vld [vmem:[%s1238_s6 + $0x120] ss:$8 sps:$4 sm:$0xff]  }
  0x18   : > { %676 = vmatpush1.bf16.msra.mxu1 %v1072_v9  ;;  %v1109_v24 = vld [vmem:[%s1238_s6 + $0x134] ss:$8 sps:$4 sm:$0xff]   ;;  %v1085_v25 = vld [vmem:[%s1238_s6 + $0x64] ss:$8 sps:$4 sm:$0xff]   ;;  %v1113_v26 = vld [vmem:[%s1238_s6 + $0x130] ss:$8 sps:$4 sm:$0xff]  }
  0x19   : > { %677 = vmatprep.subr.bf16.mxu1 %v1073_v10  ;;  %v1087_v27 = vld [vmem:[%s1238_s6 + $0x60] ss:$8 sps:$4 sm:$0xff]   ;;  %v1115_v28 = vld [vmem:[%s1238_s6 + $0x144] ss:$8 sps:$4 sm:$0xff]   ;;  %v1088_v29 = vld [vmem:[%s1238_s6 + $0x74] ss:$8 sps:$4 sm:$0xff]  }
  0x1a   : > { %729 = vmatpush1.bf16.msra.mxu0 %v1101_v20  ;;  %v1090_v30 = vld [vmem:[%s1238_s6 + $0x70] ss:$8 sps:$4 sm:$0xff]   ;;  %v1119_v31 = vld [vmem:[%s1238_s6 + $0x140] ss:$8 sps:$4 sm:$0xff]   ;;  %v1121_v32 = vld [vmem:[%s1238_s6 + $0x154] ss:$8 sps:$4 sm:$0xff]  }
  0x1b   : > { %730 = vmatprep.subr.bf16.mxu0 %v1103_v21  ;;  %v1093_v33 = vld [vmem:[%s1238_s6 + $0x84] ss:$8 sps:$4 sm:$0xff]   ;;  %v1125_v34 = vld [vmem:[%s1238_s6 + $0x150] ss:$8 sps:$4 sm:$0xff]   ;;  %v1096_v35 = vld [vmem:[%s1238_s6 + $0x80] ss:$8 sps:$4 sm:$0xff]  }
  0x1c   : > { %678 = vmatpush1.bf16.msra.mxu1 %v1075_v11  ;;  %v1127_v36 = vld [vmem:[%s1238_s6 + $0x164] ss:$8 sps:$4 sm:$0xff]   ;;  %v1099_v37 = vld [vmem:[%s1238_s6 + $0x94] ss:$8 sps:$4 sm:$0xff]   ;;  %v1131_v40 = vld [vmem:[%s1238_s6 + $0x160] ss:$8 sps:$4 sm:$0xff]  }
  0x1d   : > { %679 = vmatprep.subr.bf16.mxu1 %v1076_v12  ;;  %v797_v42 = vld [vmem:[%s299_s14 + $0x10] sm:$0xff]  ;;  %v1105_v45 = vld [vmem:[%s1238_s6 + $0xa4] ss:$8 sps:$4 sm:$0xff]   ;;  %v1108_v47 = vld [vmem:[%s1238_s6 + $0xa0] ss:$8 sps:$4 sm:$0xff]  }
  0x1e   : > { %731 = vmatpush1.bf16.msra.mxu0 %v1107_v23  ;;  %v1102_v43 = vld [vmem:[%s1238_s6 + $0x90] ss:$8 sps:$4 sm:$0xff]   ;;  %v1133_v44 = vld [vmem:[%s1238_s6 + $0x174] ss:$8 sps:$4 sm:$0xff]   ;;  %811 = vperm.xlu0 %1065, %v797_v42   ;;  %v1117_v51 = vld [vmem:[%s1238_s6 + $0xc4] ss:$8 sps:$4 sm:$0xff]  }
  0x1f   : > { %732 = vmatprep.subr.bf16.mxu0 %v1109_v24  ;;  %v1137_v46 = vld [vmem:[%s1238_s6 + $0x170] ss:$8 sps:$4 sm:$0xff]   ;;  %v1111_v48 = vld [vmem:[%s1238_s6 + $0xb4] ss:$8 sps:$4 sm:$0xff]   ;;  %v1120_v52 = vld [vmem:[%s1238_s6 + $0xc0] ss:$8 sps:$4 sm:$0xff]  }
  0x20   : > { %680 = vmatpush1.bf16.msra.mxu1 %v1078_v13  ;;  %v1114_v50 = vld [vmem:[%s1238_s6 + $0xb0] ss:$8 sps:$4 sm:$0xff]   ;;  %v1123_v53 = vld [vmem:[%s1238_s6 + $0xd4] ss:$8 sps:$4 sm:$0xff]   ;;  %v1129_v56 = vld [vmem:[%s1238_s6 + $0xe4] ss:$8 sps:$4 sm:$0xff]  }
  0x21   : > { %681 = vmatprep.subr.bf16.mxu1 %v1079_v15  ;;  %v1126_v55 = vld [vmem:[%s1238_s6 + $0xd0] ss:$8 sps:$4 sm:$0xff]   ;;  %v1132_v57 = vld [vmem:[%s1238_s6 + $0xe0] ss:$8 sps:$4 sm:$0xff]   ;;  %v1135_v58 = vld [vmem:[%s1238_s6 + $0xf4] ss:$8 sps:$4 sm:$0xff]  }
  0x22   : > { %733 = vmatpush1.bf16.msra.mxu0 %v1113_v26  ;;  %v1138_v59 = vld [vmem:[%s1238_s6 + $0xf0] ss:$8 sps:$4 sm:$0xff]   ;;  %v779_v14 = vld [vmem:[%s1318_s7] sm:$0xff] }
  0x23   : > { %734 = vmatprep.subr.bf16.mxu0 %v1115_v28  ;;  %v782_v26 = vld [vmem:[%s1318_s7 + $0x18] sm:$0xff] }
  0x24   : > { %682 = vmatpush1.bf16.msra.mxu1 %v1081_v18  ;;  %v780_v18 = vld [vmem:[%s1318_s7 + $0x8] sm:$0xff] }
  0x25   : > { %683 = vmatprep.subr.bf16.mxu1 %v1082_v19 }
  0x26   : > { %735 = vmatpush1.bf16.msra.mxu0 %v1119_v31 }
  0x27   : > { %736 = vmatprep.subr.bf16.mxu0 %v1121_v32 }
  0x28   : > { %684 = vmatpush1.bf16.msra.mxu1 %v1084_v22  ;;  %v781_v22 = vld [vmem:[%s1318_s7 + $0x10] sm:$0xff] }
  0x29   : > { %685 = vmatprep.subr.bf16.mxu1 %v1085_v25 }
  0x2a   : > { %737 = vmatpush1.bf16.msra.mxu0 %v1125_v34 }
  0x2b   : > { %738 = vmatprep.subr.bf16.mxu0 %v1127_v36 }
  0x2c   : > { %686 = vmatpush1.bf16.msra.mxu1 %v1087_v27 }
  0x2d   : > { %687 = vmatprep.subr.bf16.mxu1 %v1088_v29 }
  0x2e   : > { %739 = vmatpush1.bf16.msra.mxu0 %v1131_v40  ;;  %v783_v40 = vld [vmem:[%s1318_s7 + $0x20] sm:$0xff] }
  0x2f   : > { %740 = vmatprep.subr.bf16.mxu0 %v1133_v44  ;;  %v784_v44 = vld [vmem:[%s1318_s7 + $0x28] sm:$0xff] }
  0x30   : > { %688 = vmatpush1.bf16.msra.mxu1 %v1090_v30 }
  0x31   : > { %689 = vmatprep.subr.bf16.mxu1 %v1093_v33 }
  0x32   : > { %741 = vmatpush1.bf16.msra.mxu0 %v1137_v46 }
  0x34   : > { %690 = vmatpush1.bf16.msra.mxu1 %v1096_v35 }
  0x35   : > { %691 = vmatprep.subr.bf16.mxu1 %v1099_v37  ;;  %759 = vmatmul.mubr.bf16.vlgmr.msra.gmra.mrb[0].mxu0 %v1142_v49 }
  0x36   : > { %768 = vmatprep.mubr.bf16.mxu0 %v1171_v0 }
  0x38   : > { %692 = vmatpush1.bf16.msra.mxu1 %v1102_v43 }
  0x39   : > { %693 = vmatprep.subr.bf16.mxu1 %v1105_v45 }
  0x3c   : > { %694 = vmatpush1.bf16.msra.mxu1 %v1108_v47 }
  0x3d   : > { %695 = vmatprep.subr.bf16.mxu1 %v1111_v48  ;;  %769 = vmatmul.mubr.bf16.gmra.mrb[4].mxu0 %v1145_v54  ;;  %v785_v48 = vld [vmem:[%s1318_s7 + $0x30] sm:$0xff] }
  0x40   : > { %696 = vmatpush1.bf16.msra.mxu1 %v1114_v50 }
  0x41   : > { %697 = vmatprep.subr.bf16.mxu1 %v1117_v51 }
  0x44   : > { %698 = vmatpush1.bf16.msra.mxu1 %v1120_v52  ;;  %v786_v52 = vld [vmem:[%s1318_s7 + $0x38] sm:$0xff] }
  0x45   : > { %699 = vmatprep.subr.bf16.mxu1 %v1123_v53 }
  0x48   : > { %700 = vmatpush1.bf16.msra.mxu1 %v1126_v55 }
  0x49   : > { %701 = vmatprep.subr.bf16.mxu1 %v1129_v56 }
  0x4c   : > { %702 = vmatpush1.bf16.msra.mxu1 %v1132_v57 }
  0x4d   : > { %703 = vmatprep.subr.bf16.mxu1 %v1135_v58 }
  0x50   : > { %704 = vmatpush1.bf16.msra.mxu1 %v1138_v59 }
  0x53   : > { %706 = vmatmul.mubr.bf16.vlgmr.msra.gmra.mrb[0].mxu1 %v1139_v60 }
  0x54   : > { %715 = vmatprep.mubr.bf16.mxu1 %v1143_v61 }
  0x5b   : > { %716 = vmatmul.mubr.bf16.gmra.mrb[4].mxu1 %v1146_v62 }
  0x88   : > { %v384_v7 = vpop.permute.xlu0 %383  ;;  %v394_v8 = vpop.permute.xlu1 %393 }
  0x8c   : > { %v389_v9 = vpop.permute.xlu0 %388  ;;  %v399_v13 = vpop.permute.xlu1 %398 }
  0x91   : > { %v802_v27 = vpop.permute.xlu0 %801  ;;  %v807_v32 = vpop.permute.xlu1 %806 }
  0x95   : > { %v817_v58 = vpop.permute.xlu1 %816 }
  0x9d   : > { %v812_v53 = vpop.permute.xlu0 %811 }
 0x108   : > { %v760_v63 = vpop.f32.mrb[0].mxu0 }
 0x109   : > { %v762_v0 = vpop.f32.mrb[1].mxu0 }
 0x10a   : > { %v764_v1 = vpop.f32.mrb[2].mxu0 }
 0x10b   : > { %v766_v2 = vpop.f32.mrb[3].mxu0 }
 0x110   : > { %v770_v3 = vpop.f32.mrb[4].mxu0 }
 0x111   : > { %v772_v4 = vpop.f32.mrb[5].mxu0 }
 0x112   : > { %v774_v5 = vpop.f32.mrb[6].mxu0 }
 0x113   : > { %v776_v6 = vpop.f32.mrb[7].mxu0 }
 0x126   : > { %v707_v10 = vpop.f32.mrb[0].mxu1 }
 0x127   : > { %v708_v11 = vadd.f32 %v707_v10, %v384_v7  ;;  %v709_v12 = vpop.f32.mrb[1].mxu1 }
 0x128   : > { %v710_v15 = vadd.f32 %v709_v12, %v384_v7  ;;  %v711_v16 = vpop.f32.mrb[2].mxu1 }
 0x129   : > { %v761_v17 = vadd.f32 %v760_v63, %v708_v11  ;;  %v712_v19 = vadd.f32 %v711_v16, %v389_v9  ;;  %v713_v20 = vpop.f32.mrb[3].mxu1 }
 0x12a   : > { %v763_v21 = vadd.f32 %v762_v0, %v710_v15  ;;  %v714_v23 = vadd.f32 %v713_v20, %v389_v9 }
 0x12b   : > { %v787_v24 = vadd.f32 %v779_v14, %v761_v17  ;;  %v765_v25 = vadd.f32 %v764_v1, %v712_v19 }
 0x12c   : > { %v788_v28 = vadd.f32 %v780_v18, %v763_v21  ;;  %v767_v29 = vadd.f32 %v766_v2, %v714_v23 }
 0x12d   : > { %v819_v30 = vadd.f32 %v802_v27, %v787_v24  ;;  %v789_v31 = vadd.f32 %v781_v22, %v765_v25 }
 0x12e   : > { %v820_v33 = vadd.f32 %v802_v27, %v788_v28  ;;  %v790_v34 = vadd.f32 %v782_v26, %v767_v29  ;;  %v717_v35 = vpop.f32.mrb[4].mxu1 }
 0x12f   : > { %827 = vst [vmem:[%s1327_s9] sm:$0xff] %v819_v30  ;;  %v821_v36 = vadd.f32 %v807_v32, %v789_v31  ;;  %v718_v37 = vadd.f32 %v717_v35, %v394_v8  ;;  %v719_v38 = vpop.f32.mrb[5].mxu1 }
 0x130   : > { %828 = vst [vmem:[%s1327_s9 + $0x8] sm:$0xff] %v820_v33  ;;  %v822_v39 = vadd.f32 %v807_v32, %v790_v34  ;;  %v720_v41 = vadd.f32 %v719_v38, %v394_v8  ;;  %v721_v42 = vpop.f32.mrb[6].mxu1 }
 0x131   : > { %829 = vst [vmem:[%s1327_s9 + $0x10] sm:$0xff] %v821_v36  ;;  %v771_v43 = vadd.f32 %v770_v3, %v718_v37  ;;  %v722_v45 = vadd.f32 %v721_v42, %v399_v13  ;;  %v723_v46 = vpop.f32.mrb[7].mxu1 }
 0x132   : > { %830 = vst [vmem:[%s1327_s9 + $0x18] sm:$0xff] %v822_v39  ;;  %v773_v47 = vadd.f32 %v772_v4, %v720_v41  ;;  %v724_v49 = vadd.f32 %v723_v46, %v399_v13 }
 0x133   : > { %v791_v50 = vadd.f32 %v783_v40, %v771_v43  ;;  %v775_v51 = vadd.f32 %v774_v5, %v722_v45 }
 0x134   : > { %v792_v54 = vadd.f32 %v784_v44, %v773_v47  ;;  %v777_v55 = vadd.f32 %v776_v6, %v724_v49 }
 0x135   : > { %v823_v56 = vadd.f32 %v812_v53, %v791_v50  ;;  %v793_v57 = vadd.f32 %v785_v48, %v775_v51 }
 0x136   : > { %v824_v59 = vadd.f32 %v812_v53, %v792_v54  ;;  %v794_v60 = vadd.f32 %v786_v52, %v777_v55 }
 0x137   : > { %831 = vst [vmem:[%s1327_s9 + $0x20] sm:$0xff] %v823_v56  ;;  %v825_v61 = vadd.f32 %v817_v58, %v793_v57 }
 0x138   : > { %832 = vst [vmem:[%s1327_s9 + $0x28] sm:$0xff] %v824_v59  ;;  %v826_v62 = vadd.f32 %v817_v58, %v794_v60 }
 0x139   : > { %833 = vst [vmem:[%s1327_s9 + $0x30] sm:$0xff] %v825_v61 }
 0x13a   : > { %834 = vst [vmem:[%s1327_s9 + $0x38] sm:$0xff] %v826_v62 }
 0x13b PF: > { %s15_s20 = sadd.s32 1, %s1169_s20   ;;  %s1356_s18 = smov %s1165_s19 }
 0x13c   : > { %p12_p5 = scmp.ge.s32.totalorder %s15_s20, 4   ;;  %s1357_s19 = smov %s1359_s21 }
 0x13e   :  { %14 = sbr.rel (!%p12_p5) target bundleno = 2 (0x2), region = 76 }

// kernel: forward.9
= control target key start
LH: loop header
LB: loop body
LE: loop exit
PB: predicated region body
PF: predicated region fallthrough
CT: control target
= control target key end

     0   :  { %s1159_s20 = smov 0   ;;  %s1161_s21 = smov 0   ;;  %s1294_s0 = inlined_call_operand.vmem [shape: bf16[2,384,256], index: 0, kind: input, shape index: {}]   ;;  %s1295_s1 = inlined_call_operand.vmem [shape: bf16[32,384], index: 1, kind: input, shape index: {}]   ;;  %s1296_s2 = inlined_call_operand.vmem [shape: f32[32,1], index: 2, kind: input, shape index: {}]   ;;  %s1297_s3 = inlined_call_operand.vmem [shape: f32[2,32,1], index: 3, kind: input, shape index: {}]   ;;  %s1298_s4 = inlined_call_operand.<no memory space> [shape: f32[1], index: 4, kind: input, shape index: {}]   ;;  %s1299_s5 = inlined_call_operand.vmem [shape: f32[2,32,256], index: 5, kind: output, shape index: {}]  }
   0x1   :  { %10 = sst [smem:[#allocation2]] %s1298_s4  ;;  %s1163_s22 = smov 0  }
   0x2 LB: > { %s28_s4 = sadd.s32 1, %s1119_s21  ;;  %p913_p0 = scmp.ge.s32.totalorder %s1123_s22, 1  ;;  %s1123_s22 = sphi %s1163_s22, %s16_s22   ;;  %s1119_s21 = sphi %s1161_s21, %s1301_s21   ;;  %s1115_s20 = sphi %s1159_s20, %s1300_s20  }
   0x3   : > { %p30_p1 = scmp.ge.s32.totalorder %s28_s4, 2  ;;  %p219_p2 = scmp.lt.s32.totalorder %s1123_s22, 3 }
   0x5   : > { %s1303_s4 = smov (%p30_p1, %s28_s4), 0  ;;  %p220_p3 = pnand %p913_p0, %p219_p2 }
   0x6   : > { %p261_p4 = scmp.lt.s32.totalorder (!%p220_p3), %s1115_s20, 1  ;;  %v1125_v0 = vmov (!%p220_p3), 0   ;;  %v1095_v1 = vld [vmem:[%s1295_s1 + $0x4] ss:$12 sps:$4 sm:$0xff] (!%p220_p3)   ;;  %v345_v4 = vld [vmem:[%s1296_s2 + $0x18] sm:$0xff] (!%p220_p3)  ;;  %v343_v5 = vld [vmem:[%s1296_s2 + $0x8] sm:$0xff] (!%p220_p3) }
   0x7   : > { %223 = sbr.rel (%p220_p3) target bundleno = 316 (0x13c), region = 40  ;;  %723 = vmatprep.mubr.bf16.mxu0 (!%p220_p3), %v1125_v0  ;;  %1020 = vset.pattern.permute.xlu1 (!%p220_p3), %v1125_v0  ;;  %v344_v2 = vld [vmem:[%s1296_s2 + $0x10] sm:$0xff] (!%p220_p3)  ;;  %v342_v3 = vld [vmem:[%s1296_s2] sm:$0xff] (!%p220_p3)  ;;  %v1097_v61 = vld [vmem:[%s1295_s1 + $0x1c] ss:$12 sps:$4 sm:$0xff] (!%p220_p3)   ;;  %s744_s29 = sld [smem:[#allocation2]] (!%p220_p3) }
   0x8   : > { %1019 = vset.pattern.permute.xlu0 (!%p220_p3), %v1125_v0  ;;  %670 = vmatprep.mubr.bf16.mxu1 (!%p220_p3), %v1095_v1  ;;  %v1096_v49 = vld [vmem:[%s1295_s1 + $0x8] ss:$12 sps:$4 sm:$0xff] (!%p220_p3)   ;;  %v1099_v54 = vld [vmem:[%s1295_s1 + $0x20] ss:$12 sps:$4 sm:$0xff] (!%p220_p3)   ;;  %v1100_v62 = vld [vmem:[%s1295_s1 + $0x18] ss:$12 sps:$4 sm:$0xff] (!%p220_p3)  }
   0x9   : > { %358 = vperm.xlu1 (!%p220_p3), %1020, %v344_v2   ;;  %348 = vperm.xlu0 (!%p220_p3), %1019, %v342_v3   ;;  %v1093_v60 = vld [vmem:[%s1295_s1] ss:$12 sps:$4 sm:$0xff] (!%p220_p3)  }
   0xd   : > { %363 = vperm.xlu1 (!%p220_p3), %1020, %v345_v4   ;;  %353 = vperm.xlu0 (!%p220_p3), %1019, %v343_v5  }
   0xe   : > { %s1305_s20 = smov (!%p261_p4, %s1115_s20), 1 }
   0xf   : > { %s993_s25 = smul.u32 384, %s1305_s20  ;;  %s975_s12 = sshll.u32 %s1305_s20, 5 }
  0x10   : > { %s274_s15 = scalar_lea.vmem %s1297_s3, %s975_s12  ;;  %s976_s30 = sshll.u32 %s1305_s20, 6 }
  0x11   : > { %s1195_s7 = scalar_lea.vmem %s1294_s0, %s993_s25  ;;  %v771_v38 = vld [vmem:[%s274_s15 + $0x8] sm:$0xff]  ;;  %v770_v39 = vld [vmem:[%s274_s15] sm:$0xff]  ;;  %v773_v41 = vld [vmem:[%s274_s15 + $0x18] sm:$0xff]  ;;  %s1275_s8 = scalar_lea.vmem %s1299_s5, %s976_s30 }
  0x12   : > { %v1021_v6 = vld [vmem:[%s1195_s7 + $0x4] ss:$8 sps:$4 sm:$0xff]   ;;  %v1023_v7 = vld [vmem:[%s1195_s7] ss:$8 sps:$4 sm:$0xff]   ;;  %v1024_v8 = vld [vmem:[%s1195_s7 + $0x14] ss:$8 sps:$4 sm:$0xff]   ;;  %781 = vperm.xlu1 %1020, %v771_v38   ;;  %776 = vperm.xlu0 %1019, %v770_v39  }
  0x13   : > { %638 = vmatprep.subr.bf16.mxu1 %v1021_v6  ;;  %v1026_v9 = vld [vmem:[%s1195_s7 + $0x10] ss:$8 sps:$4 sm:$0xff]   ;;  %v1027_v10 = vld [vmem:[%s1195_s7 + $0x24] ss:$8 sps:$4 sm:$0xff]   ;;  %v1029_v11 = vld [vmem:[%s1195_s7 + $0x20] ss:$8 sps:$4 sm:$0xff]  }
  0x14   : > { %639 = vmatpush1.bf16.msra.mxu1 %v1023_v7  ;;  %v1030_v12 = vld [vmem:[%s1195_s7 + $0x34] ss:$8 sps:$4 sm:$0xff]   ;;  %v1032_v13 = vld [vmem:[%s1195_s7 + $0x30] ss:$8 sps:$4 sm:$0xff]   ;;  %v1045_v14 = vld [vmem:[%s1195_s7 + $0x104] ss:$8 sps:$4 sm:$0xff]  }
  0x15   : > { %640 = vmatprep.subr.bf16.mxu1 %v1024_v8  ;;  %v1033_v15 = vld [vmem:[%s1195_s7 + $0x44] ss:$8 sps:$4 sm:$0xff]   ;;  %v1049_v16 = vld [vmem:[%s1195_s7 + $0x100] ss:$8 sps:$4 sm:$0xff]   ;;  %691 = vmatprep.subr.bf16.mxu0 %v1045_v14  ;;  %v1051_v17 = vld [vmem:[%s1195_s7 + $0x114] ss:$8 sps:$4 sm:$0xff]  }
  0x16   : > { %692 = vmatpush1.bf16.msra.mxu0 %v1049_v16  ;;  %v1035_v18 = vld [vmem:[%s1195_s7 + $0x40] ss:$8 sps:$4 sm:$0xff]   ;;  %v1036_v19 = vld [vmem:[%s1195_s7 + $0x54] ss:$8 sps:$4 sm:$0xff]   ;;  %v1055_v20 = vld [vmem:[%s1195_s7 + $0x110] ss:$8 sps:$4 sm:$0xff]   ;;  %791 = vperm.xlu1 %1020, %v773_v41  }
  0x17   : > { %693 = vmatprep.subr.bf16.mxu0 %v1051_v17  ;;  %v1057_v21 = vld [vmem:[%s1195_s7 + $0x124] ss:$8 sps:$4 sm:$0xff]   ;;  %v1038_v22 = vld [vmem:[%s1195_s7 + $0x50] ss:$8 sps:$4 sm:$0xff]   ;;  %v1061_v23 = vld [vmem:[%s1195_s7 + $0x120] ss:$8 sps:$4 sm:$0xff]  }
  0x18   : > { %641 = vmatpush1.bf16.msra.mxu1 %v1026_v9  ;;  %v1063_v24 = vld [vmem:[%s1195_s7 + $0x134] ss:$8 sps:$4 sm:$0xff]   ;;  %v1039_v25 = vld [vmem:[%s1195_s7 + $0x64] ss:$8 sps:$4 sm:$0xff]   ;;  %v1067_v26 = vld [vmem:[%s1195_s7 + $0x130] ss:$8 sps:$4 sm:$0xff]  }
  0x19   : > { %642 = vmatprep.subr.bf16.mxu1 %v1027_v10  ;;  %v1041_v27 = vld [vmem:[%s1195_s7 + $0x60] ss:$8 sps:$4 sm:$0xff]   ;;  %v1069_v28 = vld [vmem:[%s1195_s7 + $0x144] ss:$8 sps:$4 sm:$0xff]   ;;  %v1042_v29 = vld [vmem:[%s1195_s7 + $0x74] ss:$8 sps:$4 sm:$0xff]  }
  0x1a   : > { %694 = vmatpush1.bf16.msra.mxu0 %v1055_v20  ;;  %v1044_v30 = vld [vmem:[%s1195_s7 + $0x70] ss:$8 sps:$4 sm:$0xff]   ;;  %v1073_v31 = vld [vmem:[%s1195_s7 + $0x140] ss:$8 sps:$4 sm:$0xff]   ;;  %v1075_v32 = vld [vmem:[%s1195_s7 + $0x154] ss:$8 sps:$4 sm:$0xff]  }
  0x1b   : > { %695 = vmatprep.subr.bf16.mxu0 %v1057_v21  ;;  %v1047_v33 = vld [vmem:[%s1195_s7 + $0x84] ss:$8 sps:$4 sm:$0xff]   ;;  %v1079_v34 = vld [vmem:[%s1195_s7 + $0x150] ss:$8 sps:$4 sm:$0xff]   ;;  %v1050_v35 = vld [vmem:[%s1195_s7 + $0x80] ss:$8 sps:$4 sm:$0xff]  }
  0x1c   : > { %643 = vmatpush1.bf16.msra.mxu1 %v1029_v11  ;;  %v1081_v36 = vld [vmem:[%s1195_s7 + $0x164] ss:$8 sps:$4 sm:$0xff]   ;;  %v1053_v37 = vld [vmem:[%s1195_s7 + $0x94] ss:$8 sps:$4 sm:$0xff]   ;;  %v1085_v40 = vld [vmem:[%s1195_s7 + $0x160] ss:$8 sps:$4 sm:$0xff]  }
  0x1d   : > { %644 = vmatprep.subr.bf16.mxu1 %v1030_v12  ;;  %v772_v42 = vld [vmem:[%s274_s15 + $0x10] sm:$0xff]  ;;  %v1059_v45 = vld [vmem:[%s1195_s7 + $0xa4] ss:$8 sps:$4 sm:$0xff]   ;;  %v1062_v47 = vld [vmem:[%s1195_s7 + $0xa0] ss:$8 sps:$4 sm:$0xff]  }
  0x1e   : > { %696 = vmatpush1.bf16.msra.mxu0 %v1061_v23  ;;  %v1056_v43 = vld [vmem:[%s1195_s7 + $0x90] ss:$8 sps:$4 sm:$0xff]   ;;  %v1087_v44 = vld [vmem:[%s1195_s7 + $0x174] ss:$8 sps:$4 sm:$0xff]   ;;  %786 = vperm.xlu0 %1019, %v772_v42   ;;  %v1071_v51 = vld [vmem:[%s1195_s7 + $0xc4] ss:$8 sps:$4 sm:$0xff]  }
  0x1f   : > { %697 = vmatprep.subr.bf16.mxu0 %v1063_v24  ;;  %v1091_v46 = vld [vmem:[%s1195_s7 + $0x170] ss:$8 sps:$4 sm:$0xff]   ;;  %v1065_v48 = vld [vmem:[%s1195_s7 + $0xb4] ss:$8 sps:$4 sm:$0xff]   ;;  %v1074_v52 = vld [vmem:[%s1195_s7 + $0xc0] ss:$8 sps:$4 sm:$0xff]  }
  0x20   : > { %645 = vmatpush1.bf16.msra.mxu1 %v1032_v13  ;;  %v1068_v50 = vld [vmem:[%s1195_s7 + $0xb0] ss:$8 sps:$4 sm:$0xff]   ;;  %v1077_v53 = vld [vmem:[%s1195_s7 + $0xd4] ss:$8 sps:$4 sm:$0xff]   ;;  %v1083_v56 = vld [vmem:[%s1195_s7 + $0xe4] ss:$8 sps:$4 sm:$0xff]   ;;  %v753_v13 = vstv %s744_s29 }
  0x21   : > { %646 = vmatprep.subr.bf16.mxu1 %v1033_v15  ;;  %v1080_v55 = vld [vmem:[%s1195_s7 + $0xd0] ss:$8 sps:$4 sm:$0xff]   ;;  %v1086_v57 = vld [vmem:[%s1195_s7 + $0xe0] ss:$8 sps:$4 sm:$0xff]   ;;  %v1089_v58 = vld [vmem:[%s1195_s7 + $0xf4] ss:$8 sps:$4 sm:$0xff]  }
  0x22   : > { %698 = vmatpush1.bf16.msra.mxu0 %v1067_v26  ;;  %v1092_v59 = vld [vmem:[%s1195_s7 + $0xf0] ss:$8 sps:$4 sm:$0xff]  }
  0x23   : > { %699 = vmatprep.subr.bf16.mxu0 %v1069_v28 }
  0x24   : > { %647 = vmatpush1.bf16.msra.mxu1 %v1035_v18 }
  0x25   : > { %648 = vmatprep.subr.bf16.mxu1 %v1036_v19 }
  0x26   : > { %700 = vmatpush1.bf16.msra.mxu0 %v1073_v31 }
  0x27   : > { %701 = vmatprep.subr.bf16.mxu0 %v1075_v32 }
  0x28   : > { %649 = vmatpush1.bf16.msra.mxu1 %v1038_v22 }
  0x29   : > { %650 = vmatprep.subr.bf16.mxu1 %v1039_v25 }
  0x2a   : > { %702 = vmatpush1.bf16.msra.mxu0 %v1079_v34 }
  0x2b   : > { %703 = vmatprep.subr.bf16.mxu0 %v1081_v36 }
  0x2c   : > { %651 = vmatpush1.bf16.msra.mxu1 %v1041_v27 }
  0x2d   : > { %652 = vmatprep.subr.bf16.mxu1 %v1042_v29 }
  0x2e   : > { %704 = vmatpush1.bf16.msra.mxu0 %v1085_v40 }
  0x2f   : > { %705 = vmatprep.subr.bf16.mxu0 %v1087_v44 }
  0x30   : > { %653 = vmatpush1.bf16.msra.mxu1 %v1044_v30 }
  0x31   : > { %654 = vmatprep.subr.bf16.mxu1 %v1047_v33 }
  0x32   : > { %706 = vmatpush1.bf16.msra.mxu0 %v1091_v46 }
  0x34   : > { %655 = vmatpush1.bf16.msra.mxu1 %v1050_v35 }
  0x35   : > { %656 = vmatprep.subr.bf16.mxu1 %v1053_v37  ;;  %724 = vmatmul.mubr.bf16.vlgmr.msra.gmra.mrb[0].mxu0 %v1096_v49 }
  0x36   : > { %733 = vmatprep.mubr.bf16.mxu0 %v1125_v0 }
  0x38   : > { %657 = vmatpush1.bf16.msra.mxu1 %v1056_v43 }
  0x39   : > { %658 = vmatprep.subr.bf16.mxu1 %v1059_v45 }
  0x3c   : > { %659 = vmatpush1.bf16.msra.mxu1 %v1062_v47 }
  0x3d   : > { %660 = vmatprep.subr.bf16.mxu1 %v1065_v48  ;;  %734 = vmatmul.mubr.bf16.gmra.mrb[4].mxu0 %v1099_v54 }
  0x40   : > { %661 = vmatpush1.bf16.msra.mxu1 %v1068_v50 }
  0x41   : > { %662 = vmatprep.subr.bf16.mxu1 %v1071_v51 }
  0x44   : > { %663 = vmatpush1.bf16.msra.mxu1 %v1074_v52 }
  0x45   : > { %664 = vmatprep.subr.bf16.mxu1 %v1077_v53 }
  0x48   : > { %665 = vmatpush1.bf16.msra.mxu1 %v1080_v55 }
  0x49   : > { %666 = vmatprep.subr.bf16.mxu1 %v1083_v56 }
  0x4c   : > { %667 = vmatpush1.bf16.msra.mxu1 %v1086_v57 }
  0x4d   : > { %668 = vmatprep.subr.bf16.mxu1 %v1089_v58 }
  0x50   : > { %669 = vmatpush1.bf16.msra.mxu1 %v1092_v59 }
  0x53   : > { %671 = vmatmul.mubr.bf16.vlgmr.msra.gmra.mrb[0].mxu1 %v1093_v60 }
  0x54   : > { %680 = vmatprep.mubr.bf16.mxu1 %v1097_v61 }
  0x5b   : > { %681 = vmatmul.mubr.bf16.gmra.mrb[4].mxu1 %v1100_v62 }
  0x88   : > { %v349_v7 = vpop.permute.xlu0 %348  ;;  %v359_v8 = vpop.permute.xlu1 %358 }
  0x8c   : > { %v354_v10 = vpop.permute.xlu0 %353  ;;  %v364_v16 = vpop.permute.xlu1 %363 }
  0x91   : > { %v777_v26 = vpop.permute.xlu0 %776  ;;  %v782_v33 = vpop.permute.xlu1 %781 }
  0x95   : > { %v792_v58 = vpop.permute.xlu1 %791 }
  0x9d   : > { %v787_v52 = vpop.permute.xlu0 %786 }
 0x108   : > { %v725_v63 = vpop.f32.mrb[0].mxu0 }
 0x109   : > { %v727_v0 = vpop.f32.mrb[1].mxu0 }
 0x10a   : > { %v729_v1 = vpop.f32.mrb[2].mxu0 }
 0x10b   : > { %v731_v2 = vpop.f32.mrb[3].mxu0 }
 0x110   : > { %v735_v3 = vpop.f32.mrb[4].mxu0 }
 0x111   : > { %v737_v4 = vpop.f32.mrb[5].mxu0 }
 0x112   : > { %v739_v5 = vpop.f32.mrb[6].mxu0 }
 0x113   : > { %v741_v6 = vpop.f32.mrb[7].mxu0 }
 0x126   : > { %v672_v9 = vpop.f32.mrb[0].mxu1 }
 0x127   : > { %v673_v11 = vadd.f32 %v672_v9, %v349_v7  ;;  %v674_v12 = vpop.f32.mrb[1].mxu1 }
 0x128   : > { %v675_v14 = vadd.f32 %v674_v12, %v349_v7  ;;  %v676_v15 = vpop.f32.mrb[2].mxu1 }
 0x129   : > { %v726_v17 = vadd.f32 %v725_v63, %v673_v11  ;;  %v677_v18 = vadd.f32 %v676_v15, %v354_v10  ;;  %v678_v19 = vpop.f32.mrb[3].mxu1 }
 0x12a   : > { %v728_v20 = vadd.f32 %v727_v0, %v675_v14  ;;  %v679_v21 = vadd.f32 %v678_v19, %v354_v10 }
 0x12b   : > { %v754_v22 = vmul.f32 %v753_v13, %v726_v17  ;;  %vm745_vm0 = vcmp.ge.f32.partialorder %v726_v17, 0.0  ;;  %v730_v23 = vadd.f32 %v729_v1, %v677_v18 }
 0x12c   : > { %v755_v24 = vmul.f32 %v753_v13, %v728_v20  ;;  %vm746_vm1 = vcmp.ge.f32.partialorder %v728_v20, 0.0  ;;  %v732_v25 = vadd.f32 %v731_v2, %v679_v21 }
 0x12d   : > { %v762_v27 = vsel %vm745_vm0, %v726_v17, %v754_v22  ;;  %vm747_vm2 = vcmp.ge.f32.partialorder %v730_v23, 0.0  ;;  %v756_v28 = vmul.f32 %v753_v13, %v730_v23 }
 0x12e   : > { %v763_v29 = vsel %vm746_vm1, %v728_v20, %v755_v24  ;;  %v794_v30 = vadd.f32 %v777_v26, %v762_v27  ;;  %vm748_vm3 = vcmp.ge.f32.partialorder %v732_v25, 0.0  ;;  %v757_v31 = vmul.f32 %v753_v13, %v732_v25  ;;  %v682_v32 = vpop.f32.mrb[4].mxu1 }
 0x12f   : > { %v795_v34 = vadd.f32 %v777_v26, %v763_v29  ;;  %v764_v35 = vsel %vm747_vm2, %v730_v23, %v756_v28  ;;  %v683_v36 = vadd.f32 %v682_v32, %v359_v8  ;;  %v684_v37 = vpop.f32.mrb[5].mxu1 }
 0x130   : > { %802 = vst [vmem:[%s1275_s8] sm:$0xff] %v794_v30  ;;  %v796_v38 = vadd.f32 %v782_v33, %v764_v35  ;;  %v765_v39 = vsel %vm748_vm3, %v732_v25, %v757_v31  ;;  %v685_v40 = vadd.f32 %v684_v37, %v359_v8  ;;  %v686_v41 = vpop.f32.mrb[6].mxu1 }
 0x131   : > { %803 = vst [vmem:[%s1275_s8 + $0x8] sm:$0xff] %v795_v34  ;;  %v797_v42 = vadd.f32 %v782_v33, %v765_v39  ;;  %v736_v43 = vadd.f32 %v735_v3, %v683_v36  ;;  %v687_v44 = vadd.f32 %v686_v41, %v364_v16  ;;  %v688_v45 = vpop.f32.mrb[7].mxu1 }
 0x132   : > { %804 = vst [vmem:[%s1275_s8 + $0x10] sm:$0xff] %v796_v38  ;;  %v738_v46 = vadd.f32 %v737_v4, %v685_v40  ;;  %v689_v47 = vadd.f32 %v688_v45, %v364_v16 }
 0x133   : > { %805 = vst [vmem:[%s1275_s8 + $0x18] sm:$0xff] %v797_v42  ;;  %vm749_vm4 = vcmp.ge.f32.partialorder %v736_v43, 0.0  ;;  %v758_v48 = vmul.f32 %v753_v13, %v736_v43  ;;  %v740_v49 = vadd.f32 %v739_v5, %v687_v44 }
 0x134   : > { %vm750_vm5 = vcmp.ge.f32.partialorder %v738_v46, 0.0  ;;  %v759_v50 = vmul.f32 %v753_v13, %v738_v46  ;;  %v742_v51 = vadd.f32 %v741_v6, %v689_v47 }
 0x135   : > { %v766_v53 = vsel %vm749_vm4, %v736_v43, %v758_v48  ;;  %vm751_vm6 = vcmp.ge.f32.partialorder %v740_v49, 0.0  ;;  %v760_v54 = vmul.f32 %v753_v13, %v740_v49 }
 0x136   : > { %v798_v55 = vadd.f32 %v787_v52, %v766_v53  ;;  %v767_v56 = vsel %vm750_vm5, %v738_v46, %v759_v50  ;;  %vm752_vm7 = vcmp.ge.f32.partialorder %v742_v51, 0.0  ;;  %v761_v57 = vmul.f32 %v753_v13, %v742_v51 }
 0x137   : > { %v799_v59 = vadd.f32 %v787_v52, %v767_v56  ;;  %v768_v60 = vsel %vm751_vm6, %v740_v49, %v760_v54 }
 0x138   : > { %806 = vst [vmem:[%s1275_s8 + $0x20] sm:$0xff] %v798_v55  ;;  %v800_v61 = vadd.f32 %v792_v58, %v768_v60  ;;  %v769_v62 = vsel %vm752_vm7, %v742_v51, %v761_v57 }
 0x139   : > { %807 = vst [vmem:[%s1275_s8 + $0x28] sm:$0xff] %v799_v59  ;;  %v801_v63 = vadd.f32 %v792_v58, %v769_v62 }
 0x13a   : > { %808 = vst [vmem:[%s1275_s8 + $0x30] sm:$0xff] %v800_v61 }
 0x13b   : > { %809 = vst [vmem:[%s1275_s8 + $0x38] sm:$0xff] %v801_v63 }
 0x13c PF: > { %s16_s22 = sadd.s32 1, %s1123_s22   ;;  %s1300_s20 = smov %s1119_s21 }
 0x13d   : > { %p13_p5 = scmp.ge.s32.totalorder %s16_s22, 4   ;;  %s1301_s21 = smov %s1303_s4 }
 0x13f   :  { %15 = sbr.rel (!%p13_p5) target bundleno = 2 (0x2), region = 73 }

// kernel: forward.10
= control target key start
LH: loop header
LB: loop body
LE: loop exit
PB: predicated region body
PF: predicated region fallthrough
CT: control target
= control target key end

     0   :  { %s980_s0 = inlined_call_operand.vmem [shape: bf16[2,128,1024], index: 0, kind: input, shape index: {}]   ;;  %s981_s1 = inlined_call_operand.vmem [shape: bf16[8,128], index: 1, kind: input, shape index: {}]   ;;  %s982_s2 = inlined_call_operand.vmem [shape: f32[8,1], index: 2, kind: input, shape index: {}]   ;;  %s983_s3 = inlined_call_operand.vmem [shape: f32[2,8,1], index: 3, kind: input, shape index: {}]   ;;  %s984_s4 = inlined_call_operand.<no memory space> [shape: f32[1], index: 4, kind: input, shape index: {}]   ;;  %s985_s5 = inlined_call_operand.vmem [shape: f32[2,8,1024], index: 5, kind: output, shape index: {}]  }
   0x1   :  { %10 = sst [smem:[#allocation2]] %s984_s4 }
   0x2   :  { %s838_s20 = smov 0   ;;  %s840_s21 = smov 0  }
   0x3   :  { %s842_s22 = smov 0   ;;  %s844_s23 = smov 0  }
   0x4   :  { %s846_s24 = smov 0   ;;  %s848_s25 = smov 0  }
   0x5   :  { %s850_s26 = smov 0  }
   0x6 LB: > { %s25_s4 = sadd.s32 1, %s794_s24  ;;  %s28_s27 = sadd.s32 1, %s798_s25  ;;  %s802_s26 = sphi %s850_s26, %s16_s26   ;;  %s798_s25 = sphi %s848_s25, %s991_s25   ;;  %s794_s24 = sphi %s846_s24, %s990_s24   ;;  %s790_s23 = sphi %s844_s23, %s989_s23   ;;  %s786_s22 = sphi %s842_s22, %s988_s22   ;;  %s782_s21 = sphi %s840_s21, %s987_s21   ;;  %s778_s20 = sphi %s838_s20, %s986_s20  }
   0x7   : > { %p26_p0 = scmp.ge.s32.totalorder %s25_s4, 4  ;;  %p44_p1 = scmp.ne.s32.totalorder %s782_s21, %s778_s20 }
   0x8   : > { %p45_p2 = scmp.eq.s32.totalorder %s802_s26, 0  ;;  %s37_s6 = sadd.s32 1, %s782_s21 }
   0x9   : > { %s993_s4 = smov (%p26_p0, %s25_s4), 0  ;;  %s995_s27 = smov (!%p26_p0, %s28_s27), %s798_s25 }
   0xa   : > { %p46_p3 = por %p45_p2, %p44_p1  ;;  %p30_p4 = scmp.ge.s32.totalorder %s995_s27, 2 }
   0xb   : > { %s33_s28 = ssub.s32 %s794_s24, %s993_s4  ;;  %p637_p6 = scmp.ge.s32.totalorder %s802_s26, 8 }
   0xc   : > { %s997_s27 = smov (%p30_p4, %s995_s27), 0 }
   0xd   : > { %s32_s29 = ssub.s32 %s798_s25, %s997_s27  ;;  %196 = sbr.rel (%p637_p6) target bundleno = 43 (0x2b), region = 28 }
   0xe   : > { %s34_s30 = sor.u32 %s33_s28, %s32_s29 }
   0xf   : > { %p35_p5 = scmp.eq.s32.totalorder %s34_s30, 0 }
  0x11   : > { %s889_s7 = scalar_select %p35_p5, %s782_s21, %s37_s6  }
  0x14   : > { %199 = sbr.rel (!%p46_p3) target bundleno = 43 (0x2b), region = 32  ;;  %s201_s8 = sand.u32 (%p46_p3), 1, %s782_s21  }
  0x15   : > { %s639_s9 = sshll.u32 (%p46_p3), %s794_s24, 1  ;;  %s638_s10 = sshll.u32 (%p46_p3), %s201_s8, 7 }
  0x16   : > { %s640_s11 = sshll.u32 (%p46_p3), %s798_s25, 7  ;;  %s203_s17 = scalar_lea.vmem (%p46_p3), [#allocation3], %s638_s10 }
  0x17   : > { %s206_s12 = sadd.s32 (%p46_p3), %s640_s11, %s639_s9 }
  0x18   : > { %s641_s13 = sshll.u32 (%p46_p3), %s206_s12, 2 }
  0x19   : > { %s898_s16 = scalar_lea.vmem (%p46_p3), %s980_s0, %s641_s13 }
  0x1a   : > { %v266_v0 = vld [vmem:[%s898_s16] sm:$0xff] (%p46_p3) }
  0x1b   : > { %v268_v1 = vld [vmem:[%s898_s16 + $0x20] sm:$0xff]  ;;  %267 = vst [vmem:[%s203_s17] sm:$0xff] %v266_v0 }
  0x1c   : > { %v270_v2 = vld [vmem:[%s898_s16 + $0x40] sm:$0xff]  ;;  %269 = vst [vmem:[%s203_s17 + $0x8] sm:$0xff] %v268_v1 }
  0x1d   : > { %271 = vst [vmem:[%s203_s17 + $0x10] sm:$0xff] %v270_v2  ;;  %v272_v3 = vld [vmem:[%s898_s16 + $0x60] sm:$0xff] }
  0x1e   : > { %v274_v4 = vld [vmem:[%s898_s16 + $0x80] sm:$0xff]  ;;  %273 = vst [vmem:[%s203_s17 + $0x18] sm:$0xff] %v272_v3 }
  0x1f   : > { %v276_v5 = vld [vmem:[%s898_s16 + $0xa0] sm:$0xff]  ;;  %275 = vst [vmem:[%s203_s17 + $0x20] sm:$0xff] %v274_v4 }
  0x20   : > { %277 = vst [vmem:[%s203_s17 + $0x28] sm:$0xff] %v276_v5  ;;  %v278_v6 = vld [vmem:[%s898_s16 + $0xc0] sm:$0xff] }
  0x21   : > { %v280_v7 = vld [vmem:[%s898_s16 + $0xe0] sm:$0xff]  ;;  %279 = vst [vmem:[%s203_s17 + $0x30] sm:$0xff] %v278_v6 }
  0x22   : > { %v282_v8 = vld [vmem:[%s898_s16 + $0x100] sm:$0xff]  ;;  %281 = vst [vmem:[%s203_s17 + $0x38] sm:$0xff] %v280_v7 }
  0x23   : > { %283 = vst [vmem:[%s203_s17 + $0x40] sm:$0xff] %v282_v8  ;;  %v284_v9 = vld [vmem:[%s898_s16 + $0x120] sm:$0xff] }
  0x24   : > { %v286_v10 = vld [vmem:[%s898_s16 + $0x140] sm:$0xff]  ;;  %285 = vst [vmem:[%s203_s17 + $0x48] sm:$0xff] %v284_v9 }
  0x25   : > { %v288_v11 = vld [vmem:[%s898_s16 + $0x160] sm:$0xff]  ;;  %287 = vst [vmem:[%s203_s17 + $0x50] sm:$0xff] %v286_v10 }
  0x26   : > { %289 = vst [vmem:[%s203_s17 + $0x58] sm:$0xff] %v288_v11  ;;  %v290_v12 = vld [vmem:[%s898_s16 + $0x180] sm:$0xff] }
  0x27   : > { %v292_v13 = vld [vmem:[%s898_s16 + $0x1a0] sm:$0xff]  ;;  %291 = vst [vmem:[%s203_s17 + $0x60] sm:$0xff] %v290_v12 }
  0x28   : > { %v294_v14 = vld [vmem:[%s898_s16 + $0x1c0] sm:$0xff]  ;;  %293 = vst [vmem:[%s203_s17 + $0x68] sm:$0xff] %v292_v13 }
  0x29   : > { %295 = vst [vmem:[%s203_s17 + $0x70] sm:$0xff] %v294_v14  ;;  %v296_v15 = vld [vmem:[%s898_s16 + $0x1e0] sm:$0xff] }
  0x2a   : > { %297 = vst [vmem:[%s203_s17 + $0x78] sm:$0xff] %v296_v15 }
  0x2b PF: > { %p642_p7 = scmp.ge.s32.totalorder %s802_s26, 1  ;;  %p309_p8 = scmp.lt.s32.totalorder %s802_s26, 9 }
  0x2d   : > { %p310_p9 = pnand %p642_p7, %p309_p8 }
  0x2e   : > { %s316_s18 = sand.u32 (!%p310_p9), 1, %s778_s20   ;;  %v384_v16 = vld [vmem:[%s982_s2] sm:$0xff] (!%p310_p9)  ;;  %p352_p10 = scmp.lt.s32.totalorder (!%p310_p9), %s790_s23, 1  ;;  %v804_v17 = vmov (!%p310_p9), 0  }
  0x2f   : > { %313 = sbr.rel (%p310_p9) target bundleno = 303 (0x12f), region = 74  ;;  %s643_s29 = sshll.u32 (!%p310_p9), %s316_s18, 7  ;;  %502 = vmatprep.mubr.bf16.mxu0 (!%p310_p9), %v804_v17  ;;  %723 = vset.pattern.permute.xlu0 (!%p310_p9), %v804_v17  ;;  %v367_v35 = vld [vmem:[%s981_s1] sm:$0xf] (!%p310_p9) }
  0x30   : > { %387 = vperm.xlu0 (!%p310_p9), %723, %v384_v16   ;;  %s923_s30 = scalar_lea.vmem (!%p310_p9), [#allocation3], %s643_s29  ;;  %s645_s12 = sshll.u32 (!%p310_p9), %s786_s22, 1 }
  0x31   : > { %v724_v18 = vld [vmem:[%s923_s30 + $0x4] ss:$8 sps:$4 sm:$0xff] (!%p310_p9)   ;;  %v726_v19 = vld [vmem:[%s923_s30] ss:$8 sps:$4 sm:$0xff] (!%p310_p9)   ;;  %v727_v20 = vld [vmem:[%s923_s30 + $0x14] ss:$8 sps:$4 sm:$0xff] (!%p310_p9)  }
  0x32   : > { %470 = vmatprep.subr.bf16.mxu0 (!%p310_p9), %v724_v18  ;;  %v729_v21 = vld [vmem:[%s923_s30 + $0x10] ss:$8 sps:$4 sm:$0xff] (!%p310_p9)   ;;  %v730_v22 = vld [vmem:[%s923_s30 + $0x24] ss:$8 sps:$4 sm:$0xff] (!%p310_p9)   ;;  %v732_v23 = vld [vmem:[%s923_s30 + $0x20] ss:$8 sps:$4 sm:$0xff] (!%p310_p9)  }
  0x33   : > { %471 = vmatpush1.bf16.msra.mxu0 (!%p310_p9), %v726_v19  ;;  %v733_v24 = vld [vmem:[%s923_s30 + $0x34] ss:$8 sps:$4 sm:$0xff] (!%p310_p9)   ;;  %v735_v26 = vld [vmem:[%s923_s30 + $0x30] ss:$8 sps:$4 sm:$0xff] (!%p310_p9)   ;;  %v736_v27 = vld [vmem:[%s923_s30 + $0x44] ss:$8 sps:$4 sm:$0xff] (!%p310_p9)  }
  0x34   : > { %472 = vmatprep.subr.bf16.mxu0 (!%p310_p9), %v727_v20  ;;  %v738_v28 = vld [vmem:[%s923_s30 + $0x40] ss:$8 sps:$4 sm:$0xff] (!%p310_p9)   ;;  %v739_v29 = vld [vmem:[%s923_s30 + $0x54] ss:$8 sps:$4 sm:$0xff] (!%p310_p9)   ;;  %v741_v30 = vld [vmem:[%s923_s30 + $0x50] ss:$8 sps:$4 sm:$0xff] (!%p310_p9)  }
  0x35   : > { %v742_v31 = vld [vmem:[%s923_s30 + $0x64] ss:$8 sps:$4 sm:$0xff] (!%p310_p9)   ;;  %v744_v32 = vld [vmem:[%s923_s30 + $0x60] ss:$8 sps:$4 sm:$0xff] (!%p310_p9)   ;;  %v745_v33 = vld [vmem:[%s923_s30 + $0x74] ss:$8 sps:$4 sm:$0xff] (!%p310_p9)  }
  0x36   : > { %s999_s23 = smov (!%p352_p10, %s790_s23), 1  ;;  %v747_v34 = vld [vmem:[%s923_s30 + $0x70] ss:$8 sps:$4 sm:$0xff]   ;;  %p359_p11 = scmp.lt.s32.totalorder %s645_s12, 7 }
  0x37   : > { %s644_s20 = sshll.u32 %s999_s23, 3  ;;  %473 = vmatpush1.bf16.msra.mxu0 %v729_v21  ;;  %s511_s13 = sld [smem:[#allocation2]] }
  0x38   : > { %s355_s9 = scalar_lea.vmem %s983_s3, %s644_s20  ;;  %474 = vmatprep.subr.bf16.mxu0 %v730_v22  ;;  %s1001_s12 = smov (!%p359_p11, %s645_s12), 7 }
  0x39   : > { %v519_v25 = vld [vmem:[%s355_s9] sm:$0xff]  ;;  %s362_s14 = sadd.s32 %s644_s20, %s1001_s12 }
  0x3a   : > { %522 = vperm.xlu0 %723, %v519_v25   ;;  %s647_s15 = sshll.u32 %s362_s14, 3 }
  0x3b   : > { %475 = vmatpush1.bf16.msra.mxu0 %v732_v23  ;;  %s364_s17 = scalar_lea.vmem %s985_s5, %s647_s15 }
  0x3c   : > { %476 = vmatprep.subr.bf16.mxu0 %v733_v24 }
  0x3d   : > { %v514_v38 = vstv %s511_s13 }
  0x3f   : > { %477 = vmatpush1.bf16.msra.mxu0 %v735_v26 }
  0x40   : > { %478 = vmatprep.subr.bf16.mxu0 %v736_v27 }
  0x43   : > { %479 = vmatpush1.bf16.msra.mxu0 %v738_v28 }
  0x44   : > { %480 = vmatprep.subr.bf16.mxu0 %v739_v29 }
  0x47   : > { %481 = vmatpush1.bf16.msra.mxu0 %v741_v30 }
  0x48   : > { %482 = vmatprep.subr.bf16.mxu0 %v742_v31 }
  0x4b   : > { %483 = vmatpush1.bf16.msra.mxu0 %v744_v32 }
  0x4c   : > { %484 = vmatprep.subr.bf16.mxu0 %v745_v33 }
  0x4f   : > { %485 = vmatpush1.bf16.msra.mxu0 %v747_v34 }
  0x52   : > { %503 = vmatmul.mubr.bf16.vlgmr.msra.gmra.mrb[0].mxu0 %v367_v35 }
  0xaf   : > { %v388_v36 = vpop.permute.xlu0 %387 }
  0xb9   : > { %v523_v46 = vpop.permute.xlu0 %522 }
 0x125   : > { %v504_v37 = vpop.f32.mrb[0].mxu0 }
 0x126   : > { %v505_v39 = vadd.f32 %v504_v37, %v388_v36  ;;  %v506_v40 = vpop.f32.mrb[1].mxu0 }
 0x127   : > { %v507_v41 = vadd.f32 %v506_v40, %v388_v36  ;;  %v508_v42 = vpop.f32.mrb[2].mxu0 }
 0x128   : > { %v515_v43 = vmul.f32 %v514_v38, %v505_v39  ;;  %vm512_vm0 = vcmp.ge.f32.partialorder %v505_v39, 0.0  ;;  %v509_v44 = vpop.f32.mrb[3].mxu0 }
 0x129   : > { %vm513_vm1 = vcmp.ge.f32.partialorder %v507_v41, 0.0  ;;  %v516_v45 = vmul.f32 %v514_v38, %v507_v41 }
 0x12a   : > { %v517_v47 = vsel %vm512_vm0, %v505_v39, %v515_v43 }
 0x12b   : > { %v525_v48 = vadd.f32 %v523_v46, %v517_v47  ;;  %v518_v49 = vsel %vm513_vm1, %v507_v41, %v516_v45 }
 0x12c   : > { %v526_v50 = vadd.f32 %v523_v46, %v518_v49 }
 0x12d   : > { %527 = vst [vmem:[%s364_s17] sm:$0xff] %v525_v48 }
 0x12e   : > { %528 = vst [vmem:[%s364_s17 + $0x8] sm:$0xff] %v526_v50 }
 0x12f PF: > { %s16_s26 = sadd.s32 1, %s802_s26   ;;  %s986_s20 = smov %s782_s21 }
 0x130   : > { %p13_p12 = scmp.ge.s32.totalorder %s16_s26, 10   ;;  %s987_s21 = smov %s889_s7 }
 0x131   : > { %s988_s22 = smov %s794_s24  ;;  %s989_s23 = smov %s798_s25 }
 0x132   : > { %s990_s24 = smov %s993_s4  ;;  %s991_s25 = smov %s997_s27 }
 0x133   :  { %15 = sbr.rel (!%p13_p12) target bundleno = 6 (0x6), region = 116 }

// kernel: forward.11
= control target key start
LH: loop header
LB: loop body
LE: loop exit
PB: predicated region body
PF: predicated region fallthrough
CT: control target
= control target key end

     0   :  { %s714_s12 = smov 0   ;;  %s716_s13 = smov 0   ;;  %s797_s0 = inlined_call_operand.vmem [shape: bf16[2,256,256], index: 0, kind: input, shape index: {}]   ;;  %s798_s1 = inlined_call_operand.vmem [shape: bf16[8,256], index: 1, kind: input, shape index: {}]   ;;  %s799_s2 = inlined_call_operand.vmem [shape: f32[8,1], index: 2, kind: input, shape index: {}]   ;;  %s800_s3 = inlined_call_operand.vmem [shape: f32[2,8,256], index: 3, kind: output, shape index: {}]  }
   0x1   :  { %s718_s14 = smov 0  }
   0x2 LB: > { %s25_s15 = sadd.s32 1, %s687_s13  ;;  %p550_p0 = scmp.ge.s32.totalorder %s691_s14, 1  ;;  %s691_s14 = sphi %s718_s14, %s13_s14   ;;  %s687_s13 = sphi %s716_s13, %s802_s13   ;;  %s683_s12 = sphi %s714_s12, %s801_s12  }
   0x3   : > { %p27_p1 = scmp.ge.s32.totalorder %s25_s15, 2  ;;  %p158_p2 = scmp.lt.s32.totalorder %s691_s14, 3 }
   0x5   : > { %s804_s15 = smov (%p27_p1, %s25_s15), 0  ;;  %p159_p3 = pnand %p550_p0, %p158_p2 }
   0x6   : > { %p191_p4 = scmp.lt.s32.totalorder (!%p159_p3), %s683_s12, 1  ;;  %v735_v0 = vld [vmem:[%s798_s1] sm:$0xff] (!%p159_p3)  ;;  %v693_v3 = vmov (!%p159_p3), 0  }
   0x7   : > { %162 = sbr.rel (%p159_p3) target bundleno = 298 (0x12a), region = 32  ;;  %v243_v1 = vld [vmem:[%s799_s2] sm:$0xff] (!%p159_p3)  ;;  %v556_v2 = vcombine.high (!%p159_p3), %v735_v0, %v735_v0  ;;  %618 = vset.pattern.permute.xlu0 (!%p159_p3), %v693_v3  ;;  %v555_v36 = vcombine.low (!%p159_p3), %v735_v0, %v735_v0 }
   0x8   : > { %246 = vperm.xlu0 (!%p159_p3), %618, %v243_v1  }
   0x9   : > { %448 = vmatprep.mubr.bf16.mxu0 (!%p159_p3), %v556_v2 }
   0xe   : > { %s806_s12 = smov (!%p191_p4, %s683_s12), 1 }
   0xf   : > { %s591_s20 = sshll.u32 %s806_s12, 8  ;;  %s592_s24 = sshll.u32 %s806_s12, 4 }
  0x10   : > { %s748_s23 = scalar_lea.vmem %s797_s0, %s591_s20  ;;  %s208_s27 = scalar_lea.vmem %s800_s3, %s592_s24 }
  0x11   : > { %v619_v4 = vld [vmem:[%s748_s23 + $0x4] ss:$8 sps:$4 sm:$0xff]   ;;  %v621_v5 = vld [vmem:[%s748_s23] ss:$8 sps:$4 sm:$0xff]   ;;  %v622_v6 = vld [vmem:[%s748_s23 + $0x14] ss:$8 sps:$4 sm:$0xff]  }
  0x12   : > { %416 = vmatprep.subr.bf16.mxu0 %v619_v4  ;;  %v624_v7 = vld [vmem:[%s748_s23 + $0x10] ss:$8 sps:$4 sm:$0xff]   ;;  %v625_v8 = vld [vmem:[%s748_s23 + $0x24] ss:$8 sps:$4 sm:$0xff]   ;;  %v627_v9 = vld [vmem:[%s748_s23 + $0x20] ss:$8 sps:$4 sm:$0xff]  }
  0x13   : > { %417 = vmatpush1.bf16.msra.mxu0 %v621_v5  ;;  %v628_v10 = vld [vmem:[%s748_s23 + $0x34] ss:$8 sps:$4 sm:$0xff]   ;;  %v630_v11 = vld [vmem:[%s748_s23 + $0x30] ss:$8 sps:$4 sm:$0xff]   ;;  %v631_v12 = vld [vmem:[%s748_s23 + $0x44] ss:$8 sps:$4 sm:$0xff]  }
  0x14   : > { %418 = vmatprep.subr.bf16.mxu0 %v622_v6  ;;  %v633_v13 = vld [vmem:[%s748_s23 + $0x40] ss:$8 sps:$4 sm:$0xff]   ;;  %v634_v14 = vld [vmem:[%s748_s23 + $0x54] ss:$8 sps:$4 sm:$0xff]   ;;  %v636_v15 = vld [vmem:[%s748_s23 + $0x50] ss:$8 sps:$4 sm:$0xff]  }
  0x15   : > { %v637_v16 = vld [vmem:[%s748_s23 + $0x64] ss:$8 sps:$4 sm:$0xff]   ;;  %v639_v17 = vld [vmem:[%s748_s23 + $0x60] ss:$8 sps:$4 sm:$0xff]   ;;  %v640_v18 = vld [vmem:[%s748_s23 + $0x74] ss:$8 sps:$4 sm:$0xff]  }
  0x16   : > { %v642_v19 = vld [vmem:[%s748_s23 + $0x70] ss:$8 sps:$4 sm:$0xff]   ;;  %v643_v20 = vld [vmem:[%s748_s23 + $0x84] ss:$8 sps:$4 sm:$0xff]   ;;  %v645_v21 = vld [vmem:[%s748_s23 + $0x80] ss:$8 sps:$4 sm:$0xff]  }
  0x17   : > { %419 = vmatpush1.bf16.msra.mxu0 %v624_v7  ;;  %v646_v22 = vld [vmem:[%s748_s23 + $0x94] ss:$8 sps:$4 sm:$0xff]   ;;  %v648_v23 = vld [vmem:[%s748_s23 + $0x90] ss:$8 sps:$4 sm:$0xff]   ;;  %v649_v24 = vld [vmem:[%s748_s23 + $0xa4] ss:$8 sps:$4 sm:$0xff]  }
  0x18   : > { %420 = vmatprep.subr.bf16.mxu0 %v625_v8  ;;  %v651_v25 = vld [vmem:[%s748_s23 + $0xa0] ss:$8 sps:$4 sm:$0xff]   ;;  %v652_v26 = vld [vmem:[%s748_s23 + $0xb4] ss:$8 sps:$4 sm:$0xff]   ;;  %v654_v27 = vld [vmem:[%s748_s23 + $0xb0] ss:$8 sps:$4 sm:$0xff]  }
  0x19   : > { %v655_v28 = vld [vmem:[%s748_s23 + $0xc4] ss:$8 sps:$4 sm:$0xff]   ;;  %v657_v29 = vld [vmem:[%s748_s23 + $0xc0] ss:$8 sps:$4 sm:$0xff]   ;;  %v658_v30 = vld [vmem:[%s748_s23 + $0xd4] ss:$8 sps:$4 sm:$0xff]  }
  0x1a   : > { %v660_v31 = vld [vmem:[%s748_s23 + $0xd0] ss:$8 sps:$4 sm:$0xff]   ;;  %v661_v32 = vld [vmem:[%s748_s23 + $0xe4] ss:$8 sps:$4 sm:$0xff]   ;;  %v663_v33 = vld [vmem:[%s748_s23 + $0xe0] ss:$8 sps:$4 sm:$0xff]  }
  0x1b   : > { %421 = vmatpush1.bf16.msra.mxu0 %v627_v9  ;;  %v664_v34 = vld [vmem:[%s748_s23 + $0xf4] ss:$8 sps:$4 sm:$0xff]   ;;  %v666_v35 = vld [vmem:[%s748_s23 + $0xf0] ss:$8 sps:$4 sm:$0xff]  }
  0x1c   : > { %422 = vmatprep.subr.bf16.mxu0 %v628_v10 }
  0x1f   : > { %423 = vmatpush1.bf16.msra.mxu0 %v630_v11 }
  0x20   : > { %424 = vmatprep.subr.bf16.mxu0 %v631_v12 }
  0x23   : > { %425 = vmatpush1.bf16.msra.mxu0 %v633_v13 }
  0x24   : > { %426 = vmatprep.subr.bf16.mxu0 %v634_v14 }
  0x27   : > { %427 = vmatpush1.bf16.msra.mxu0 %v636_v15 }
  0x28   : > { %428 = vmatprep.subr.bf16.mxu0 %v637_v16 }
  0x2b   : > { %429 = vmatpush1.bf16.msra.mxu0 %v639_v17 }
  0x2c   : > { %430 = vmatprep.subr.bf16.mxu0 %v640_v18 }
  0x2f   : > { %431 = vmatpush1.bf16.msra.mxu0 %v642_v19 }
  0x30   : > { %432 = vmatprep.subr.bf16.mxu0 %v643_v20 }
  0x33   : > { %433 = vmatpush1.bf16.msra.mxu0 %v645_v21 }
  0x34   : > { %434 = vmatprep.subr.bf16.mxu0 %v646_v22 }
  0x37   : > { %435 = vmatpush1.bf16.msra.mxu0 %v648_v23 }
  0x38   : > { %436 = vmatprep.subr.bf16.mxu0 %v649_v24 }
  0x3b   : > { %437 = vmatpush1.bf16.msra.mxu0 %v651_v25 }
  0x3c   : > { %438 = vmatprep.subr.bf16.mxu0 %v652_v26 }
  0x3f   : > { %439 = vmatpush1.bf16.msra.mxu0 %v654_v27 }
  0x40   : > { %440 = vmatprep.subr.bf16.mxu0 %v655_v28 }
  0x43   : > { %441 = vmatpush1.bf16.msra.mxu0 %v657_v29 }
  0x44   : > { %442 = vmatprep.subr.bf16.mxu0 %v658_v30 }
  0x47   : > { %443 = vmatpush1.bf16.msra.mxu0 %v660_v31 }
  0x48   : > { %444 = vmatprep.subr.bf16.mxu0 %v661_v32 }
  0x4b   : > { %445 = vmatpush1.bf16.msra.mxu0 %v663_v33 }
  0x4c   : > { %446 = vmatprep.subr.bf16.mxu0 %v664_v34 }
  0x4f   : > { %447 = vmatpush1.bf16.msra.mxu0 %v666_v35 }
  0x52   : > { %449 = vmatmul.mubr.bf16.vlgmr.msra.gmra.mrb[0].mxu0 %v555_v36 }
  0x87   : > { %v247_v37 = vpop.permute.xlu0 %246 }
 0x125   : > { %v450_v38 = vpop.f32.mrb[0].mxu0 }
 0x126   : > { %v451_v39 = vadd.f32 %v450_v38, %v247_v37  ;;  %v452_v40 = vpop.f32.mrb[1].mxu0 }
 0x127   : > { %v453_v41 = vadd.f32 %v452_v40, %v247_v37  ;;  %v454_v42 = vpop.f32.mrb[2].mxu0 }
 0x128   : > { %457 = vst [vmem:[%s208_s27] sm:$0xff] %v451_v39  ;;  %v455_v43 = vpop.f32.mrb[3].mxu0 }
 0x129   : > { %458 = vst [vmem:[%s208_s27 + $0x8] sm:$0xff] %v453_v41 }
 0x12a PF: > { %s13_s14 = sadd.s32 1, %s691_s14   ;;  %s801_s12 = smov %s687_s13 }
 0x12b   : > { %p10_p5 = scmp.ge.s32.totalorder %s13_s14, 4   ;;  %s802_s13 = smov %s804_s15 }
 0x12d   :  { %12 = sbr.rel (!%p10_p5) target bundleno = 2 (0x2), region = 62 }

</bundles_post_ra>
